<compile_context>
chip_gen: v5e
topology: v5e:2x2
jax: 0.10.0
libtpu: 0.0.40
codegen_flags: <defaults>
</compile_context>

<pallas_src>
import functools

import numpy as np
import jax
import jax.numpy as jnp
from jax.experimental import pallas as pl
from jax.experimental.pallas import tpu as pltpu


LRELU_NEG = 0.2
BN_EPS = 1e-5

# (Cin, Cout, Lin) per ConvTranspose1d(k=4, s=2, p=1) layer.
CONV_PLAN = [(128, 64, 16), (64, 32, 32), (32, 16, 64), (16, 1, 128)]


def slab_offsets():
    """Static offsets of the packed per-channel parameter slab."""
    offs, cur = {}, 0
    for li, (_, cout, _) in enumerate(CONV_PLAN[:3], start=1):
        for name in ("b", "g", "bt"):
            offs[f"{name}{li}"] = cur
            cur += cout
    offs["b4"] = cur
    cur += 1
    return offs, cur


# ------------------------------- Pallas kernel ------------------------------

def generator_kernel(xzb_ref, wfc_ref, bfc_ref, w1_ref, w2_ref, w3_ref, w4_ref,
                     slab_ref, eo_ref, sm_ref, o_ref):
    bsz = o_ref.shape[0]
    offs, _ = slab_offsets()

    def lrelu(v):
        return jnp.where(v > 0, v, LRELU_NEG * v)

    # -- fc (Linear(input_dim, 2048)) + LeakyReLU, computed directly in the
    #    (128, B*16) batch-on-lanes layout with full-width VPU FMAs.
    acc = bfc_ref[...]                                            # (128, B*16)
    for i in range(xzb_ref.shape[0]):
        acc = acc + wfc_ref[i] * xzb_ref[i:i + 1, :]
    x = lrelu(acc)

    # -- ConvTranspose1d(k=4, s=2, p=1): tap matmul + boundary masks + one
    #    fixed 'interleave' matmul per 128-lane chunk (tap k of position i
    #    lands at output lane 2i+k-1; masks stop leaks across batch blocks).
    def conv_up(xin, w_ref, bias, l_in):
        assert l_in & (l_in - 1) == 0 and 128 % l_in == 0
        cout = w_ref.shape[0] // 4
        n = xin.shape[1]
        t = jnp.dot(w_ref[...], xin.astype(jnp.bfloat16),
                    preferred_element_type=jnp.float32)           # (4*Cout, N)
        t0, t1, t2, t3 = (t[k * cout:(k + 1) * cout, :] for k in range(4))
        pos = jax.lax.broadcasted_iota(jnp.int32, (1, n), 1)
        loc = jnp.bitwise_and(pos, l_in - 1)                      # pos within batch block
        t3m = jnp.where(loc == l_in - 1, 0.0, t3)                 # tap 3 never crosses block end
        t0m = jnp.where(loc == 0, 0.0, t0)                        # tap 0 never crosses block start
        chunks = []
        for c0 in range(0, n, 128):
            nw = min(128, n - c0)
            parts = []
            for a in (t1, t2, t3m, t0m):
                blk = a[:, c0:c0 + nw]
                if nw < 128:
                    blk = jnp.concatenate(
                        [blk, jnp.zeros((cout, 128 - nw), jnp.float32)], axis=1)
                parts.append(blk)
            lhs = jnp.concatenate(parts, axis=1).astype(jnp.bfloat16)  # (Cout, 512)
            oc = jnp.dot(lhs, eo_ref[...],
                         preferred_element_type=jnp.float32)           # (Cout, 256)
            chunks.append(oc if nw == 128 else oc[:, :2 * nw])
        y = chunks[0] if len(chunks) == 1 else jnp.concatenate(chunks, axis=1)
        return y + bias                                            # (Cout, 2N)

    def bn_lrelu(y, gamma, beta):
        # BatchNorm1d training-mode batch stats; two-pass (centered) variance.
        inv_n = 1.0 / y.shape[1]
        mean = jnp.sum(y, axis=1, keepdims=True) * inv_n           # (C, 1)
        c = y - mean
        var = jnp.sum(c * c, axis=1, keepdims=True) * inv_n
        scale = jax.lax.rsqrt(var + BN_EPS) * gamma
        return lrelu(c * scale + beta)

    for li, w_ref in ((1, w1_ref), (2, w2_ref), (3, w3_ref)):
        _, cout, l_in = CONV_PLAN[li - 1]
        bias = slab_ref[offs[f"b{li}"]:offs[f"b{li}"] + cout, :]
        gamma = slab_ref[offs[f"g{li}"]:offs[f"g{li}"] + cout, :]
        beta = slab_ref[offs[f"bt{li}"]:offs[f"bt{li}"] + cout, :]
        x = bn_lrelu(conv_up(x, w_ref, bias, l_in), gamma, beta)

    # -- ConvTranspose1d(16, 1) fused with Upsample(size=vah, mode='linear'):
    #    one (B, 512) @ (512, vah_pad) matmul; the conv bias folds exactly
    #    because every upsample column sums to 1.
    t4 = jnp.dot(w4_ref[...], x.astype(jnp.bfloat16),
                 preferred_element_type=jnp.float32)               # (4, B*128)
    rows = []
    for b in range(bsz):
        rows.append(jnp.concatenate(
            [t4[k:k + 1, b * 128:(b + 1) * 128] for k in range(4)], axis=1))
    a_mat = rows[0] if bsz == 1 else jnp.concatenate(rows, axis=0)  # (B, 512)
    out = jnp.dot(a_mat.astype(jnp.bfloat16), sm_ref[...],
                  preferred_element_type=jnp.float32)               # (B, vah_pad)
    o_ref[...] = out + slab_ref[offs["b4"]:offs["b4"] + 1, :]


# --------------------------- host-side constant prep ------------------------

def make_scatter(l_in, k):
    # ConvTranspose1d(k=4, s=2, p=1): out index j = 2*i + k - 1, kept if in range.
    i = np.arange(l_in)[:, None]
    j = np.arange(2 * l_in)[None, :]
    return (j == 2 * i + k - 1).astype(np.float32)


def make_interleave_matrix():
    """(512, 256): LHS rows are [t1 | t2 | t3(masked) | t0(masked)] per 128-chunk."""
    eo = np.zeros((512, 256), np.float32)
    m = np.arange(128)
    eo[m, 2 * m] = 1.0                      # t1[m] -> out[2m]
    eo[128 + m, 2 * m + 1] = 1.0            # t2[m] -> out[2m+1]
    mm = np.arange(127)
    eo[256 + mm, 2 * mm + 2] = 1.0          # t3[m] -> out[2m+2]
    mm = np.arange(1, 128)
    eo[384 + mm, 2 * mm - 1] = 1.0          # t0[m] -> out[2m-1]
    return eo


def make_upsample_matrix(l_in, l_out):
    # PyTorch Upsample(mode='linear', align_corners=False) as (l_in, l_out).
    scale = l_in / l_out
    j = np.arange(l_out)
    src = np.maximum(scale * (j + 0.5) - 0.5, 0.0)
    i0 = np.minimum(np.floor(src).astype(np.int64), l_in - 1)
    i1 = i0 + (i0 < l_in - 1).astype(np.int64)
    w1 = src - i0
    w0 = 1.0 - w1
    m = np.zeros((l_in, l_out), np.float32)
    m[i0, j] += w0.astype(np.float32)
    m[i1, j] += w1.astype(np.float32)
    return m


def init_params(key, in_dim, desc_dim):
    """Parameters in PyTorch layouts (Linear: (out,in); ConvT1d: (Cin,Cout,K))."""
    input_dim = in_dim + desc_dim
    ks = jax.random.split(key, 16)
    p = {"fc.weight": 0.05 * jax.random.normal(ks[0], (128 * 16, input_dim), jnp.float32),
         "fc.bias": 0.05 * jax.random.normal(ks[1], (128 * 16,), jnp.float32)}
    for li, (cin, cout, _) in enumerate(CONV_PLAN, start=1):
        p[f"conv{li}.weight"] = 0.05 * jax.random.normal(ks[2 * li], (cin, cout, 4), jnp.float32)
        p[f"conv{li}.bias"] = 0.05 * jax.random.normal(ks[2 * li + 1], (cout,), jnp.float32)
        if li < 4:  # BatchNorm1d default init
            p[f"bn{li}.weight"] = jnp.ones((cout,), jnp.float32)
            p[f"bn{li}.bias"] = jnp.zeros((cout,), jnp.float32)
    return p


def prepare_operands(p, batch, vah_dim):
    """Convert PyTorch-layout params into kernel operands for a given batch."""
    d_in = p["fc.weight"].shape[1]
    vah_pad = ((vah_dim + 127) // 128) * 128
    wfc_r = jnp.transpose(p["fc.weight"], (1, 0)).reshape(d_in, 128, 16)
    ops = {
        "wfc": jnp.tile(wfc_r, (1, 1, batch)),                        # (D, 128, B*16)
        "bfc": jnp.tile(p["fc.bias"].reshape(128, 16), (1, batch)),   # (128, B*16)
    }
    for li, (cin, cout, _) in enumerate(CONV_PLAN, start=1):
        wt = jnp.transpose(p[f"conv{li}.weight"], (2, 1, 0)).reshape(4 * cout, cin)
        ops[f"w{li}"] = wt.astype(jnp.bfloat16)                       # tap-stacked weight
    pieces = []
    for li in range(1, 4):
        pieces += [p[f"conv{li}.bias"], p[f"bn{li}.weight"], p[f"bn{li}.bias"]]
    pieces.append(p["conv4.bias"])
    ops["slab"] = jnp.concatenate(pieces).reshape(-1, 1).astype(jnp.float32)
    ops["eo"] = jnp.asarray(make_interleave_matrix(), jnp.bfloat16)   # (512, 256)
    m = np.zeros((256, vah_pad), np.float32)
    m[:, :vah_dim] = make_upsample_matrix(256, vah_dim)
    sm = np.concatenate([make_scatter(128, k) @ m for k in range(4)], axis=0)
    ops["sm"] = jnp.asarray(sm, jnp.bfloat16)                         # (512, vah_pad)
    return ops


# ----------------------------------- forward --------------------------------

@functools.partial(jax.jit, static_argnames=("vah_dim",))
def generator_forward(x, z, ops, *, vah_dim):
    # x: (B, 1, in_dim), z: (B, 1, desc_dim)  ->  (B, vah_dim)
    bsz = x.shape[0]
    d = jnp.concatenate([x[:, 0, :], z[:, 0, :]], axis=1).astype(jnp.float32)  # (B, D)
    xzb = jnp.repeat(jnp.transpose(d), 16, axis=1)                              # (D, B*16)
    vah_pad = ops["sm"].shape[1]

    args = (xzb, ops["wfc"], ops["bfc"], ops["w1"], ops["w2"], ops["w3"],
            ops["w4"], ops["slab"], ops["eo"], ops["sm"])
    vmem = pl.BlockSpec(memory_space=pltpu.MemorySpace.VMEM)

    flops = 2 * xzb.shape[0] * 128 * bsz * 16
    for cin, cout, l_in in CONV_PLAN[:3]:
        n = bsz * l_in
        flops += 2 * (4 * cout) * cin * n + 2 * cout * 512 * 256 * pl.cdiv(n, 128)
    flops += 2 * 4 * 16 * bsz * 128 + 2 * bsz * 512 * vah_pad
    bytes_accessed = sum(int(np.prod(a.shape)) * a.dtype.itemsize for a in args)
    bytes_accessed += bsz * vah_pad * 4

    out = pl.pallas_call(
        generator_kernel,
        out_shape=jax.ShapeDtypeStruct((bsz, vah_pad), jnp.float32),
        in_specs=[vmem] * len(args),
        out_specs=vmem,
        compiler_params=pltpu.CompilerParams(vmem_limit_bytes=32 * 1024 * 1024),
        cost_estimate=pl.CostEstimate(flops=int(flops), transcendentals=112,
                                      bytes_accessed=int(bytes_accessed)),
    )(*args)
    return out[:, :vah_dim]                                          # drop lane padding


# ----------------------------------- main -----------------------------------

if __name__ == "__main__":
    B, IN_DIM, DESC_DIM, VAH_DIM = 2, 8, 8, 300
    key = jax.random.PRNGKey(0)
    kx, kz, kp = jax.random.split(key, 3)

    x = jax.random.normal(kx, (B, 1, IN_DIM), jnp.float32)
    z = jax.random.normal(kz, (B, 1, DESC_DIM), jnp.float32)

    params = init_params(kp, IN_DIM, DESC_DIM)
    ops = prepare_operands(params, batch=B, vah_dim=VAH_DIM)

    out = generator_forward(x, z, ops, vah_dim=VAH_DIM)
    out = jax.block_until_ready(out)

    assert out.shape == (B, VAH_DIM), out.shape
    assert bool(jnp.all(jnp.isfinite(out)))
    print("KERNEL_OK")
</pallas_src>

<mosaic_0001>
module attributes {stable_mosaic.version = 11 : i64} {
  func.func @generator_kernel(%arg0: memref<16x32xf32, #tpu.memory_space<vmem>>, %arg1: memref<16x128x32xf32, #tpu.memory_space<vmem>>, %arg2: memref<128x32xf32, #tpu.memory_space<vmem>>, %arg3: memref<256x128xbf16, #tpu.memory_space<vmem>>, %arg4: memref<128x64xbf16, #tpu.memory_space<vmem>>, %arg5: memref<64x32xbf16, #tpu.memory_space<vmem>>, %arg6: memref<4x16xbf16, #tpu.memory_space<vmem>>, %arg7: memref<337x1xf32, #tpu.memory_space<vmem>>, %arg8: memref<512x256xbf16, #tpu.memory_space<vmem>>, %arg9: memref<512x384xbf16, #tpu.memory_space<vmem>>, %arg10: memref<2x384xf32, #tpu.memory_space<vmem>>) attributes {dimension_semantics = [], scalar_prefetch = 0 : i64, scratch_operands = 0 : i64, tpu.core_type = #tpu.core_type<tc>} {
    %c0 = arith.constant 0 : index
    %c0_0 = arith.constant 0 : index
    %0 = vector.load %arg2[%c0, %c0_0] : memref<128x32xf32, #tpu.memory_space<vmem>>, vector<128x32xf32>
    %c0_1 = arith.constant 0 : index
    %c0_2 = arith.constant 0 : index
    %c0_3 = arith.constant 0 : index
    %1 = vector.load %arg1[%c0_1, %c0_2, %c0_3] : memref<16x128x32xf32, #tpu.memory_space<vmem>>, vector<1x128x32xf32>
    %2 = vector.shape_cast %1 : vector<1x128x32xf32> to vector<128x32xf32>
    %c0_4 = arith.constant 0 : index
    %c0_5 = arith.constant 0 : index
    %3 = vector.load %arg0[%c0_4, %c0_5] : memref<16x32xf32, #tpu.memory_space<vmem>>, vector<1x32xf32>
    %4 = vector.broadcast %3 : vector<1x32xf32> to vector<128x32xf32>
    %5 = arith.mulf %2, %4 : vector<128x32xf32>
    %6 = arith.addf %0, %5 : vector<128x32xf32>
    %c1 = arith.constant 1 : index
    %c0_6 = arith.constant 0 : index
    %c0_7 = arith.constant 0 : index
    %7 = vector.load %arg1[%c1, %c0_6, %c0_7] : memref<16x128x32xf32, #tpu.memory_space<vmem>>, vector<1x128x32xf32>
    %8 = vector.shape_cast %7 : vector<1x128x32xf32> to vector<128x32xf32>
    %c1_8 = arith.constant 1 : index
    %c0_9 = arith.constant 0 : index
    %9 = vector.load %arg0[%c1_8, %c0_9] : memref<16x32xf32, #tpu.memory_space<vmem>>, vector<1x32xf32>
    %10 = vector.broadcast %9 : vector<1x32xf32> to vector<128x32xf32>
    %11 = arith.mulf %8, %10 : vector<128x32xf32>
    %12 = arith.addf %6, %11 : vector<128x32xf32>
    %c2 = arith.constant 2 : index
    %c0_10 = arith.constant 0 : index
    %c0_11 = arith.constant 0 : index
    %13 = vector.load %arg1[%c2, %c0_10, %c0_11] : memref<16x128x32xf32, #tpu.memory_space<vmem>>, vector<1x128x32xf32>
    %14 = vector.shape_cast %13 : vector<1x128x32xf32> to vector<128x32xf32>
    %c2_12 = arith.constant 2 : index
    %c0_13 = arith.constant 0 : index
    %15 = vector.load %arg0[%c2_12, %c0_13] : memref<16x32xf32, #tpu.memory_space<vmem>>, vector<1x32xf32>
    %16 = vector.broadcast %15 : vector<1x32xf32> to vector<128x32xf32>
    %17 = arith.mulf %14, %16 : vector<128x32xf32>
    %18 = arith.addf %12, %17 : vector<128x32xf32>
    %c3 = arith.constant 3 : index
    %c0_14 = arith.constant 0 : index
    %c0_15 = arith.constant 0 : index
    %19 = vector.load %arg1[%c3, %c0_14, %c0_15] : memref<16x128x32xf32, #tpu.memory_space<vmem>>, vector<1x128x32xf32>
    %20 = vector.shape_cast %19 : vector<1x128x32xf32> to vector<128x32xf32>
    %c3_16 = arith.constant 3 : index
    %c0_17 = arith.constant 0 : index
    %21 = vector.load %arg0[%c3_16, %c0_17] : memref<16x32xf32, #tpu.memory_space<vmem>>, vector<1x32xf32>
    %22 = vector.broadcast %21 : vector<1x32xf32> to vector<128x32xf32>
    %23 = arith.mulf %20, %22 : vector<128x32xf32>
    %24 = arith.addf %18, %23 : vector<128x32xf32>
    %c4 = arith.constant 4 : index
    %c0_18 = arith.constant 0 : index
    %c0_19 = arith.constant 0 : index
    %25 = vector.load %arg1[%c4, %c0_18, %c0_19] : memref<16x128x32xf32, #tpu.memory_space<vmem>>, vector<1x128x32xf32>
    %26 = vector.shape_cast %25 : vector<1x128x32xf32> to vector<128x32xf32>
    %c4_20 = arith.constant 4 : index
    %c0_21 = arith.constant 0 : index
    %27 = vector.load %arg0[%c4_20, %c0_21] : memref<16x32xf32, #tpu.memory_space<vmem>>, vector<1x32xf32>
    %28 = vector.broadcast %27 : vector<1x32xf32> to vector<128x32xf32>
    %29 = arith.mulf %26, %28 : vector<128x32xf32>
    %30 = arith.addf %24, %29 : vector<128x32xf32>
    %c5 = arith.constant 5 : index
    %c0_22 = arith.constant 0 : index
    %c0_23 = arith.constant 0 : index
    %31 = vector.load %arg1[%c5, %c0_22, %c0_23] : memref<16x128x32xf32, #tpu.memory_space<vmem>>, vector<1x128x32xf32>
    %32 = vector.shape_cast %31 : vector<1x128x32xf32> to vector<128x32xf32>
    %c5_24 = arith.constant 5 : index
    %c0_25 = arith.constant 0 : index
    %33 = vector.load %arg0[%c5_24, %c0_25] : memref<16x32xf32, #tpu.memory_space<vmem>>, vector<1x32xf32>
    %34 = vector.broadcast %33 : vector<1x32xf32> to vector<128x32xf32>
    %35 = arith.mulf %32, %34 : vector<128x32xf32>
    %36 = arith.addf %30, %35 : vector<128x32xf32>
    %c6 = arith.constant 6 : index
    %c0_26 = arith.constant 0 : index
    %c0_27 = arith.constant 0 : index
    %37 = vector.load %arg1[%c6, %c0_26, %c0_27] : memref<16x128x32xf32, #tpu.memory_space<vmem>>, vector<1x128x32xf32>
    %38 = vector.shape_cast %37 : vector<1x128x32xf32> to vector<128x32xf32>
    %c6_28 = arith.constant 6 : index
    %c0_29 = arith.constant 0 : index
    %39 = vector.load %arg0[%c6_28, %c0_29] : memref<16x32xf32, #tpu.memory_space<vmem>>, vector<1x32xf32>
    %40 = vector.broadcast %39 : vector<1x32xf32> to vector<128x32xf32>
    %41 = arith.mulf %38, %40 : vector<128x32xf32>
    %42 = arith.addf %36, %41 : vector<128x32xf32>
    %c7 = arith.constant 7 : index
    %c0_30 = arith.constant 0 : index
    %c0_31 = arith.constant 0 : index
    %43 = vector.load %arg1[%c7, %c0_30, %c0_31] : memref<16x128x32xf32, #tpu.memory_space<vmem>>, vector<1x128x32xf32>
    %44 = vector.shape_cast %43 : vector<1x128x32xf32> to vector<128x32xf32>
    %c7_32 = arith.constant 7 : index
    %c0_33 = arith.constant 0 : index
    %45 = vector.load %arg0[%c7_32, %c0_33] : memref<16x32xf32, #tpu.memory_space<vmem>>, vector<1x32xf32>
    %46 = vector.broadcast %45 : vector<1x32xf32> to vector<128x32xf32>
    %47 = arith.mulf %44, %46 : vector<128x32xf32>
    %48 = arith.addf %42, %47 : vector<128x32xf32>
    %c8 = arith.constant 8 : index
    %c0_34 = arith.constant 0 : index
    %c0_35 = arith.constant 0 : index
    %49 = vector.load %arg1[%c8, %c0_34, %c0_35] : memref<16x128x32xf32, #tpu.memory_space<vmem>>, vector<1x128x32xf32>
    %50 = vector.shape_cast %49 : vector<1x128x32xf32> to vector<128x32xf32>
    %c8_36 = arith.constant 8 : index
    %c0_37 = arith.constant 0 : index
    %51 = vector.load %arg0[%c8_36, %c0_37] : memref<16x32xf32, #tpu.memory_space<vmem>>, vector<1x32xf32>
    %52 = vector.broadcast %51 : vector<1x32xf32> to vector<128x32xf32>
    %53 = arith.mulf %50, %52 : vector<128x32xf32>
    %54 = arith.addf %48, %53 : vector<128x32xf32>
    %c9 = arith.constant 9 : index
    %c0_38 = arith.constant 0 : index
    %c0_39 = arith.constant 0 : index
    %55 = vector.load %arg1[%c9, %c0_38, %c0_39] : memref<16x128x32xf32, #tpu.memory_space<vmem>>, vector<1x128x32xf32>
    %56 = vector.shape_cast %55 : vector<1x128x32xf32> to vector<128x32xf32>
    %c9_40 = arith.constant 9 : index
    %c0_41 = arith.constant 0 : index
    %57 = vector.load %arg0[%c9_40, %c0_41] : memref<16x32xf32, #tpu.memory_space<vmem>>, vector<1x32xf32>
    %58 = vector.broadcast %57 : vector<1x32xf32> to vector<128x32xf32>
    %59 = arith.mulf %56, %58 : vector<128x32xf32>
    %60 = arith.addf %54, %59 : vector<128x32xf32>
    %c10 = arith.constant 10 : index
    %c0_42 = arith.constant 0 : index
    %c0_43 = arith.constant 0 : index
    %61 = vector.load %arg1[%c10, %c0_42, %c0_43] : memref<16x128x32xf32, #tpu.memory_space<vmem>>, vector<1x128x32xf32>
    %62 = vector.shape_cast %61 : vector<1x128x32xf32> to vector<128x32xf32>
    %c10_44 = arith.constant 10 : index
    %c0_45 = arith.constant 0 : index
    %63 = vector.load %arg0[%c10_44, %c0_45] : memref<16x32xf32, #tpu.memory_space<vmem>>, vector<1x32xf32>
    %64 = vector.broadcast %63 : vector<1x32xf32> to vector<128x32xf32>
    %65 = arith.mulf %62, %64 : vector<128x32xf32>
    %66 = arith.addf %60, %65 : vector<128x32xf32>
    %c11 = arith.constant 11 : index
    %c0_46 = arith.constant 0 : index
    %c0_47 = arith.constant 0 : index
    %67 = vector.load %arg1[%c11, %c0_46, %c0_47] : memref<16x128x32xf32, #tpu.memory_space<vmem>>, vector<1x128x32xf32>
    %68 = vector.shape_cast %67 : vector<1x128x32xf32> to vector<128x32xf32>
    %c11_48 = arith.constant 11 : index
    %c0_49 = arith.constant 0 : index
    %69 = vector.load %arg0[%c11_48, %c0_49] : memref<16x32xf32, #tpu.memory_space<vmem>>, vector<1x32xf32>
    %70 = vector.broadcast %69 : vector<1x32xf32> to vector<128x32xf32>
    %71 = arith.mulf %68, %70 : vector<128x32xf32>
    %72 = arith.addf %66, %71 : vector<128x32xf32>
    %c12 = arith.constant 12 : index
    %c0_50 = arith.constant 0 : index
    %c0_51 = arith.constant 0 : index
    %73 = vector.load %arg1[%c12, %c0_50, %c0_51] : memref<16x128x32xf32, #tpu.memory_space<vmem>>, vector<1x128x32xf32>
    %74 = vector.shape_cast %73 : vector<1x128x32xf32> to vector<128x32xf32>
    %c12_52 = arith.constant 12 : index
    %c0_53 = arith.constant 0 : index
    %75 = vector.load %arg0[%c12_52, %c0_53] : memref<16x32xf32, #tpu.memory_space<vmem>>, vector<1x32xf32>
    %76 = vector.broadcast %75 : vector<1x32xf32> to vector<128x32xf32>
    %77 = arith.mulf %74, %76 : vector<128x32xf32>
    %78 = arith.addf %72, %77 : vector<128x32xf32>
    %c13 = arith.constant 13 : index
    %c0_54 = arith.constant 0 : index
    %c0_55 = arith.constant 0 : index
    %79 = vector.load %arg1[%c13, %c0_54, %c0_55] : memref<16x128x32xf32, #tpu.memory_space<vmem>>, vector<1x128x32xf32>
    %80 = vector.shape_cast %79 : vector<1x128x32xf32> to vector<128x32xf32>
    %c13_56 = arith.constant 13 : index
    %c0_57 = arith.constant 0 : index
    %81 = vector.load %arg0[%c13_56, %c0_57] : memref<16x32xf32, #tpu.memory_space<vmem>>, vector<1x32xf32>
    %82 = vector.broadcast %81 : vector<1x32xf32> to vector<128x32xf32>
    %83 = arith.mulf %80, %82 : vector<128x32xf32>
    %84 = arith.addf %78, %83 : vector<128x32xf32>
    %c14 = arith.constant 14 : index
    %c0_58 = arith.constant 0 : index
    %c0_59 = arith.constant 0 : index
    %85 = vector.load %arg1[%c14, %c0_58, %c0_59] : memref<16x128x32xf32, #tpu.memory_space<vmem>>, vector<1x128x32xf32>
    %86 = vector.shape_cast %85 : vector<1x128x32xf32> to vector<128x32xf32>
    %c14_60 = arith.constant 14 : index
    %c0_61 = arith.constant 0 : index
    %87 = vector.load %arg0[%c14_60, %c0_61] : memref<16x32xf32, #tpu.memory_space<vmem>>, vector<1x32xf32>
    %88 = vector.broadcast %87 : vector<1x32xf32> to vector<128x32xf32>
    %89 = arith.mulf %86, %88 : vector<128x32xf32>
    %90 = arith.addf %84, %89 : vector<128x32xf32>
    %c15 = arith.constant 15 : index
    %c0_62 = arith.constant 0 : index
    %c0_63 = arith.constant 0 : index
    %91 = vector.load %arg1[%c15, %c0_62, %c0_63] : memref<16x128x32xf32, #tpu.memory_space<vmem>>, vector<1x128x32xf32>
    %92 = vector.shape_cast %91 : vector<1x128x32xf32> to vector<128x32xf32>
    %c15_64 = arith.constant 15 : index
    %c0_65 = arith.constant 0 : index
    %93 = vector.load %arg0[%c15_64, %c0_65] : memref<16x32xf32, #tpu.memory_space<vmem>>, vector<1x32xf32>
    %94 = vector.broadcast %93 : vector<1x32xf32> to vector<128x32xf32>
    %95 = arith.mulf %92, %94 : vector<128x32xf32>
    %96 = arith.addf %90, %95 : vector<128x32xf32>
    %cst = arith.constant 0.000000e+00 : f32
    %97 = vector.broadcast %cst : f32 to vector<128x32xf32>
    %98 = arith.cmpf ogt, %96, %97 : vector<128x32xf32>
    %cst_66 = arith.constant 2.000000e-01 : f32
    %99 = vector.broadcast %cst_66 : f32 to vector<128x32xf32>
    %100 = arith.mulf %99, %96 : vector<128x32xf32>
    %101 = arith.select %98, %96, %100 : vector<128x32xi1>, vector<128x32xf32>
    %c0_67 = arith.constant 0 : index
    %c0_68 = arith.constant 0 : index
    %102 = vector.load %arg7[%c0_67, %c0_68] : memref<337x1xf32, #tpu.memory_space<vmem>>, vector<64x1xf32>
    %c64 = arith.constant 64 : index
    %c0_69 = arith.constant 0 : index
    %103 = vector.load %arg7[%c64, %c0_69] : memref<337x1xf32, #tpu.memory_space<vmem>>, vector<64x1xf32>
    %c128 = arith.constant 128 : index
    %c0_70 = arith.constant 0 : index
    %104 = vector.load %arg7[%c128, %c0_70] : memref<337x1xf32, #tpu.memory_space<vmem>>, vector<64x1xf32>
    %c0_71 = arith.constant 0 : index
    %c0_72 = arith.constant 0 : index
    %105 = vector.load %arg3[%c0_71, %c0_72] : memref<256x128xbf16, #tpu.memory_space<vmem>>, vector<256x128xbf16>
    %106 = arith.truncf %101 : vector<128x32xf32> to vector<128x32xbf16>
    %cst_73 = arith.constant dense<0.000000e+00> : vector<256x32xf32>
    %107 = tpu.matmul %105, %106, %cst_73 {dimension_numbers = #tpu.dot_dimension_numbers<[1], [0], [0], [1], [0, 0, 1, 1], [], []>} : vector<256x128xbf16>, vector<128x32xbf16>, vector<256x32xf32> -> vector<256x32xf32>
    %108 = vector.extract_strided_slice %107 {offsets = [0, 0], sizes = [64, 32], strides = [1, 1]} : vector<256x32xf32> to vector<64x32xf32>
    %109 = vector.extract_strided_slice %107 {offsets = [64, 0], sizes = [64, 32], strides = [1, 1]} : vector<256x32xf32> to vector<64x32xf32>
    %110 = vector.extract_strided_slice %107 {offsets = [128, 0], sizes = [64, 32], strides = [1, 1]} : vector<256x32xf32> to vector<64x32xf32>
    %111 = vector.extract_strided_slice %107 {offsets = [192, 0], sizes = [64, 32], strides = [1, 1]} : vector<256x32xf32> to vector<64x32xf32>
    %112 = tpu.iota {dimensions = array<i32: 1>} : vector<1x32xi32>
    %c15_i32 = arith.constant 15 : i32
    %113 = vector.broadcast %c15_i32 : i32 to vector<1x32xi32>
    %114 = arith.andi %112, %113 : vector<1x32xi32>
    %c15_i32_74 = arith.constant 15 : i32
    %115 = vector.broadcast %c15_i32_74 : i32 to vector<1x32xi32>
    %116 = arith.cmpi eq, %114, %115 : vector<1x32xi32>
    %cst_75 = arith.constant 0.000000e+00 : f32
    %117 = vector.shape_cast %116 : vector<1x32xi1> to vector<1x32xi1>
    %118 = vector.broadcast %117 : vector<1x32xi1> to vector<64x32xi1>
    %119 = vector.broadcast %cst_75 : f32 to vector<64x32xf32>
    %120 = arith.select %118, %119, %111 : vector<64x32xi1>, vector<64x32xf32>
    %c0_i32 = arith.constant 0 : i32
    %121 = vector.broadcast %c0_i32 : i32 to vector<1x32xi32>
    %122 = arith.cmpi eq, %114, %121 : vector<1x32xi32>
    %cst_76 = arith.constant 0.000000e+00 : f32
    %123 = vector.shape_cast %122 : vector<1x32xi1> to vector<1x32xi1>
    %124 = vector.broadcast %123 : vector<1x32xi1> to vector<64x32xi1>
    %125 = vector.broadcast %cst_76 : f32 to vector<64x32xf32>
    %126 = arith.select %124, %125, %108 : vector<64x32xi1>, vector<64x32xf32>
    %cst_77 = arith.constant 0.000000e+00 : f32
    %127 = vector.broadcast %cst_77 : f32 to vector<64x96xf32>
    %128 = tpu.concatenate %109, %127 in 1 : vector<64x32xf32>, vector<64x96xf32> -> vector<64x128xf32>
    %cst_78 = arith.constant 0.000000e+00 : f32
    %129 = vector.broadcast %cst_78 : f32 to vector<64x96xf32>
    %130 = tpu.concatenate %110, %129 in 1 : vector<64x32xf32>, vector<64x96xf32> -> vector<64x128xf32>
    %cst_79 = arith.constant 0.000000e+00 : f32
    %131 = vector.broadcast %cst_79 : f32 to vector<64x96xf32>
    %132 = tpu.concatenate %120, %131 in 1 : vector<64x32xf32>, vector<64x96xf32> -> vector<64x128xf32>
    %cst_80 = arith.constant 0.000000e+00 : f32
    %133 = vector.broadcast %cst_80 : f32 to vector<64x96xf32>
    %134 = tpu.concatenate %126, %133 in 1 : vector<64x32xf32>, vector<64x96xf32> -> vector<64x128xf32>
    %135 = tpu.concatenate %128, %130, %132, %134 in 1 : vector<64x128xf32>, vector<64x128xf32>, vector<64x128xf32>, vector<64x128xf32> -> vector<64x512xf32>
    %136 = arith.truncf %135 : vector<64x512xf32> to vector<64x512xbf16>
    %c0_81 = arith.constant 0 : index
    %c0_82 = arith.constant 0 : index
    %137 = vector.load %arg8[%c0_81, %c0_82] : memref<512x256xbf16, #tpu.memory_space<vmem>>, vector<512x256xbf16>
    %cst_83 = arith.constant dense<0.000000e+00> : vector<64x256xf32>
    %138 = tpu.matmul %136, %137, %cst_83 {dimension_numbers = #tpu.dot_dimension_numbers<[1], [0], [0], [1], [0, 0, 1, 1], [], []>} : vector<64x512xbf16>, vector<512x256xbf16>, vector<64x256xf32> -> vector<64x256xf32>
    %139 = vector.extract_strided_slice %138 {offsets = [0, 0], sizes = [64, 64], strides = [1, 1]} : vector<64x256xf32> to vector<64x64xf32>
    %140 = vector.broadcast %102 : vector<64x1xf32> to vector<64x64xf32>
    %141 = arith.addf %139, %140 : vector<64x64xf32>
    %cst_84 = arith.constant dense<0.000000e+00> : vector<64xf32>
    %142 = vector.multi_reduction <add>, %141, %cst_84 [1] : vector<64x64xf32> to vector<64xf32>
    %143 = vector.shape_cast %142 : vector<64xf32> to vector<64x1xf32>
    %cst_85 = arith.constant 1.562500e-02 : f32
    %144 = vector.broadcast %cst_85 : f32 to vector<64x1xf32>
    %145 = arith.mulf %143, %144 : vector<64x1xf32>
    %146 = vector.broadcast %145 : vector<64x1xf32> to vector<64x64xf32>
    %147 = arith.subf %141, %146 : vector<64x64xf32>
    %148 = arith.mulf %147, %147 : vector<64x64xf32>
    %cst_86 = arith.constant dense<0.000000e+00> : vector<64xf32>
    %149 = vector.multi_reduction <add>, %148, %cst_86 [1] : vector<64x64xf32> to vector<64xf32>
    %150 = vector.shape_cast %149 : vector<64xf32> to vector<64x1xf32>
    %cst_87 = arith.constant 1.562500e-02 : f32
    %151 = vector.broadcast %cst_87 : f32 to vector<64x1xf32>
    %152 = arith.mulf %150, %151 : vector<64x1xf32>
    %cst_88 = arith.constant 9.99999974E-6 : f32
    %153 = vector.broadcast %cst_88 : f32 to vector<64x1xf32>
    %154 = arith.addf %152, %153 : vector<64x1xf32>
    %155 = math.rsqrt %154 : vector<64x1xf32>
    %156 = arith.mulf %155, %103 : vector<64x1xf32>
    %157 = vector.broadcast %156 : vector<64x1xf32> to vector<64x64xf32>
    %158 = arith.mulf %147, %157 : vector<64x64xf32>
    %159 = vector.broadcast %104 : vector<64x1xf32> to vector<64x64xf32>
    %160 = arith.addf %158, %159 : vector<64x64xf32>
    %cst_89 = arith.constant 0.000000e+00 : f32
    %161 = vector.broadcast %cst_89 : f32 to vector<64x64xf32>
    %162 = arith.cmpf ogt, %160, %161 : vector<64x64xf32>
    %cst_90 = arith.constant 2.000000e-01 : f32
    %163 = vector.broadcast %cst_90 : f32 to vector<64x64xf32>
    %164 = arith.mulf %163, %160 : vector<64x64xf32>
    %165 = arith.select %162, %160, %164 : vector<64x64xi1>, vector<64x64xf32>
    %c192 = arith.constant 192 : index
    %c0_91 = arith.constant 0 : index
    %166 = vector.load %arg7[%c192, %c0_91] : memref<337x1xf32, #tpu.memory_space<vmem>>, vector<32x1xf32>
    %c224 = arith.constant 224 : index
    %c0_92 = arith.constant 0 : index
    %167 = vector.load %arg7[%c224, %c0_92] : memref<337x1xf32, #tpu.memory_space<vmem>>, vector<32x1xf32>
    %c256 = arith.constant 256 : index
    %c0_93 = arith.constant 0 : index
    %168 = vector.load %arg7[%c256, %c0_93] : memref<337x1xf32, #tpu.memory_space<vmem>>, vector<32x1xf32>
    %c0_94 = arith.constant 0 : index
    %c0_95 = arith.constant 0 : index
    %169 = vector.load %arg4[%c0_94, %c0_95] : memref<128x64xbf16, #tpu.memory_space<vmem>>, vector<128x64xbf16>
    %170 = arith.truncf %165 : vector<64x64xf32> to vector<64x64xbf16>
    %cst_96 = arith.constant dense<0.000000e+00> : vector<128x64xf32>
    %171 = tpu.matmul %169, %170, %cst_96 {dimension_numbers = #tpu.dot_dimension_numbers<[1], [0], [0], [1], [0, 0, 1, 1], [], []>} : vector<128x64xbf16>, vector<64x64xbf16>, vector<128x64xf32> -> vector<128x64xf32>
    %172 = vector.extract_strided_slice %171 {offsets = [0, 0], sizes = [32, 64], strides = [1, 1]} : vector<128x64xf32> to vector<32x64xf32>
    %173 = vector.extract_strided_slice %171 {offsets = [32, 0], sizes = [32, 64], strides = [1, 1]} : vector<128x64xf32> to vector<32x64xf32>
    %174 = vector.extract_strided_slice %171 {offsets = [64, 0], sizes = [32, 64], strides = [1, 1]} : vector<128x64xf32> to vector<32x64xf32>
    %175 = vector.extract_strided_slice %171 {offsets = [96, 0], sizes = [32, 64], strides = [1, 1]} : vector<128x64xf32> to vector<32x64xf32>
    %176 = tpu.iota {dimensions = array<i32: 1>} : vector<1x64xi32>
    %c31_i32 = arith.constant 31 : i32
    %177 = vector.broadcast %c31_i32 : i32 to vector<1x64xi32>
    %178 = arith.andi %176, %177 : vector<1x64xi32>
    %c31_i32_97 = arith.constant 31 : i32
    %179 = vector.broadcast %c31_i32_97 : i32 to vector<1x64xi32>
    %180 = arith.cmpi eq, %178, %179 : vector<1x64xi32>
    %cst_98 = arith.constant 0.000000e+00 : f32
    %181 = vector.shape_cast %180 : vector<1x64xi1> to vector<1x64xi1>
    %182 = vector.broadcast %181 : vector<1x64xi1> to vector<32x64xi1>
    %183 = vector.broadcast %cst_98 : f32 to vector<32x64xf32>
    %184 = arith.select %182, %183, %175 : vector<32x64xi1>, vector<32x64xf32>
    %c0_i32_99 = arith.constant 0 : i32
    %185 = vector.broadcast %c0_i32_99 : i32 to vector<1x64xi32>
    %186 = arith.cmpi eq, %178, %185 : vector<1x64xi32>
    %cst_100 = arith.constant 0.000000e+00 : f32
    %187 = vector.shape_cast %186 : vector<1x64xi1> to vector<1x64xi1>
    %188 = vector.broadcast %187 : vector<1x64xi1> to vector<32x64xi1>
    %189 = vector.broadcast %cst_100 : f32 to vector<32x64xf32>
    %190 = arith.select %188, %189, %172 : vector<32x64xi1>, vector<32x64xf32>
    %cst_101 = arith.constant 0.000000e+00 : f32
    %191 = vector.broadcast %cst_101 : f32 to vector<32x64xf32>
    %192 = tpu.concatenate %173, %191 in 1 : vector<32x64xf32>, vector<32x64xf32> -> vector<32x128xf32>
    %cst_102 = arith.constant 0.000000e+00 : f32
    %193 = vector.broadcast %cst_102 : f32 to vector<32x64xf32>
    %194 = tpu.concatenate %174, %193 in 1 : vector<32x64xf32>, vector<32x64xf32> -> vector<32x128xf32>
    %cst_103 = arith.constant 0.000000e+00 : f32
    %195 = vector.broadcast %cst_103 : f32 to vector<32x64xf32>
    %196 = tpu.concatenate %184, %195 in 1 : vector<32x64xf32>, vector<32x64xf32> -> vector<32x128xf32>
    %cst_104 = arith.constant 0.000000e+00 : f32
    %197 = vector.broadcast %cst_104 : f32 to vector<32x64xf32>
    %198 = tpu.concatenate %190, %197 in 1 : vector<32x64xf32>, vector<32x64xf32> -> vector<32x128xf32>
    %199 = tpu.concatenate %192, %194, %196, %198 in 1 : vector<32x128xf32>, vector<32x128xf32>, vector<32x128xf32>, vector<32x128xf32> -> vector<32x512xf32>
    %200 = arith.truncf %199 : vector<32x512xf32> to vector<32x512xbf16>
    %c0_105 = arith.constant 0 : index
    %c0_106 = arith.constant 0 : index
    %201 = vector.load %arg8[%c0_105, %c0_106] : memref<512x256xbf16, #tpu.memory_space<vmem>>, vector<512x256xbf16>
    %cst_107 = arith.constant dense<0.000000e+00> : vector<32x256xf32>
    %202 = tpu.matmul %200, %201, %cst_107 {dimension_numbers = #tpu.dot_dimension_numbers<[1], [0], [0], [1], [0, 0, 1, 1], [], []>} : vector<32x512xbf16>, vector<512x256xbf16>, vector<32x256xf32> -> vector<32x256xf32>
    %203 = vector.extract_strided_slice %202 {offsets = [0, 0], sizes = [32, 128], strides = [1, 1]} : vector<32x256xf32> to vector<32x128xf32>
    %204 = vector.broadcast %166 : vector<32x1xf32> to vector<32x128xf32>
    %205 = arith.addf %203, %204 : vector<32x128xf32>
    %cst_108 = arith.constant dense<0.000000e+00> : vector<32xf32>
    %206 = vector.multi_reduction <add>, %205, %cst_108 [1] : vector<32x128xf32> to vector<32xf32>
    %207 = vector.shape_cast %206 : vector<32xf32> to vector<32x1xf32>
    %cst_109 = arith.constant 7.812500e-03 : f32
    %208 = vector.broadcast %cst_109 : f32 to vector<32x1xf32>
    %209 = arith.mulf %207, %208 : vector<32x1xf32>
    %210 = vector.broadcast %209 : vector<32x1xf32> to vector<32x128xf32>
    %211 = arith.subf %205, %210 : vector<32x128xf32>
    %212 = arith.mulf %211, %211 : vector<32x128xf32>
    %cst_110 = arith.constant dense<0.000000e+00> : vector<32xf32>
    %213 = vector.multi_reduction <add>, %212, %cst_110 [1] : vector<32x128xf32> to vector<32xf32>
    %214 = vector.shape_cast %213 : vector<32xf32> to vector<32x1xf32>
    %cst_111 = arith.constant 7.812500e-03 : f32
    %215 = vector.broadcast %cst_111 : f32 to vector<32x1xf32>
    %216 = arith.mulf %214, %215 : vector<32x1xf32>
    %cst_112 = arith.constant 9.99999974E-6 : f32
    %217 = vector.broadcast %cst_112 : f32 to vector<32x1xf32>
    %218 = arith.addf %216, %217 : vector<32x1xf32>
    %219 = math.rsqrt %218 : vector<32x1xf32>
    %220 = arith.mulf %219, %167 : vector<32x1xf32>
    %221 = vector.broadcast %220 : vector<32x1xf32> to vector<32x128xf32>
    %222 = arith.mulf %211, %221 : vector<32x128xf32>
    %223 = vector.broadcast %168 : vector<32x1xf32> to vector<32x128xf32>
    %224 = arith.addf %222, %223 : vector<32x128xf32>
    %cst_113 = arith.constant 0.000000e+00 : f32
    %225 = vector.broadcast %cst_113 : f32 to vector<32x128xf32>
    %226 = arith.cmpf ogt, %224, %225 : vector<32x128xf32>
    %cst_114 = arith.constant 2.000000e-01 : f32
    %227 = vector.broadcast %cst_114 : f32 to vector<32x128xf32>
    %228 = arith.mulf %227, %224 : vector<32x128xf32>
    %229 = arith.select %226, %224, %228 : vector<32x128xi1>, vector<32x128xf32>
    %c288 = arith.constant 288 : index
    %c0_115 = arith.constant 0 : index
    %230 = vector.load %arg7[%c288, %c0_115] : memref<337x1xf32, #tpu.memory_space<vmem>>, vector<16x1xf32>
    %c304 = arith.constant 304 : index
    %c0_116 = arith.constant 0 : index
    %231 = vector.load %arg7[%c304, %c0_116] : memref<337x1xf32, #tpu.memory_space<vmem>>, vector<16x1xf32>
    %c320 = arith.constant 320 : index
    %c0_117 = arith.constant 0 : index
    %232 = vector.load %arg7[%c320, %c0_117] : memref<337x1xf32, #tpu.memory_space<vmem>>, vector<16x1xf32>
    %c0_118 = arith.constant 0 : index
    %c0_119 = arith.constant 0 : index
    %233 = vector.load %arg5[%c0_118, %c0_119] : memref<64x32xbf16, #tpu.memory_space<vmem>>, vector<64x32xbf16>
    %234 = arith.truncf %229 : vector<32x128xf32> to vector<32x128xbf16>
    %cst_120 = arith.constant dense<0.000000e+00> : vector<64x128xf32>
    %235 = tpu.matmul %233, %234, %cst_120 {dimension_numbers = #tpu.dot_dimension_numbers<[1], [0], [0], [1], [0, 0, 1, 1], [], []>} : vector<64x32xbf16>, vector<32x128xbf16>, vector<64x128xf32> -> vector<64x128xf32>
    %236 = vector.extract_strided_slice %235 {offsets = [0, 0], sizes = [16, 128], strides = [1, 1]} : vector<64x128xf32> to vector<16x128xf32>
    %237 = vector.extract_strided_slice %235 {offsets = [16, 0], sizes = [16, 128], strides = [1, 1]} : vector<64x128xf32> to vector<16x128xf32>
    %238 = vector.extract_strided_slice %235 {offsets = [32, 0], sizes = [16, 128], strides = [1, 1]} : vector<64x128xf32> to vector<16x128xf32>
    %239 = vector.extract_strided_slice %235 {offsets = [48, 0], sizes = [16, 128], strides = [1, 1]} : vector<64x128xf32> to vector<16x128xf32>
    %240 = tpu.iota {dimensions = array<i32: 1>} : vector<1x128xi32>
    %c63_i32 = arith.constant 63 : i32
    %241 = vector.broadcast %c63_i32 : i32 to vector<1x128xi32>
    %242 = arith.andi %240, %241 : vector<1x128xi32>
    %c63_i32_121 = arith.constant 63 : i32
    %243 = vector.broadcast %c63_i32_121 : i32 to vector<1x128xi32>
    %244 = arith.cmpi eq, %242, %243 : vector<1x128xi32>
    %cst_122 = arith.constant 0.000000e+00 : f32
    %245 = vector.shape_cast %244 : vector<1x128xi1> to vector<1x128xi1>
    %246 = vector.broadcast %245 : vector<1x128xi1> to vector<16x128xi1>
    %247 = vector.broadcast %cst_122 : f32 to vector<16x128xf32>
    %248 = arith.select %246, %247, %239 : vector<16x128xi1>, vector<16x128xf32>
    %c0_i32_123 = arith.constant 0 : i32
    %249 = vector.broadcast %c0_i32_123 : i32 to vector<1x128xi32>
    %250 = arith.cmpi eq, %242, %249 : vector<1x128xi32>
    %cst_124 = arith.constant 0.000000e+00 : f32
    %251 = vector.shape_cast %250 : vector<1x128xi1> to vector<1x128xi1>
    %252 = vector.broadcast %251 : vector<1x128xi1> to vector<16x128xi1>
    %253 = vector.broadcast %cst_124 : f32 to vector<16x128xf32>
    %254 = arith.select %252, %253, %236 : vector<16x128xi1>, vector<16x128xf32>
    %255 = tpu.concatenate %237, %238, %248, %254 in 1 : vector<16x128xf32>, vector<16x128xf32>, vector<16x128xf32>, vector<16x128xf32> -> vector<16x512xf32>
    %256 = arith.truncf %255 : vector<16x512xf32> to vector<16x512xbf16>
    %c0_125 = arith.constant 0 : index
    %c0_126 = arith.constant 0 : index
    %257 = vector.load %arg8[%c0_125, %c0_126] : memref<512x256xbf16, #tpu.memory_space<vmem>>, vector<512x256xbf16>
    %cst_127 = arith.constant dense<0.000000e+00> : vector<16x256xf32>
    %258 = tpu.matmul %256, %257, %cst_127 {dimension_numbers = #tpu.dot_dimension_numbers<[1], [0], [0], [1], [0, 0, 1, 1], [], []>} : vector<16x512xbf16>, vector<512x256xbf16>, vector<16x256xf32> -> vector<16x256xf32>
    %259 = vector.broadcast %230 : vector<16x1xf32> to vector<16x256xf32>
    %260 = arith.addf %258, %259 : vector<16x256xf32>
    %cst_128 = arith.constant dense<0.000000e+00> : vector<16xf32>
    %261 = vector.multi_reduction <add>, %260, %cst_128 [1] : vector<16x256xf32> to vector<16xf32>
    %262 = vector.shape_cast %261 : vector<16xf32> to vector<16x1xf32>
    %cst_129 = arith.constant 3.906250e-03 : f32
    %263 = vector.broadcast %cst_129 : f32 to vector<16x1xf32>
    %264 = arith.mulf %262, %263 : vector<16x1xf32>
    %265 = vector.broadcast %264 : vector<16x1xf32> to vector<16x256xf32>
    %266 = arith.subf %260, %265 : vector<16x256xf32>
    %267 = arith.mulf %266, %266 : vector<16x256xf32>
    %cst_130 = arith.constant dense<0.000000e+00> : vector<16xf32>
    %268 = vector.multi_reduction <add>, %267, %cst_130 [1] : vector<16x256xf32> to vector<16xf32>
    %269 = vector.shape_cast %268 : vector<16xf32> to vector<16x1xf32>
    %cst_131 = arith.constant 3.906250e-03 : f32
    %270 = vector.broadcast %cst_131 : f32 to vector<16x1xf32>
    %271 = arith.mulf %269, %270 : vector<16x1xf32>
    %cst_132 = arith.constant 9.99999974E-6 : f32
    %272 = vector.broadcast %cst_132 : f32 to vector<16x1xf32>
    %273 = arith.addf %271, %272 : vector<16x1xf32>
    %274 = math.rsqrt %273 : vector<16x1xf32>
    %275 = arith.mulf %274, %231 : vector<16x1xf32>
    %276 = vector.broadcast %275 : vector<16x1xf32> to vector<16x256xf32>
    %277 = arith.mulf %266, %276 : vector<16x256xf32>
    %278 = vector.broadcast %232 : vector<16x1xf32> to vector<16x256xf32>
    %279 = arith.addf %277, %278 : vector<16x256xf32>
    %cst_133 = arith.constant 0.000000e+00 : f32
    %280 = vector.broadcast %cst_133 : f32 to vector<16x256xf32>
    %281 = arith.cmpf ogt, %279, %280 : vector<16x256xf32>
    %cst_134 = arith.constant 2.000000e-01 : f32
    %282 = vector.broadcast %cst_134 : f32 to vector<16x256xf32>
    %283 = arith.mulf %282, %279 : vector<16x256xf32>
    %284 = arith.select %281, %279, %283 : vector<16x256xi1>, vector<16x256xf32>
    %c0_135 = arith.constant 0 : index
    %c0_136 = arith.constant 0 : index
    %285 = vector.load %arg6[%c0_135, %c0_136] : memref<4x16xbf16, #tpu.memory_space<vmem>>, vector<4x16xbf16>
    %286 = arith.truncf %284 : vector<16x256xf32> to vector<16x256xbf16>
    %cst_137 = arith.constant dense<0.000000e+00> : vector<4x256xf32>
    %287 = tpu.matmul %285, %286, %cst_137 {dimension_numbers = #tpu.dot_dimension_numbers<[1], [0], [0], [1], [0, 0, 1, 1], [], []>} : vector<4x16xbf16>, vector<16x256xbf16>, vector<4x256xf32> -> vector<4x256xf32>
    %288 = vector.extract_strided_slice %287 {offsets = [0, 0], sizes = [1, 128], strides = [1, 1]} : vector<4x256xf32> to vector<1x128xf32>
    %289 = vector.extract_strided_slice %287 {offsets = [1, 0], sizes = [1, 128], strides = [1, 1]} : vector<4x256xf32> to vector<1x128xf32>
    %290 = vector.extract_strided_slice %287 {offsets = [2, 0], sizes = [1, 128], strides = [1, 1]} : vector<4x256xf32> to vector<1x128xf32>
    %291 = vector.extract_strided_slice %287 {offsets = [3, 0], sizes = [1, 128], strides = [1, 1]} : vector<4x256xf32> to vector<1x128xf32>
    %292 = tpu.concatenate %288, %289, %290, %291 in 1 : vector<1x128xf32>, vector<1x128xf32>, vector<1x128xf32>, vector<1x128xf32> -> vector<1x512xf32>
    %293 = vector.extract_strided_slice %287 {offsets = [0, 128], sizes = [1, 128], strides = [1, 1]} : vector<4x256xf32> to vector<1x128xf32>
    %294 = vector.extract_strided_slice %287 {offsets = [1, 128], sizes = [1, 128], strides = [1, 1]} : vector<4x256xf32> to vector<1x128xf32>
    %295 = vector.extract_strided_slice %287 {offsets = [2, 128], sizes = [1, 128], strides = [1, 1]} : vector<4x256xf32> to vector<1x128xf32>
    %296 = vector.extract_strided_slice %287 {offsets = [3, 128], sizes = [1, 128], strides = [1, 1]} : vector<4x256xf32> to vector<1x128xf32>
    %297 = tpu.concatenate %293, %294, %295, %296 in 1 : vector<1x128xf32>, vector<1x128xf32>, vector<1x128xf32>, vector<1x128xf32> -> vector<1x512xf32>
    %298 = tpu.concatenate %292, %297 in 0 : vector<1x512xf32>, vector<1x512xf32> -> vector<2x512xf32>
    %299 = arith.truncf %298 : vector<2x512xf32> to vector<2x512xbf16>
    %c0_138 = arith.constant 0 : index
    %c0_139 = arith.constant 0 : index
    %300 = vector.load %arg9[%c0_138, %c0_139] : memref<512x384xbf16, #tpu.memory_space<vmem>>, vector<512x384xbf16>
    %cst_140 = arith.constant dense<0.000000e+00> : vector<2x384xf32>
    %301 = tpu.matmul %299, %300, %cst_140 {dimension_numbers = #tpu.dot_dimension_numbers<[1], [0], [0], [1], [0, 0, 1, 1], [], []>} : vector<2x512xbf16>, vector<512x384xbf16>, vector<2x384xf32> -> vector<2x384xf32>
    %c336 = arith.constant 336 : index
    %c0_141 = arith.constant 0 : index
    %302 = vector.load %arg7[%c336, %c0_141] : memref<337x1xf32, #tpu.memory_space<vmem>>, vector<1x1xf32>
    %303 = vector.broadcast %302 : vector<1x1xf32> to vector<2x384xf32>
    %304 = arith.addf %301, %303 : vector<2x384xf32>
    %c0_142 = arith.constant 0 : index
    %c0_143 = arith.constant 0 : index
    %305 = vector.load %arg10[%c0_142, %c0_143] : memref<2x384xf32, #tpu.memory_space<vmem>>, vector<2x384xf32>
    tpu.vector_store %arg10[%c0_142, %c0_143], %304 {strides = array<i32>} : memref<2x384xf32, #tpu.memory_space<vmem>>, vector<2x384xf32>,
    return
  }
}

</mosaic_0001>

<bundles_post_ra>
// kernel: generator_forward.1
= control target key start
LH: loop header
LB: loop body
LE: loop exit
PB: predicated region body
PF: predicated region fallthrough
CT: control target
= control target key end

     0   :  { %s8130_s0 = inlined_call_operand.vmem [shape: f32[16,32], index: 0, kind: input, shape index: {}]   ;;  %s8131_s1 = inlined_call_operand.vmem [shape: f32[16,128,32], index: 1, kind: input, shape index: {}]   ;;  %s8132_s2 = inlined_call_operand.vmem [shape: f32[128,32], index: 2, kind: input, shape index: {}]   ;;  %s8133_s3 = inlined_call_operand.vmem [shape: bf16[256,128], index: 3, kind: input, shape index: {}]   ;;  %s8134_s4 = inlined_call_operand.vmem [shape: bf16[128,64], index: 4, kind: input, shape index: {}]   ;;  %s8135_s5 = inlined_call_operand.vmem [shape: bf16[64,32], index: 5, kind: input, shape index: {}]   ;;  %s8136_s6 = inlined_call_operand.vmem [shape: bf16[4,16], index: 6, kind: input, shape index: {}]   ;;  %s8137_s7 = inlined_call_operand.vmem [shape: f32[337,1], index: 7, kind: input, shape index: {}]   ;;  %s8138_s8 = inlined_call_operand.vmem [shape: bf16[512,256], index: 8, kind: input, shape index: {}]   ;;  %s8139_s9 = inlined_call_operand.vmem [shape: bf16[512,384], index: 9, kind: input, shape index: {}]   ;;  %s8140_s10 = inlined_call_operand.hbm [shape: f32[2,384], index: 10, kind: output, shape index: {}]  }
   0x1   :  { %v51_v0 = vld [vmem:[%s8132_s2 + $0x70] sm:$0xff]  ;;  %v52_v1 = vld [vmem:[%s8132_s2 + $0x78] sm:$0xff]  ;;  %v5155_v4 = vld [vmem:[%s8130_s0] ss:$0 sm:$0xff] }
   0x2   :  { %v67_v2 = vld [vmem:[%s8131_s1 + $0x70] sm:$0xff]  ;;  %v68_v3 = vld [vmem:[%s8131_s1 + $0x78] sm:$0xff]  ;;  %v5168_v9 = vld [vmem:[%s8130_s0 + $0x1] ss:$0 sm:$0xff] }
   0x3   :  { %v3713_v5 = vld [vmem:[%s8131_s1 + $0xf0] sm:$0xff]  ;;  %v3714_v6 = vld [vmem:[%s8131_s1 + $0xf8] sm:$0xff]  ;;  %v85_v7 = vmul.f32 %v5155_v4, %v67_v2  ;;  %v86_v8 = vmul.f32 %v5155_v4, %v68_v3  ;;  %v5179_v12 = vld [vmem:[%s8130_s0 + $0x2] ss:$0 sm:$0xff] }
   0x4   :  { %v3729_v10 = vld [vmem:[%s8131_s1 + $0x170] sm:$0xff]  ;;  %v3730_v11 = vld [vmem:[%s8131_s1 + $0x178] sm:$0xff]  ;;  %v136_v16 = vmul.f32 %v5168_v9, %v3713_v5  ;;  %v137_v17 = vmul.f32 %v5168_v9, %v3714_v6  ;;  %v5192_v19 = vld [vmem:[%s8130_s0 + $0x3] ss:$0 sm:$0xff] }
   0x5   :  { %v3745_v13 = vld [vmem:[%s8131_s1 + $0x1f0] sm:$0xff]  ;;  %v101_v14 = vadd.f32 %v85_v7, %v51_v0  ;;  %v102_v15 = vadd.f32 %v86_v8, %v52_v1  ;;  %v3746_v18 = vld [vmem:[%s8131_s1 + $0x1f8] sm:$0xff]  ;;  %v187_v20 = vmul.f32 %v5179_v12, %v3729_v10  ;;  %v188_v21 = vmul.f32 %v5179_v12, %v3730_v11  ;;  %v5207_v28 = vld [vmem:[%s8130_s0 + $0x4] ss:$0 sm:$0xff] }
   0x6   :  { %v3761_v22 = vld [vmem:[%s8131_s1 + $0x270] sm:$0xff]  ;;  %v3762_v23 = vld [vmem:[%s8131_s1 + $0x278] sm:$0xff]  ;;  %v238_v26 = vmul.f32 %v5192_v19, %v3745_v13  ;;  %v239_v27 = vmul.f32 %v5192_v19, %v3746_v18  ;;  %v5218_v31 = vld [vmem:[%s8130_s0 + $0x5] ss:$0 sm:$0xff] }
   0x7   :  { %v152_v24 = vadd.f32 %v136_v16, %v101_v14  ;;  %v153_v25 = vadd.f32 %v137_v17, %v102_v15  ;;  %v3777_v29 = vld [vmem:[%s8131_s1 + $0x2f0] sm:$0xff]  ;;  %v3778_v30 = vld [vmem:[%s8131_s1 + $0x2f8] sm:$0xff]  ;;  %v289_v34 = vmul.f32 %v5207_v28, %v3761_v22  ;;  %v290_v35 = vmul.f32 %v5207_v28, %v3762_v23  ;;  %v5225_v36 = vld [vmem:[%s8130_s0 + $0x6] ss:$0 sm:$0xff] }
   0x8   :  { %v3793_v37 = vld [vmem:[%s8131_s1 + $0x370] sm:$0xff]  ;;  %v3794_v38 = vld [vmem:[%s8131_s1 + $0x378] sm:$0xff]  ;;  %v340_v41 = vmul.f32 %v5218_v31, %v3777_v29  ;;  %v341_v42 = vmul.f32 %v5218_v31, %v3778_v30  ;;  %v5238_v43 = vld [vmem:[%s8130_s0 + $0x7] ss:$0 sm:$0xff] }
   0x9   :  { %v203_v32 = vadd.f32 %v187_v20, %v152_v24  ;;  %v204_v33 = vadd.f32 %v188_v21, %v153_v25  ;;  %v3809_v44 = vld [vmem:[%s8131_s1 + $0x3f0] sm:$0xff]  ;;  %v3810_v45 = vld [vmem:[%s8131_s1 + $0x3f8] sm:$0xff]  ;;  %v391_v48 = vmul.f32 %v5225_v36, %v3793_v37  ;;  %v392_v49 = vmul.f32 %v5225_v36, %v3794_v38  ;;  %v5251_v50 = vld [vmem:[%s8130_s0 + $0x8] ss:$0 sm:$0xff] }
   0xa   :  { %v3825_v51 = vld [vmem:[%s8131_s1 + $0x470] sm:$0xff]  ;;  %v3826_v52 = vld [vmem:[%s8131_s1 + $0x478] sm:$0xff]  ;;  %v442_v55 = vmul.f32 %v5238_v43, %v3809_v44  ;;  %v443_v56 = vmul.f32 %v5238_v43, %v3810_v45  ;;  %v5270_v59 = vld [vmem:[%s8130_s0 + $0x9] ss:$0 sm:$0xff] }
   0xb   :  { %v254_v39 = vadd.f32 %v238_v26, %v203_v32  ;;  %v255_v40 = vadd.f32 %v239_v27, %v204_v33  ;;  %v3841_v57 = vld [vmem:[%s8131_s1 + $0x4f0] sm:$0xff]  ;;  %v3842_v58 = vld [vmem:[%s8131_s1 + $0x4f8] sm:$0xff]  ;;  %v5281_v62 = vld [vmem:[%s8130_s0 + $0xa] ss:$0 sm:$0xff]  ;;  %v493_v1 = vmul.f32 %v5251_v50, %v3825_v51  ;;  %v494_v2 = vmul.f32 %v5251_v50, %v3826_v52 }
   0xc   :  { %v3857_v60 = vld [vmem:[%s8131_s1 + $0x570] sm:$0xff]  ;;  %v3858_v61 = vld [vmem:[%s8131_s1 + $0x578] sm:$0xff]  ;;  %v5294_v6 = vld [vmem:[%s8130_s0 + $0xb] ss:$0 sm:$0xff]  ;;  %v544_v13 = vmul.f32 %v5270_v59, %v3841_v57  ;;  %v545_v14 = vmul.f32 %v5270_v59, %v3842_v58 }
   0xd   :  { %v305_v46 = vadd.f32 %v289_v34, %v254_v39  ;;  %v306_v47 = vadd.f32 %v290_v35, %v255_v40  ;;  %v3873_v3 = vld [vmem:[%s8131_s1 + $0x5f0] sm:$0xff]  ;;  %v3874_v5 = vld [vmem:[%s8131_s1 + $0x5f8] sm:$0xff]  ;;  %v5302_v8 = vld [vmem:[%s8130_s0 + $0xc] ss:$0 sm:$0xff]  ;;  %v595_v23 = vmul.f32 %v5281_v62, %v3857_v60  ;;  %v596_v24 = vmul.f32 %v5281_v62, %v3858_v61 }
   0xe   :  { %v3889_v7 = vld [vmem:[%s8131_s1 + $0x670] sm:$0xff]  ;;  %v3890_v15 = vld [vmem:[%s8131_s1 + $0x678] sm:$0xff]  ;;  %v5315_v17 = vld [vmem:[%s8130_s0 + $0xd] ss:$0 sm:$0xff]  ;;  %v646_v27 = vmul.f32 %v5294_v6, %v3873_v3  ;;  %v647_v29 = vmul.f32 %v5294_v6, %v3874_v5 }
   0xf   :  { %v356_v53 = vadd.f32 %v340_v41, %v305_v46  ;;  %v357_v54 = vadd.f32 %v341_v42, %v306_v47  ;;  %v3905_v16 = vld [vmem:[%s8131_s1 + $0x6f0] sm:$0xff]  ;;  %v3906_v18 = vld [vmem:[%s8131_s1 + $0x6f8] sm:$0xff]  ;;  %v5328_v25 = vld [vmem:[%s8130_s0 + $0xe] ss:$0 sm:$0xff]  ;;  %v697_v30 = vmul.f32 %v5302_v8, %v3889_v7  ;;  %v698_v39 = vmul.f32 %v5302_v8, %v3890_v15 }
  0x10   :  { %v3921_v20 = vld [vmem:[%s8131_s1 + $0x770] sm:$0xff]  ;;  %v5333_v26 = vld [vmem:[%s8130_s0 + $0xf] ss:$0 sm:$0xff]  ;;  %v3922_v32 = vld [vmem:[%s8131_s1 + $0x778] sm:$0xff]  ;;  %v748_v40 = vmul.f32 %v5315_v17, %v3905_v16 }
  0x11   :  { %v407_v63 = vadd.f32 %v391_v48, %v356_v53  ;;  %v408_v0 = vadd.f32 %v392_v49, %v357_v54  ;;  %v49_v33 = vld [vmem:[%s8132_s2 + $0x60] sm:$0xff]  ;;  %v50_v34 = vld [vmem:[%s8132_s2 + $0x68] sm:$0xff]  ;;  %v3937_v45 = vld [vmem:[%s8131_s1 + $0x7f0] sm:$0xff]  ;;  %v800_v7 = vmul.f32 %v5328_v25, %v3922_v32 }
  0x12   :  { %v65_v35 = vld [vmem:[%s8131_s1 + $0x60] sm:$0xff]  ;;  %v66_v41 = vld [vmem:[%s8131_s1 + $0x68] sm:$0xff]  ;;  %v3938_v60 = vld [vmem:[%s8131_s1 + $0x7f8] sm:$0xff] }
  0x13   :  { %v458_v10 = vadd.f32 %v442_v55, %v407_v63  ;;  %v459_v11 = vadd.f32 %v443_v56, %v408_v0  ;;  %v3711_v42 = vld [vmem:[%s8131_s1 + $0xe0] sm:$0xff]  ;;  %v3712_v44 = vld [vmem:[%s8131_s1 + $0xe8] sm:$0xff]  ;;  %v83_v46 = vmul.f32 %v5155_v4, %v65_v35  ;;  %v84_v47 = vmul.f32 %v5155_v4, %v66_v41 }
  0x14   :  { %v134_v48 = vmul.f32 %v5168_v9, %v3711_v42  ;;  %v135_v49 = vmul.f32 %v5168_v9, %v3712_v44  ;;  %v3727_v51 = vld [vmem:[%s8131_s1 + $0x160] sm:$0xff]  ;;  %v3728_v52 = vld [vmem:[%s8131_s1 + $0x168] sm:$0xff]  ;;  %v749_v55 = vmul.f32 %v5315_v17, %v3906_v18  ;;  %v799_v56 = vmul.f32 %v5328_v25, %v3921_v20 }
  0x15   :  { %v509_v21 = vadd.f32 %v493_v1, %v458_v10  ;;  %v510_v22 = vadd.f32 %v494_v2, %v459_v11  ;;  %v3743_v57 = vld [vmem:[%s8131_s1 + $0x1e0] sm:$0xff]  ;;  %v3744_v58 = vld [vmem:[%s8131_s1 + $0x1e8] sm:$0xff]  ;;  %v99_v61 = vadd.f32 %v83_v46, %v49_v33  ;;  %v100_v63 = vadd.f32 %v84_v47, %v50_v34 }
  0x16   :  { %v185_v0 = vmul.f32 %v5179_v12, %v3727_v51  ;;  %v186_v1 = vmul.f32 %v5179_v12, %v3728_v52  ;;  %v3759_v2 = vld [vmem:[%s8131_s1 + $0x260] sm:$0xff]  ;;  %v850_v10 = vmul.f32 %v5333_v26, %v3937_v45  ;;  %v3760_v11 = vld [vmem:[%s8131_s1 + $0x268] sm:$0xff]  ;;  %v236_v16 = vmul.f32 %v5192_v19, %v3743_v57 }
  0x17   :  { %v560_v37 = vadd.f32 %v544_v13, %v509_v21  ;;  %v561_v38 = vadd.f32 %v545_v14, %v510_v22  ;;  %v3775_v13 = vld [vmem:[%s8131_s1 + $0x2e0] sm:$0xff]  ;;  %v150_v14 = vadd.f32 %v134_v48, %v99_v61  ;;  %v151_v15 = vadd.f32 %v135_v49, %v100_v63  ;;  %v3776_v20 = vld [vmem:[%s8131_s1 + $0x2e8] sm:$0xff] }
  0x18   :  { %v237_v18 = vmul.f32 %v5192_v19, %v3744_v58  ;;  %v3791_v21 = vld [vmem:[%s8131_s1 + $0x360] sm:$0xff]  ;;  %v288_v35 = vmul.f32 %v5207_v28, %v3760_v11  ;;  %v339_v42 = vmul.f32 %v5218_v31, %v3776_v20  ;;  %v3824_v45 = vld [vmem:[%s8131_s1 + $0x468] sm:$0xff] }
  0x19   :  { %v611_v53 = vadd.f32 %v595_v23, %v560_v37  ;;  %v612_v54 = vadd.f32 %v596_v24, %v561_v38  ;;  %v851_v24 = vmul.f32 %v5333_v26, %v3938_v60  ;;  %v3807_v32 = vld [vmem:[%s8131_s1 + $0x3e0] sm:$0xff]  ;;  %v201_v33 = vadd.f32 %v185_v0, %v150_v14  ;;  %v3856_v58 = vld [vmem:[%s8131_s1 + $0x568] sm:$0xff] }
  0x1a   :  { %v202_v34 = vadd.f32 %v186_v1, %v151_v15  ;;  %v338_v37 = vmul.f32 %v5218_v31, %v3775_v13  ;;  %v3823_v38 = vld [vmem:[%s8131_s1 + $0x460] sm:$0xff]  ;;  %v389_v44 = vmul.f32 %v5225_v36, %v3791_v21  ;;  %v440_v51 = vmul.f32 %v5238_v43, %v3807_v32  ;;  %v3888_v13 = vld [vmem:[%s8131_s1 + $0x668] sm:$0xff]  ;;  %v63_v21 = vld [vmem:[%s8131_s1 + $0x50] sm:$0xff] }
  0x1b   :  { %v662_v3 = vadd.f32 %v646_v27, %v611_v53  ;;  %v663_v5 = vadd.f32 %v647_v29, %v612_v54  ;;  %v287_v27 = vmul.f32 %v5207_v28, %v3759_v2  ;;  %v3792_v29 = vld [vmem:[%s8131_s1 + $0x368] sm:$0xff]  ;;  %v3839_v46 = vld [vmem:[%s8131_s1 + $0x4e0] sm:$0xff]  ;;  %v252_v47 = vadd.f32 %v236_v16, %v201_v33  ;;  %v64_v33 = vld [vmem:[%s8131_s1 + $0x58] sm:$0xff] }
  0x1c   :  { %v253_v48 = vadd.f32 %v237_v18, %v202_v34  ;;  %v390_v49 = vmul.f32 %v5225_v36, %v3792_v29  ;;  %v3855_v52 = vld [vmem:[%s8131_s1 + $0x560] sm:$0xff]  ;;  %v491_v57 = vmul.f32 %v5251_v50, %v3823_v38  ;;  %v492_v0 = vmul.f32 %v5251_v50, %v3824_v45  ;;  %v3904_v20 = vld [vmem:[%s8131_s1 + $0x6e8] sm:$0xff]  ;;  %v3709_v34 = vld [vmem:[%s8131_s1 + $0xd0] sm:$0xff] }
  0x1d   :  { %v713_v22 = vadd.f32 %v697_v30, %v662_v3  ;;  %v714_v23 = vadd.f32 %v698_v39, %v663_v5  ;;  %v3808_v30 = vld [vmem:[%s8131_s1 + $0x3e8] sm:$0xff]  ;;  %v3871_v60 = vld [vmem:[%s8131_s1 + $0x5e0] sm:$0xff]  ;;  %v303_v61 = vadd.f32 %v287_v27, %v252_v47  ;;  %v542_v1 = vmul.f32 %v5270_v59, %v3839_v46 }
  0x1e   :  { %v304_v63 = vadd.f32 %v288_v35, %v253_v48  ;;  %v5450_v5 = vmul.f32 %v5281_v62, %v3855_v52  ;;  %v3887_v11 = vld [vmem:[%s8131_s1 + $0x660] sm:$0xff]  ;;  %v594_v15 = vmul.f32 %v5281_v62, %v3856_v58  ;;  %v5463_v16 = vmul.f32 %v5294_v6, %v3871_v60  ;;  %v3710_v35 = vld [vmem:[%s8131_s1 + $0xd8] sm:$0xff]  ;;  %v3920_v48 = vld [vmem:[%s8131_s1 + $0x768] sm:$0xff] }
  0x1f   :  { %v764_v39 = vadd.f32 %v748_v40, %v713_v22  ;;  %v765_v41 = vadd.f32 %v749_v55, %v714_v23  ;;  %v3840_v40 = vld [vmem:[%s8131_s1 + $0x4e8] sm:$0xff]  ;;  %v441_v55 = vmul.f32 %v5238_v43, %v3808_v30  ;;  %v354_v14 = vadd.f32 %v338_v37, %v303_v61  ;;  %v3903_v18 = vld [vmem:[%s8131_s1 + $0x6e0] sm:$0xff]  ;;  %v3726_v52 = vld [vmem:[%s8131_s1 + $0x158] sm:$0xff] }
  0x20   :  { %v543_v3 = vmul.f32 %v5270_v59, %v3840_v40  ;;  %v5476_v32 = vmul.f32 %v5302_v8, %v3887_v11  ;;  %v5488_v38 = vmul.f32 %v5302_v8, %v3888_v13  ;;  %v81_v40 = vmul.f32 %v5155_v4, %v63_v21  ;;  %v3741_v58 = vld [vmem:[%s8131_s1 + $0x1d0] sm:$0xff]  ;;  %v3742_v11 = vld [vmem:[%s8131_s1 + $0x1d8] sm:$0xff] }
  0x21   :  { %v815_v53 = vadd.f32 %v799_v56, %v764_v39  ;;  %v816_v54 = vadd.f32 %v800_v7, %v765_v41  ;;  %v3872_v7 = vld [vmem:[%s8131_s1 + $0x5e8] sm:$0xff]  ;;  %v5491_v39 = vmul.f32 %v5315_v17, %v3903_v18  ;;  %v3919_v41 = vld [vmem:[%s8131_s1 + $0x760] sm:$0xff] }
  0x22   :  { %v645_v29 = vmul.f32 %v5294_v6, %v3872_v7  ;;  %v5532_v13 = vmul.f32 %v5328_v25, %v3919_v41 }
  0x23   :  { %v866_v56 = vadd.f32 %v850_v10, %v815_v53  ;;  %v867_v2 = vadd.f32 %v851_v24, %v816_v54  ;;  %v355_v10 = vadd.f32 %v339_v42, %v304_v63  ;;  %v405_v24 = vadd.f32 %v389_v44, %v354_v14  ;;  %v47_v42 = vld [vmem:[%s8132_s2 + $0x50] sm:$0xff]  ;;  %v3935_v63 = vld [vmem:[%s8131_s1 + $0x7e0] sm:$0xff] }
  0x24   :  { %v3725_v44 = vld [vmem:[%s8131_s1 + $0x150] sm:$0xff]  ;;  %v5513_v53 = vmul.f32 %v5315_v17, %v3904_v20  ;;  %v132_v54 = vmul.f32 %v5168_v9, %v3709_v34  ;;  %v184_v14 = vmul.f32 %v5179_v12, %v3726_v52  ;;  %v235_v34 = vmul.f32 %v5192_v19, %v3742_v11 }
  0x25   :  { %vm882_vm0 = vcmp.gt.f32.partialorder %v866_v56, 0.0  ;;  %vm883_vm1 = vcmp.gt.f32.partialorder %v867_v2, 0.0  ;;  %v898_v22 = vmul.f32 0.2, %v866_v56  ;;  %v899_v23 = vmul.f32 0.2, %v867_v2 }
  0x26   :  { %v406_v27 = vadd.f32 %v390_v49, %v355_v10  ;;  %v456_v46 = vadd.f32 %v440_v51, %v405_v24  ;;  %v48_v49 = vld [vmem:[%s8132_s2 + $0x58] sm:$0xff]  ;;  %v82_v51 = vmul.f32 %v5155_v4, %v64_v33  ;;  %v183_v7 = vmul.f32 %v5179_v12, %v3725_v44  ;;  %v3757_v10 = vld [vmem:[%s8131_s1 + $0x250] sm:$0xff] }
  0x27   :  { %v914_v37 = vsel %vm882_vm0, %v866_v56, %v898_v22  ;;  %v915_v30 = vsel %vm883_vm1, %v867_v2, %v899_v23  ;;  %v3936_v56 = vld [vmem:[%s8131_s1 + $0x7e8] sm:$0xff]  ;;  %v97_v2 = vadd.f32 %v81_v40, %v47_v42  ;;  %v234_v22 = vmul.f32 %v5192_v19, %v3741_v58  ;;  %v3758_v23 = vld [vmem:[%s8131_s1 + $0x258] sm:$0xff]  ;;  %v3773_v24 = vld [vmem:[%s8131_s1 + $0x2d0] sm:$0xff] }
  0x28   :  { %v979_v45 = vpack.c.bf16 %v915_v30, %v914_v37  ;;  %v457_v47 = vadd.f32 %v441_v55, %v406_v27  ;;  %v133_v55 = vmul.f32 %v5168_v9, %v3710_v35  ;;  %v507_v60 = vadd.f32 %v491_v57, %v456_v46  ;;  %v3774_v27 = vld [vmem:[%s8131_s1 + $0x2d8] sm:$0xff]  ;;  %v3789_v35 = vld [vmem:[%s8131_s1 + $0x350] sm:$0xff] }
  0x29   :  { %v5535_v57 = vmul.f32 %v5328_v25, %v3920_v48  ;;  %v148_v21 = vadd.f32 %v132_v54, %v97_v2  ;;  %v5552_v33 = vmul.f32 %v5333_v26, %v3935_v63  ;;  %v285_v42 = vmul.f32 %v5207_v28, %v3757_v10  ;;  %v3790_v44 = vld [vmem:[%s8131_s1 + $0x358] sm:$0xff]  ;;  %v3837_v58 = vld [vmem:[%s8131_s1 + $0x4d0] sm:$0xff] }
  0x2a   :  { %1076 = vmatpush.bf16.msra.mxu0 %v979_v45  ;;  %v508_v61 = vadd.f32 %v492_v0, %v457_v47  ;;  %v98_v0 = vadd.f32 %v82_v51, %v48_v49  ;;  %v558_v18 = vadd.f32 %v542_v1, %v507_v60  ;;  %v5555_v1 = vmul.f32 %v5333_v26, %v3936_v56  ;;  %v3805_v45 = vld [vmem:[%s8131_s1 + $0x3d0] sm:$0xff]  ;;  %v3806_v46 = vld [vmem:[%s8131_s1 + $0x3d8] sm:$0xff] }
  0x2b   :  { %v199_v41 = vadd.f32 %v183_v7, %v148_v21  ;;  %v286_v48 = vmul.f32 %v5207_v28, %v3758_v23  ;;  %v3821_v49 = vld [vmem:[%s8131_s1 + $0x450] sm:$0xff]  ;;  %v387_v54 = vmul.f32 %v5225_v36, %v3789_v35  ;;  %v3838_v60 = vld [vmem:[%s8131_s1 + $0x4d8] sm:$0xff]  ;;  %v388_v63 = vmul.f32 %v5225_v36, %v3790_v44 }
  0x2c   :  { %v559_v20 = vadd.f32 %v543_v3, %v508_v61  ;;  %v149_v3 = vadd.f32 %v133_v55, %v98_v0  ;;  %v609_v37 = vadd.f32 %v5450_v5, %v558_v18  ;;  %v336_v5 = vmul.f32 %v5218_v31, %v3773_v24  ;;  %v3822_v55 = vld [vmem:[%s8131_s1 + $0x458] sm:$0xff]  ;;  %v3853_v56 = vld [vmem:[%s8131_s1 + $0x550] sm:$0xff] }
  0x2d   :  { %v250_v51 = vadd.f32 %v234_v22, %v199_v41  ;;  %v489_v0 = vmul.f32 %v5251_v50, %v3821_v49  ;;  %v3869_v10 = vld [vmem:[%s8131_s1 + $0x5d0] sm:$0xff]  ;;  %v3870_v18 = vld [vmem:[%s8131_s1 + $0x5d8] sm:$0xff]  ;;  %v541_v21 = vmul.f32 %v5270_v59, %v3838_v60 }
  0x2e   :  { %v610_v30 = vadd.f32 %v594_v15, %v559_v20  ;;  %v200_v47 = vadd.f32 %v184_v14, %v149_v3  ;;  %v337_v15 = vmul.f32 %v5218_v31, %v3774_v27  ;;  %v660_v40 = vadd.f32 %v5463_v16, %v609_v37  ;;  %v3854_v14 = vld [vmem:[%s8131_s1 + $0x558] sm:$0xff]  ;;  %v3885_v22 = vld [vmem:[%s8131_s1 + $0x650] sm:$0xff]  ;;  %v61_v37 = vld [vmem:[%s8131_s1 + $0x40] sm:$0xff] }
  0x2f   :  { %v438_v16 = vmul.f32 %v5238_v43, %v3805_v45  ;;  %v301_v11 = vadd.f32 %v285_v42, %v250_v51  ;;  %v591_v3 = vmul.f32 %v5281_v62, %v3853_v56  ;;  %v3901_v35 = vld [vmem:[%s8131_s1 + $0x6d0] sm:$0xff]  ;;  %v5630_v41 = vmul.f32 %v5294_v6, %v3870_v18  ;;  %v62_v42 = vld [vmem:[%s8131_s1 + $0x48] sm:$0xff] }
  0x30   :  { %v661_v52 = vadd.f32 %v645_v29, %v610_v30  ;;  %v251_v61 = vadd.f32 %v235_v34, %v200_v47  ;;  %v439_v29 = vmul.f32 %v5238_v43, %v3806_v46  ;;  %v711_v2 = vadd.f32 %v5476_v32, %v660_v40  ;;  %v3886_v34 = vld [vmem:[%s8131_s1 + $0x658] sm:$0xff]  ;;  %v3740_v18 = vld [vmem:[%s8131_s1 + $0x1c8] sm:$0xff] }
  0x31   :  { %v490_v32 = vmul.f32 %v5251_v50, %v3822_v55  ;;  %v352_v27 = vadd.f32 %v336_v5, %v301_v11  ;;  %v5638_v47 = vmul.f32 %v5302_v8, %v3885_v22  ;;  %v3707_v5 = vld [vmem:[%s8131_s1 + $0xc0] sm:$0xff]  ;;  %v79_v40 = vmul.f32 %v5155_v4, %v61_v37  ;;  %v46_v55 = vld [vmem:[%s8132_s2 + $0x48] sm:$0xff]  ;;  %v3902_v37 = vld [vmem:[%s8131_s1 + $0x6d8] sm:$0xff] }
  0x32   :  { %v712_v7 = vadd.f32 %v5488_v38, %v661_v52  ;;  %v302_v20 = vadd.f32 %v286_v48, %v251_v61  ;;  %v540_v38 = vmul.f32 %v5270_v59, %v3837_v58  ;;  %v762_v23 = vadd.f32 %v5491_v39, %v711_v2  ;;  %v45_v48 = vld [vmem:[%s8132_s2 + $0x40] sm:$0xff] }
  0x33   :  { %v592_v39 = vmul.f32 %v5281_v62, %v3854_v14  ;;  %v403_v46 = vadd.f32 %v387_v54, %v352_v27  ;;  %v80_v58 = vmul.f32 %v5155_v4, %v62_v42  ;;  %v95_v61 = vadd.f32 %v79_v40, %v45_v48  ;;  %v3723_v2 = vld [vmem:[%s8131_s1 + $0x140] sm:$0xff]  ;;  %v3933_v40 = vld [vmem:[%s8131_s1 + $0x7d0] sm:$0xff] }
  0x34   :  { %v763_v24 = vadd.f32 %v5513_v53, %v712_v7  ;;  %v353_v30 = vadd.f32 %v337_v15, %v302_v20  ;;  %v5627_v53 = vmul.f32 %v5294_v6, %v3869_v10  ;;  %v813_v44 = vadd.f32 %v5532_v13, %v762_v23  ;;  %v3708_v15 = vld [vmem:[%s8131_s1 + $0xc8] sm:$0xff]  ;;  %v3739_v10 = vld [vmem:[%s8131_s1 + $0x1c0] sm:$0xff] }
  0x35   :  { %v5650_v13 = vmul.f32 %v5302_v8, %v3886_v34  ;;  %v454_v54 = vadd.f32 %v438_v16, %v403_v46  ;;  %v131_v56 = vmul.f32 %v5168_v9, %v3708_v15  ;;  %v3755_v20 = vld [vmem:[%s8131_s1 + $0x240] sm:$0xff]  ;;  %v232_v46 = vmul.f32 %v5192_v19, %v3739_v10 }
  0x36   :  { %v814_v45 = vadd.f32 %v5535_v57, %v763_v24  ;;  %v404_v49 = vadd.f32 %v388_v63, %v353_v30  ;;  %v5653_v57 = vmul.f32 %v5315_v17, %v3901_v35  ;;  %v864_v52 = vadd.f32 %v5552_v33, %v813_v44  ;;  %v3724_v33 = vld [vmem:[%s8131_s1 + $0x148] sm:$0xff]  ;;  %v3917_v30 = vld [vmem:[%s8131_s1 + $0x750] sm:$0xff]  ;;  %v3771_v44 = vld [vmem:[%s8131_s1 + $0x2c0] sm:$0xff] }
  0x37   :  { %v130_v63 = vmul.f32 %v5168_v9, %v3707_v5  ;;  %v505_v7 = vadd.f32 %v489_v0, %v454_v54  ;;  %v181_v24 = vmul.f32 %v5179_v12, %v3723_v2  ;;  %v182_v0 = vmul.f32 %v5179_v12, %v3724_v33  ;;  %v3787_v54 = vld [vmem:[%s8131_s1 + $0x340] sm:$0xff] }
  0x38   :  { %v865_v51 = vadd.f32 %v5555_v1, %v814_v45  ;;  %v455_v60 = vadd.f32 %v439_v29, %v404_v49  ;;  %vm880_vm2 = vcmp.gt.f32.partialorder %v864_v52, 0.0  ;;  %v896_v1 = vmul.f32 0.2, %v864_v52  ;;  %v3918_v49 = vld [vmem:[%s8131_s1 + $0x758] sm:$0xff] }
  0x39   :  { %v96_v29 = vadd.f32 %v80_v58, %v46_v55  ;;  %v146_v14 = vadd.f32 %v130_v63, %v95_v61  ;;  %v556_v34 = vadd.f32 %v540_v38, %v505_v7  ;;  %v233_v48 = vmul.f32 %v5192_v19, %v3740_v18 }
  0x3a   :  { %vm881_vm3 = vcmp.gt.f32.partialorder %v865_v51, 0.0  ;;  %v897_v16 = vmul.f32 0.2, %v865_v51  ;;  %v506_v11 = vadd.f32 %v490_v32, %v455_v60  ;;  %v912_v22 = vsel %vm880_vm2, %v864_v52, %v896_v1  ;;  %v3756_v32 = vld [vmem:[%s8131_s1 + $0x248] sm:$0xff]  ;;  %v3803_v1 = vld [vmem:[%s8131_s1 + $0x3c0] sm:$0xff] }
  0x3b   :  { %v147_v42 = vadd.f32 %v131_v56, %v96_v29  ;;  %v197_v45 = vadd.f32 %v181_v24, %v146_v14  ;;  %v283_v38 = vmul.f32 %v5207_v28, %v3755_v20  ;;  %v607_v5 = vadd.f32 %v591_v3, %v556_v34  ;;  %v3788_v60 = vld [vmem:[%s8131_s1 + $0x348] sm:$0xff]  ;;  %v3934_v56 = vld [vmem:[%s8131_s1 + $0x7d8] sm:$0xff]  ;;  %v3819_v29 = vld [vmem:[%s8131_s1 + $0x440] sm:$0xff] }
  0x3c   :  { %v913_v23 = vsel %vm881_vm3, %v865_v51, %v897_v16  ;;  %v557_v35 = vadd.f32 %v541_v21, %v506_v11  ;;  %v3772_v21 = vld [vmem:[%s8131_s1 + $0x2c8] sm:$0xff]  ;;  %v284_v51 = vmul.f32 %v5207_v28, %v3756_v32  ;;  %v745_v55 = vmul.f32 %v5315_v17, %v3902_v37 }
  0x3d   :  { %v978_v27 = vpack.c.bf16 %v913_v23, %v912_v22  ;;  %v198_v52 = vadd.f32 %v182_v0, %v147_v42  ;;  %v795_v3 = vmul.f32 %v5328_v25, %v3917_v30  ;;  %v334_v58 = vmul.f32 %v5218_v31, %v3771_v44  ;;  %v3804_v16 = vld [vmem:[%s8131_s1 + $0x3c8] sm:$0xff]  ;;  %v3835_v23 = vld [vmem:[%s8131_s1 + $0x4c0] sm:$0xff] }
  0x3e   :  { %v608_v15 = vadd.f32 %v592_v39, %v557_v35  ;;  %v248_v39 = vadd.f32 %v232_v46, %v197_v45  ;;  %v658_v61 = vadd.f32 %v5627_v53, %v607_v5  ;;  %v335_v33 = vmul.f32 %v5218_v31, %v3772_v21  ;;  %v3820_v22 = vld [vmem:[%s8131_s1 + $0x448] sm:$0xff]  ;;  %v3867_v44 = vld [vmem:[%s8131_s1 + $0x5c0] sm:$0xff] }
  0x3f   :  { %1077 = vmatpush.bf16.msra.mxu0 %v978_v27  ;;  %v249_v2 = vadd.f32 %v233_v48, %v198_v52  ;;  %v796_v7 = vmul.f32 %v5328_v25, %v3918_v49  ;;  %v846_v53 = vmul.f32 %v5333_v26, %v3933_v40  ;;  %v385_v11 = vmul.f32 %v5225_v36, %v3787_v54  ;;  %v3836_v24 = vld [vmem:[%s8131_s1 + $0x4c8] sm:$0xff]  ;;  %v3851_v27 = vld [vmem:[%s8131_s1 + $0x540] sm:$0xff]  ;;  %v59_v54 = vld [vmem:[%s8131_s1 + $0x30] sm:$0xff] }
  0x40   :  { %v659_v63 = vadd.f32 %v5630_v41, %v608_v15  ;;  %v299_v41 = vadd.f32 %v283_v38, %v248_v39  ;;  %v709_v14 = vadd.f32 %v5638_v47, %v658_v61  ;;  %v386_v20 = vmul.f32 %v5225_v36, %v3788_v60  ;;  %v3852_v42 = vld [vmem:[%s8131_s1 + $0x548] sm:$0xff]  ;;  %v3883_v21 = vld [vmem:[%s8131_s1 + $0x640] sm:$0xff] }
  0x41   :  { %v300_v18 = vadd.f32 %v284_v51, %v249_v2  ;;  %v847_v0 = vmul.f32 %v5333_v26, %v3934_v56  ;;  %v437_v32 = vmul.f32 %v5238_v43, %v3804_v16  ;;  %v487_v30 = vmul.f32 %v5251_v50, %v3819_v29  ;;  %v3868_v45 = vld [vmem:[%s8131_s1 + $0x5c8] sm:$0xff]  ;;  %v3899_v51 = vld [vmem:[%s8131_s1 + $0x6c0] sm:$0xff]  ;;  %v43_v2 = vld [vmem:[%s8132_s2 + $0x30] sm:$0xff] }
  0x42   :  { %v710_v10 = vadd.f32 %v5650_v13, %v659_v63  ;;  %v350_v47 = vadd.f32 %v334_v58, %v299_v41  ;;  %v436_v13 = vmul.f32 %v5238_v43, %v3803_v1  ;;  %v760_v34 = vadd.f32 %v5653_v57, %v709_v14  ;;  %v3884_v52 = vld [vmem:[%s8131_s1 + $0x648] sm:$0xff]  ;;  %v3706_v29 = vld [vmem:[%s8131_s1 + $0xb8] sm:$0xff] }
  0x43   :  { %v351_v37 = vadd.f32 %v335_v33, %v300_v18  ;;  %v488_v48 = vmul.f32 %v5251_v50, %v3820_v22  ;;  %v538_v57 = vmul.f32 %v5270_v59, %v3835_v23  ;;  %v539_v38 = vmul.f32 %v5270_v59, %v3836_v24  ;;  %v60_v33 = vld [vmem:[%s8131_s1 + $0x38] sm:$0xff]  ;;  %v3721_v24 = vld [vmem:[%s8131_s1 + $0x130] sm:$0xff] }
  0x44   :  { %v761_v35 = vadd.f32 %v745_v55, %v710_v10  ;;  %v401_v46 = vadd.f32 %v385_v11, %v350_v47  ;;  %v811_v5 = vadd.f32 %v795_v3, %v760_v34  ;;  %v589_v40 = vmul.f32 %v5281_v62, %v3851_v27  ;;  %v3705_v11 = vld [vmem:[%s8131_s1 + $0xb0] sm:$0xff]  ;;  %v3900_v27 = vld [vmem:[%s8131_s1 + $0x6c8] sm:$0xff] }
  0x45   :  { %v402_v49 = vadd.f32 %v386_v20, %v351_v37  ;;  %v590_v39 = vmul.f32 %v5281_v62, %v3852_v42  ;;  %v640_v3 = vmul.f32 %v5294_v6, %v3867_v44  ;;  %v641_v58 = vmul.f32 %v5294_v6, %v3868_v45  ;;  %v3737_v47 = vld [vmem:[%s8131_s1 + $0x1b0] sm:$0xff]  ;;  %v3915_v44 = vld [vmem:[%s8131_s1 + $0x740] sm:$0xff] }
  0x46   :  { %v812_v15 = vadd.f32 %v796_v7, %v761_v35  ;;  %v452_v55 = vadd.f32 %v436_v13, %v401_v46  ;;  %v862_v60 = vadd.f32 %v846_v53, %v811_v5  ;;  %v691_v56 = vmul.f32 %v5302_v8, %v3883_v21  ;;  %v44_v53 = vld [vmem:[%s8132_s2 + $0x38] sm:$0xff]  ;;  %v3753_v46 = vld [vmem:[%s8131_s1 + $0x230] sm:$0xff] }
  0x47   :  { %v453_v63 = vadd.f32 %v437_v32, %v402_v49  ;;  %v692_v16 = vmul.f32 %v5302_v8, %v3884_v52  ;;  %v742_v7 = vmul.f32 %v5315_v17, %v3899_v51  ;;  %v77_v41 = vmul.f32 %v5155_v4, %v59_v54  ;;  %v3738_v35 = vld [vmem:[%s8131_s1 + $0x1b8] sm:$0xff] }
  0x48   :  { %v863_v61 = vadd.f32 %v847_v0, %v812_v15  ;;  %v503_v1 = vadd.f32 %v487_v30, %v452_v55  ;;  %vm878_vm4 = vcmp.gt.f32.partialorder %v862_v60, 0.0  ;;  %v894_v14 = vmul.f32 0.2, %v862_v60  ;;  %v3722_v0 = vld [vmem:[%s8131_s1 + $0x138] sm:$0xff] }
  0x49   :  { %v504_v18 = vadd.f32 %v488_v48, %v453_v63  ;;  %v78_v22 = vmul.f32 %v5155_v4, %v60_v33  ;;  %v93_v23 = vadd.f32 %v77_v41, %v43_v2  ;;  %v128_v4 = vmul.f32 %v5168_v9, %v3705_v11 }
  0x4a   :  { %vm879_vm5 = vcmp.gt.f32.partialorder %v863_v61, 0.0  ;;  %v895_v10 = vmul.f32 0.2, %v863_v61  ;;  %v554_v20 = vadd.f32 %v538_v57, %v503_v1  ;;  %v910_v13 = vsel %vm878_vm4, %v862_v60, %v894_v14 }
  0x4b   :  { %v129_v34 = vmul.f32 %v5168_v9, %v3706_v29  ;;  %v555_v30 = vadd.f32 %v539_v38, %v504_v18  ;;  %v94_v45 = vadd.f32 %v78_v22, %v44_v53 }
  0x4c   :  { %v911_v32 = vsel %vm879_vm5, %v863_v61, %v895_v10  ;;  %v605_v42 = vadd.f32 %v589_v40, %v554_v20 }
  0x4d   :  { %v977_v37 = vpack.c.bf16 %v911_v32, %v910_v13 }
  0x4e   :  { %15 = vsyncpa [#allocation3], 0  ;;  %v144_v48 = vadd.f32 %v128_v4, %v93_v23  ;;  %v179_v9 = vmul.f32 %v5179_v12, %v3721_v24  ;;  %v180_v57 = vmul.f32 %v5179_v12, %v3722_v0  ;;  %v230_v21 = vmul.f32 %v5192_v19, %v3737_v47  ;;  %v3754_v38 = vld [vmem:[%s8131_s1 + $0x238] sm:$0xff]  ;;  %v3916_v49 = vld [vmem:[%s8131_s1 + $0x748] sm:$0xff]  ;;  %s5084_s13 = smov [#allocation2]   ;;  %s3690_s16 = sshll.u32 %s8140_s10, 4  ;;  %s3691_s16 = int_to_ptr.hbm [resolvable:$true] %s3690_s16 }
  0x4f   :  { %1078 = vmatpush.bf16.msra.mxu0 %v977_v37  ;;  %v606_v5 = vadd.f32 %v590_v39, %v555_v30  ;;  %v656_v15 = vadd.f32 %v640_v3, %v605_v42  ;;  %v3931_v40 = vld [vmem:[%s8131_s1 + $0x7c0] sm:$0xff]  ;;  %v145_v52 = vadd.f32 %v129_v34, %v94_v45  ;;  %v231_v12 = vmul.f32 %v5192_v19, %v3738_v35  ;;  %v3769_v51 = vld [vmem:[%s8131_s1 + $0x2b0] sm:$0xff]  ;;  %v3770_v60 = vld [vmem:[%s8131_s1 + $0x2b8] sm:$0xff] }
  0x50   :  { %v743_v54 = vmul.f32 %v5315_v17, %v3900_v27  ;;  %v793_v55 = vmul.f32 %v5328_v25, %v3915_v44  ;;  %v195_v39 = vadd.f32 %v179_v9, %v144_v48  ;;  %v281_v3 = vmul.f32 %v5207_v28, %v3753_v46  ;;  %v3932_v19 = vld [vmem:[%s8131_s1 + $0x7c8] sm:$0xff]  ;;  %v3785_v1 = vld [vmem:[%s8131_s1 + $0x330] sm:$0xff]  ;;  %v3802_v20 = vld [vmem:[%s8131_s1 + $0x3b8] sm:$0xff] }
  0x51   :  { %v657_v61 = vadd.f32 %v641_v58, %v606_v5  ;;  %v707_v63 = vadd.f32 %v691_v56, %v656_v15  ;;  %v196_v2 = vadd.f32 %v180_v57, %v145_v52  ;;  %v282_v33 = vmul.f32 %v5207_v28, %v3754_v38  ;;  %v3786_v58 = vld [vmem:[%s8131_s1 + $0x338] sm:$0xff]  ;;  %v3801_v18 = vld [vmem:[%s8131_s1 + $0x3b0] sm:$0xff]  ;;  %v57_v52 = vld [vmem:[%s8131_s1 + $0x20] sm:$0xff] }
  0x52   :  { %v794_v53 = vmul.f32 %v5328_v25, %v3916_v49  ;;  %v844_v41 = vmul.f32 %v5333_v26, %v3931_v40  ;;  %v246_v11 = vadd.f32 %v230_v21, %v195_v39  ;;  %v332_v29 = vmul.f32 %v5218_v31, %v3769_v51  ;;  %v3817_v22 = vld [vmem:[%s8131_s1 + $0x430] sm:$0xff]  ;;  %v3834_v27 = vld [vmem:[%s8131_s1 + $0x4b8] sm:$0xff]  ;;  %v3703_v39 = vld [vmem:[%s8131_s1 + $0xa0] sm:$0xff] }
  0x53   :  { %v708_v56 = vadd.f32 %v692_v16, %v657_v61  ;;  %v758_v14 = vadd.f32 %v742_v7, %v707_v63  ;;  %v247_v10 = vadd.f32 %v231_v12, %v196_v2  ;;  %v333_v28 = vmul.f32 %v5218_v31, %v3770_v60  ;;  %v3818_v31 = vld [vmem:[%s8131_s1 + $0x438] sm:$0xff]  ;;  %v3833_v32 = vld [vmem:[%s8131_s1 + $0x4b0] sm:$0xff] }
  0x54   :  { %v845_v23 = vmul.f32 %v5333_v26, %v3932_v19  ;;  %v297_v24 = vadd.f32 %v281_v3, %v246_v11  ;;  %v383_v16 = vmul.f32 %v5225_v36, %v3785_v1  ;;  %v384_v13 = vmul.f32 %v5225_v36, %v3786_v58  ;;  %v3849_v4 = vld [vmem:[%s8131_s1 + $0x530] sm:$0xff]  ;;  %v3850_v46 = vld [vmem:[%s8131_s1 + $0x538] sm:$0xff]  ;;  %v5932_v1 = vld [vmem:[%s8130_s0] ss:$0 sm:$0xff] }
  0x55   :  { %v759_v7 = vadd.f32 %v743_v54, %v708_v56  ;;  %v809_v0 = vadd.f32 %v793_v55, %v758_v14  ;;  %v298_v47 = vadd.f32 %v282_v33, %v247_v10  ;;  %v434_v35 = vmul.f32 %v5238_v43, %v3801_v18  ;;  %v3865_v48 = vld [vmem:[%s8131_s1 + $0x5b0] sm:$0xff]  ;;  %v3866_v9 = vld [vmem:[%s8131_s1 + $0x5b8] sm:$0xff]  ;;  %v58_v55 = vld [vmem:[%s8131_s1 + $0x28] sm:$0xff] }
  0x56   :  { %v348_v34 = vadd.f32 %v332_v29, %v297_v24  ;;  %v435_v37 = vmul.f32 %v5238_v43, %v3802_v20  ;;  %v485_v30 = vmul.f32 %v5251_v50, %v3817_v22  ;;  %v486_v45 = vmul.f32 %v5251_v50, %v3818_v31  ;;  %v3881_v49 = vld [vmem:[%s8131_s1 + $0x630] sm:$0xff]  ;;  %v3882_v40 = vld [vmem:[%s8131_s1 + $0x638] sm:$0xff]  ;;  %v42_v33 = vld [vmem:[%s8132_s2 + $0x28] sm:$0xff] }
  0x57   :  { %v810_v36 = vadd.f32 %v794_v53, %v759_v7  ;;  %v860_v42 = vadd.f32 %v844_v41, %v809_v0  ;;  %v349_v44 = vadd.f32 %v333_v28, %v298_v47  ;;  %v536_v57 = vmul.f32 %v5270_v59, %v3833_v32  ;;  %v3719_v41 = vld [vmem:[%s8131_s1 + $0x120] sm:$0xff]  ;;  %v3720_v11 = vld [vmem:[%s8131_s1 + $0x128] sm:$0xff]  ;;  %v3897_v58 = vld [vmem:[%s8131_s1 + $0x6b0] sm:$0xff] }
  0x58   :  { %v399_v43 = vadd.f32 %v383_v16, %v348_v34  ;;  %v537_v21 = vmul.f32 %v5270_v59, %v3834_v27  ;;  %v587_v38 = vmul.f32 %v5281_v62, %v3849_v4  ;;  %v588_v59 = vmul.f32 %v5281_v62, %v3850_v46  ;;  %v41_v62 = vld [vmem:[%s8132_s2 + $0x20] sm:$0xff]  ;;  %v3898_v22 = vld [vmem:[%s8131_s1 + $0x6b8] sm:$0xff]  ;;  %v3736_v16 = vld [vmem:[%s8131_s1 + $0x1a8] sm:$0xff] }
  0x59   :  { %v861_v50 = vadd.f32 %v845_v23, %v810_v36  ;;  %vm876_vm6 = vcmp.gt.f32.partialorder %v860_v42, 0.0  ;;  %v892_v5 = vmul.f32 0.2, %v860_v42  ;;  %v400_v15 = vadd.f32 %v384_v13, %v349_v44  ;;  %v5948_v14 = vld [vmem:[%s8130_s0 + $0x1] ss:$0 sm:$0xff]  ;;  %v3913_v7 = vld [vmem:[%s8131_s1 + $0x730] sm:$0xff] }
  0x5a   :  { %v450_v12 = vadd.f32 %v434_v35, %v399_v43  ;;  %v638_v51 = vmul.f32 %v5294_v6, %v3865_v48  ;;  %v639_v54 = vmul.f32 %v5294_v6, %v3866_v9  ;;  %v3704_v6 = vld [vmem:[%s8131_s1 + $0xa8] sm:$0xff]  ;;  %v689_v19 = vmul.f32 %v5302_v8, %v3881_v49  ;;  %v3735_v28 = vld [vmem:[%s8131_s1 + $0x1a0] sm:$0xff]  ;;  %v3914_v35 = vld [vmem:[%s8131_s1 + $0x738] sm:$0xff] }
  0x5b   :  { %vm877_vm7 = vcmp.gt.f32.partialorder %v861_v50, 0.0  ;;  %v893_v3 = vmul.f32 0.2, %v861_v50  ;;  %v908_v60 = vsel %vm876_vm6, %v860_v42, %v892_v5  ;;  %v451_v61 = vadd.f32 %v435_v37, %v400_v15  ;;  %v5967_v47 = vld [vmem:[%s8130_s0 + $0x2] ss:$0 sm:$0xff]  ;;  %v3752_v42 = vld [vmem:[%s8131_s1 + $0x228] sm:$0xff] }
  0x5c   :  { %v501_v63 = vadd.f32 %v485_v30, %v450_v12  ;;  %v690_v2 = vmul.f32 %v5302_v8, %v3882_v40  ;;  %v75_v53 = vmul.f32 %v5932_v1, %v57_v52  ;;  %v76_v56 = vmul.f32 %v5932_v1, %v58_v55  ;;  %v3751_v27 = vld [vmem:[%s8131_s1 + $0x220] sm:$0xff]  ;;  %v3929_v46 = vld [vmem:[%s8131_s1 + $0x7b0] sm:$0xff]  ;;  %v3768_v15 = vld [vmem:[%s8131_s1 + $0x2a8] sm:$0xff] }
  0x5d   :  { %v909_v8 = vsel %vm877_vm7, %v861_v50, %v893_v3  ;;  %v502_v29 = vadd.f32 %v486_v45, %v451_v61  ;;  %v126_v10 = vmul.f32 %v5948_v14, %v3703_v39  ;;  %v127_v24 = vmul.f32 %v5948_v14, %v3704_v6  ;;  %v5981_v30 = vld [vmem:[%s8130_s0 + $0x3] ss:$0 sm:$0xff]  ;;  %v3800_v61 = vld [vmem:[%s8131_s1 + $0x3a8] sm:$0xff] }
  0x5e   :  { %v976_v18 = vpack.c.bf16 %v909_v8, %v908_v60  ;;  %v552_v20 = vadd.f32 %v536_v57, %v501_v63  ;;  %v91_v23 = vadd.f32 %v75_v53, %v41_v62  ;;  %v92_v0 = vadd.f32 %v76_v56, %v42_v33  ;;  %v3767_v43 = vld [vmem:[%s8131_s1 + $0x2a0] sm:$0xff]  ;;  %v3816_v53 = vld [vmem:[%s8131_s1 + $0x428] sm:$0xff] }
  0x5f   :  { %v553_v31 = vadd.f32 %v537_v21, %v502_v29  ;;  %v177_v13 = vmul.f32 %v5967_v47, %v3719_v41  ;;  %v178_v32 = vmul.f32 %v5967_v47, %v3720_v11  ;;  %v740_v34 = vmul.f32 %v5315_v17, %v3897_v58  ;;  %v3799_v60 = vld [vmem:[%s8131_s1 + $0x3a0] sm:$0xff]  ;;  %v3832_v58 = vld [vmem:[%s8131_s1 + $0x4a8] sm:$0xff] }
  0x60   :  { %1079 = vmatpush.bf16.msra.mxu0 %v976_v18  ;;  %v603_v4 = vadd.f32 %v587_v38, %v552_v20  ;;  %v142_v37 = vadd.f32 %v126_v10, %v91_v23  ;;  %v228_v36 = vmul.f32 %v5981_v30, %v3735_v28  ;;  %v741_v45 = vmul.f32 %v5315_v17, %v3898_v22  ;;  %v3930_v38 = vld [vmem:[%s8131_s1 + $0x7b8] sm:$0xff]  ;;  %v6002_v17 = vld [vmem:[%s8130_s0 + $0x4] ss:$0 sm:$0xff]  ;;  %v6040_v8 = vld [vmem:[%s8130_s0 + $0x6] ss:$0 sm:$0xff] }
  0x61   :  { %v604_v44 = vadd.f32 %v588_v59, %v553_v31  ;;  %v143_v48 = vadd.f32 %v127_v24, %v92_v0  ;;  %v229_v9 = vmul.f32 %v5981_v30, %v3736_v16  ;;  %v791_v21 = vmul.f32 %v5328_v25, %v3913_v7  ;;  %v3783_v59 = vld [vmem:[%s8131_s1 + $0x320] sm:$0xff]  ;;  %v3848_v23 = vld [vmem:[%s8131_s1 + $0x528] sm:$0xff] }
  0x62   :  { %v654_v57 = vadd.f32 %v638_v51, %v603_v4  ;;  %v193_v50 = vadd.f32 %v177_v13, %v142_v37  ;;  %v279_v5 = vmul.f32 %v6002_v17, %v3751_v27  ;;  %v792_v40 = vmul.f32 %v5328_v25, %v3914_v35  ;;  %v3784_v51 = vld [vmem:[%s8131_s1 + $0x328] sm:$0xff]  ;;  %v3815_v33 = vld [vmem:[%s8131_s1 + $0x420] sm:$0xff] }
  0x63   :  { %v655_v49 = vadd.f32 %v639_v54, %v604_v44  ;;  %v194_v52 = vadd.f32 %v178_v32, %v143_v48  ;;  %v280_v12 = vmul.f32 %v6002_v17, %v3752_v42  ;;  %v842_v39 = vmul.f32 %v5333_v26, %v3929_v46  ;;  %v6020_v54 = vld [vmem:[%s8130_s0 + $0x5] ss:$0 sm:$0xff]  ;;  %v6053_v28 = vld [vmem:[%s8130_s0 + $0x7] ss:$0 sm:$0xff]  ;;  %v6066_v31 = vld [vmem:[%s8130_s0 + $0x8] ss:$0 sm:$0xff] }
  0x64   :  { %v705_v55 = vadd.f32 %v689_v19, %v654_v57  ;;  %v244_v3 = vadd.f32 %v228_v36, %v193_v50  ;;  %v330_v25 = vmul.f32 %v6020_v54, %v3767_v43  ;;  %v843_v6 = vmul.f32 %v5333_v26, %v3930_v38  ;;  %v3831_v29 = vld [vmem:[%s8131_s1 + $0x4a0] sm:$0xff]  ;;  %v3864_v32 = vld [vmem:[%s8131_s1 + $0x5a8] sm:$0xff] }
  0x65   :  { %v706_v62 = vadd.f32 %v690_v2, %v655_v49  ;;  %v245_v63 = vadd.f32 %v229_v9, %v194_v52  ;;  %v331_v19 = vmul.f32 %v6020_v54, %v3768_v15  ;;  %v381_v26 = vmul.f32 %v6040_v8, %v3783_v59  ;;  %v3847_v22 = vld [vmem:[%s8131_s1 + $0x520] sm:$0xff]  ;;  %v3880_v9 = vld [vmem:[%s8131_s1 + $0x628] sm:$0xff]  ;;  %v56_v15 = vld [vmem:[%s8131_s1 + $0x18] sm:$0xff] }
  0x66   :  { %v756_v41 = vadd.f32 %v740_v34, %v705_v55  ;;  %v295_v11 = vadd.f32 %v279_v5, %v244_v3  ;;  %v382_v2 = vmul.f32 %v6040_v8, %v3784_v51  ;;  %v432_v18 = vmul.f32 %v6053_v28, %v3799_v60  ;;  %v3863_v13 = vld [vmem:[%s8131_s1 + $0x5a0] sm:$0xff]  ;;  %v6079_v34 = vld [vmem:[%s8130_s0 + $0x9] ss:$0 sm:$0xff]  ;;  %v55_v5 = vld [vmem:[%s8131_s1 + $0x10] sm:$0xff] }
  0x67   :  { %v757_v56 = vadd.f32 %v741_v45, %v706_v62  ;;  %v296_v10 = vadd.f32 %v280_v12, %v245_v63  ;;  %v433_v20 = vmul.f32 %v6053_v28, %v3800_v61  ;;  %v483_v7 = vmul.f32 %v6066_v31, %v3815_v33  ;;  %v3879_v36 = vld [vmem:[%s8131_s1 + $0x620] sm:$0xff]  ;;  %v6089_v45 = vld [vmem:[%s8130_s0 + $0xa] ss:$0 sm:$0xff]  ;;  %v6112_v52 = vld [vmem:[%s8130_s0 + $0xc] ss:$0 sm:$0xff] }
  0x68   :  { %v807_v24 = vadd.f32 %v791_v21, %v756_v41  ;;  %v346_v16 = vadd.f32 %v330_v25, %v295_v11  ;;  %v484_v0 = vmul.f32 %v6066_v31, %v3816_v53  ;;  %v534_v35 = vmul.f32 %v6079_v34, %v3831_v29  ;;  %v6099_v21 = vld [vmem:[%s8130_s0 + $0xb] ss:$0 sm:$0xff]  ;;  %v3701_v59 = vld [vmem:[%s8131_s1 + $0x90] sm:$0xff]  ;;  %v3702_v51 = vld [vmem:[%s8131_s1 + $0x98] sm:$0xff] }
  0x69   :  { %v808_v27 = vadd.f32 %v792_v40, %v757_v56  ;;  %v347_v4 = vadd.f32 %v331_v19, %v296_v10  ;;  %v535_v37 = vmul.f32 %v6079_v34, %v3832_v58  ;;  %v585_v46 = vmul.f32 %v6089_v45, %v3847_v22  ;;  %v39_v25 = vld [vmem:[%s8132_s2 + $0x10] sm:$0xff]  ;;  %v40_v60 = vld [vmem:[%s8132_s2 + $0x18] sm:$0xff]  ;;  %v3895_v10 = vld [vmem:[%s8131_s1 + $0x6a0] sm:$0xff] }
  0x6a   :  { %v858_v42 = vadd.f32 %v842_v39, %v807_v24  ;;  %v397_v44 = vadd.f32 %v381_v26, %v346_v16  ;;  %v586_v48 = vmul.f32 %v6089_v45, %v3848_v23  ;;  %v636_v38 = vmul.f32 %v6099_v21, %v3863_v13  ;;  %v3717_v19 = vld [vmem:[%s8131_s1 + $0x110] sm:$0xff]  ;;  %v3718_v33 = vld [vmem:[%s8131_s1 + $0x118] sm:$0xff] }
  0x6b   :  { %v859_v43 = vadd.f32 %v843_v6, %v808_v27  ;;  %v398_v57 = vadd.f32 %v382_v2, %v347_v4  ;;  %v637_v50 = vmul.f32 %v6099_v21, %v3864_v32  ;;  %v687_v12 = vmul.f32 %v6112_v52, %v3879_v36  ;;  %v3733_v53 = vld [vmem:[%s8131_s1 + $0x190] sm:$0xff]  ;;  %v3734_v29 = vld [vmem:[%s8131_s1 + $0x198] sm:$0xff]  ;;  %v3911_v27 = vld [vmem:[%s8131_s1 + $0x720] sm:$0xff] }
  0x6c   :  { %vm874_vm8 = vcmp.gt.f32.partialorder %v858_v42, 0.0  ;;  %v890_v49 = vmul.f32 0.2, %v858_v42  ;;  %v448_v40 = vadd.f32 %v432_v18, %v397_v44  ;;  %v688_v3 = vmul.f32 %v6112_v52, %v3880_v9  ;;  %v3896_v18 = vld [vmem:[%s8131_s1 + $0x6a8] sm:$0xff]  ;;  %v3749_v23 = vld [vmem:[%s8131_s1 + $0x210] sm:$0xff]  ;;  %v3750_v13 = vld [vmem:[%s8131_s1 + $0x218] sm:$0xff] }
  0x6d   :  { %vm875_vm9 = vcmp.gt.f32.partialorder %v859_v43, 0.0  ;;  %v891_v55 = vmul.f32 0.2, %v859_v43  ;;  %v449_v39 = vadd.f32 %v433_v20, %v398_v57  ;;  %v73_v6 = vmul.f32 %v5932_v1, %v55_v5  ;;  %v3912_v4 = vld [vmem:[%s8131_s1 + $0x728] sm:$0xff]  ;;  %v3766_v5 = vld [vmem:[%s8131_s1 + $0x298] sm:$0xff] }
  0x6e   :  { %v906_v61 = vsel %vm874_vm8, %v858_v42, %v890_v49  ;;  %v499_v62 = vadd.f32 %v483_v7, %v448_v40  ;;  %v74_v63 = vmul.f32 %v5932_v1, %v56_v15  ;;  %v124_v26 = vmul.f32 %v5948_v14, %v3701_v59  ;;  %v3765_v42 = vld [vmem:[%s8131_s1 + $0x290] sm:$0xff]  ;;  %v3928_v49 = vld [vmem:[%s8131_s1 + $0x7a8] sm:$0xff] }
  0x6f   :  { %v907_v41 = vsel %vm875_vm9, %v859_v43, %v891_v55  ;;  %v500_v11 = vadd.f32 %v484_v0, %v449_v39  ;;  %v125_v2 = vmul.f32 %v5948_v14, %v3702_v51  ;;  %v89_v20 = vadd.f32 %v73_v6, %v39_v25  ;;  %v3781_v55 = vld [vmem:[%s8131_s1 + $0x310] sm:$0xff] }
  0x70   :  { %v975_v58 = vpack.c.bf16 %v907_v41, %v906_v61  ;;  %v550_v56 = vadd.f32 %v534_v35, %v499_v62  ;;  %v90_v22 = vadd.f32 %v74_v63, %v40_v60  ;;  %v175_v16 = vmul.f32 %v5967_v47, %v3717_v19  ;;  %v3782_v62 = vld [vmem:[%s8131_s1 + $0x318] sm:$0xff]  ;;  %v3813_v41 = vld [vmem:[%s8131_s1 + $0x410] sm:$0xff] }
  0x71   :  { %v551_v24 = vadd.f32 %v535_v37, %v500_v11  ;;  %v176_v7 = vmul.f32 %v5967_v47, %v3718_v33  ;;  %v226_v0 = vmul.f32 %v5981_v30, %v3733_v53  ;;  %v140_v35 = vadd.f32 %v124_v26, %v89_v20  ;;  %v3797_v33 = vld [vmem:[%s8131_s1 + $0x390] sm:$0xff]  ;;  %v3798_v53 = vld [vmem:[%s8131_s1 + $0x398] sm:$0xff] }
  0x72   :  { %1080 = vmatpush.bf16.msra.mxu0 %v975_v58  ;;  %v601_v32 = vadd.f32 %v585_v46, %v550_v56  ;;  %v141_v37 = vadd.f32 %v125_v2, %v90_v22  ;;  %v227_v36 = vmul.f32 %v5981_v30, %v3734_v29  ;;  %v6172_v46 = vld [vmem:[%s8130_s0 + $0xd] ss:$0 sm:$0xff]  ;;  %v277_v57 = vmul.f32 %v6002_v17, %v3749_v23  ;;  %v3814_v58 = vld [vmem:[%s8131_s1 + $0x418] sm:$0xff]  ;;  %v3829_v20 = vld [vmem:[%s8131_s1 + $0x490] sm:$0xff] }
  0x73   :  { %v602_v44 = vadd.f32 %v586_v48, %v551_v24  ;;  %v738_v9 = vmul.f32 %v6172_v46, %v3895_v10  ;;  %v739_v43 = vmul.f32 %v6172_v46, %v3896_v18  ;;  %v3927_v48 = vld [vmem:[%s8131_s1 + $0x7a0] sm:$0xff]  ;;  %v191_v40 = vadd.f32 %v175_v16, %v140_v35  ;;  %v3830_v22 = vld [vmem:[%s8131_s1 + $0x498] sm:$0xff]  ;;  %v3845_v23 = vld [vmem:[%s8131_s1 + $0x510] sm:$0xff] }
  0x74   :  { %v652_v15 = vadd.f32 %v636_v38, %v601_v32  ;;  %v192_v59 = vadd.f32 %v176_v7, %v141_v37  ;;  %v278_v51 = vmul.f32 %v6002_v17, %v3750_v13  ;;  %v6193_v38 = vld [vmem:[%s8130_s0 + $0xe] ss:$0 sm:$0xff]  ;;  %v328_v61 = vmul.f32 %v6020_v54, %v3765_v42  ;;  %v3846_v13 = vld [vmem:[%s8131_s1 + $0x518] sm:$0xff]  ;;  %v3861_v37 = vld [vmem:[%s8131_s1 + $0x590] sm:$0xff] }
  0x75   :  { %v653_v39 = vadd.f32 %v637_v50, %v602_v44  ;;  %v789_v25 = vmul.f32 %v6193_v38, %v3911_v27  ;;  %v790_v60 = vmul.f32 %v6193_v38, %v3912_v4  ;;  %v242_v63 = vadd.f32 %v226_v0, %v191_v40  ;;  %v3877_v42 = vld [vmem:[%s8131_s1 + $0x610] sm:$0xff]  ;;  %v3878_v40 = vld [vmem:[%s8131_s1 + $0x618] sm:$0xff] }
  0x76   :  { %v703_v6 = vadd.f32 %v687_v12, %v652_v15  ;;  %v243_v19 = vadd.f32 %v227_v36, %v192_v59  ;;  %v329_v50 = vmul.f32 %v6020_v54, %v3766_v5  ;;  %v6214_v12 = vld [vmem:[%s8130_s0 + $0xf] ss:$0 sm:$0xff]  ;;  %v379_v29 = vmul.f32 %v6040_v8, %v3781_v55  ;;  %v3862_v36 = vld [vmem:[%s8131_s1 + $0x598] sm:$0xff]  ;;  %v53_v59 = vld [vmem:[%s8131_s1] sm:$0xff] }
  0x77   :  { %v704_v11 = vadd.f32 %v688_v3, %v653_v39  ;;  %v840_v26 = vmul.f32 %v6214_v12, %v3927_v48  ;;  %v841_v2 = vmul.f32 %v6214_v12, %v3928_v49  ;;  %v293_v10 = vadd.f32 %v277_v57, %v242_v63  ;;  %v37_v63 = vld [vmem:[%s8132_s2] sm:$0xff] }
  0x78   :  { %v754_v56 = vadd.f32 %v738_v9, %v703_v6  ;;  %v294_v18 = vadd.f32 %v278_v51, %v243_v19  ;;  %v380_v3 = vmul.f32 %v6040_v8, %v3782_v62  ;;  %v430_v16 = vmul.f32 %v6053_v28, %v3797_v33  ;;  %v3699_v19 = vld [vmem:[%s8131_s1 + $0x80] sm:$0xff] }
  0x79   :  { %v755_v24 = vadd.f32 %v739_v43, %v704_v11  ;;  %v431_v7 = vmul.f32 %v6053_v28, %v3798_v53  ;;  %v481_v0 = vmul.f32 %v6066_v31, %v3813_v41  ;;  %v344_v27 = vadd.f32 %v328_v61, %v293_v10  ;;  %v38_v41 = vld [vmem:[%s8132_s2 + $0x8] sm:$0xff] }
  0x7a   :  { %v805_v32 = vadd.f32 %v789_v25, %v754_v56  ;;  %v345_v4 = vadd.f32 %v329_v50, %v294_v18  ;;  %v482_v35 = vmul.f32 %v6066_v31, %v3814_v58  ;;  %v532_v9 = vmul.f32 %v6079_v34, %v3829_v20  ;;  %v3700_v50 = vld [vmem:[%s8131_s1 + $0x88] sm:$0xff]  ;;  %v3715_v56 = vld [vmem:[%s8131_s1 + $0x100] sm:$0xff] }
  0x7b   :  { %v806_v44 = vadd.f32 %v790_v60, %v755_v24  ;;  %v533_v43 = vmul.f32 %v6079_v34, %v3830_v22  ;;  %v583_v57 = vmul.f32 %v6089_v45, %v3845_v23  ;;  %v395_v15 = vadd.f32 %v379_v29, %v344_v27  ;;  %v54_v60 = vld [vmem:[%s8131_s1 + $0x8] sm:$0xff]  ;;  %v3731_v18 = vld [vmem:[%s8131_s1 + $0x180] sm:$0xff] }
  0x7c   :  { %v856_v5 = vadd.f32 %v840_v26, %v805_v32  ;;  %v396_v48 = vadd.f32 %v380_v3, %v345_v4  ;;  %v584_v49 = vmul.f32 %v6089_v45, %v3846_v13  ;;  %v634_v55 = vmul.f32 %v6099_v21, %v3861_v37  ;;  %v3716_v10 = vld [vmem:[%s8131_s1 + $0x108] sm:$0xff]  ;;  %v3894_v13 = vld [vmem:[%s8131_s1 + $0x698] sm:$0xff] }
  0x7d   :  { %v857_v51 = vadd.f32 %v841_v2, %v806_v44  ;;  %v635_v39 = vmul.f32 %v6099_v21, %v3862_v36  ;;  %v6261_v25 = vmul.f32 %v6112_v52, %v3877_v42  ;;  %v446_v62 = vadd.f32 %v430_v16, %v395_v15  ;;  %v3748_v36 = vld [vmem:[%s8131_s1 + $0x208] sm:$0xff]  ;;  %v3763_v15 = vld [vmem:[%s8131_s1 + $0x280] sm:$0xff] }
  0x7e   :  { %vm872_vm10 = vcmp.gt.f32.partialorder %v856_v5, 0.0  ;;  %v888_v61 = vmul.f32 0.2, %v856_v5  ;;  %v447_v6 = vadd.f32 %v431_v7, %v396_v48  ;;  %v686_v53 = vmul.f32 %v6112_v52, %v3878_v40 }
  0x7f   :  { %vm873_vm11 = vcmp.gt.f32.partialorder %v857_v51, 0.0  ;;  %v889_v33 = vmul.f32 0.2, %v857_v51  ;;  %v71_v11 = vmul.f32 %v5932_v1, %v53_v59  ;;  %v497_v2 = vadd.f32 %v481_v0, %v446_v62  ;;  %v3893_v0 = vld [vmem:[%s8131_s1 + $0x690] sm:$0xff]  ;;  %v3764_v59 = vld [vmem:[%s8131_s1 + $0x288] sm:$0xff] }
  0x80   :  { %v904_v26 = vsel %vm872_vm10, %v856_v5, %v888_v61  ;;  %v498_v29 = vadd.f32 %v482_v35, %v447_v6  ;;  %v72_v58 = vmul.f32 %v5932_v1, %v54_v60  ;;  %v122_v22 = vmul.f32 %v5948_v14, %v3699_v19  ;;  %v3732_v1 = vld [vmem:[%s8131_s1 + $0x188] sm:$0xff]  ;;  %v3926_v61 = vld [vmem:[%s8131_s1 + $0x798] sm:$0xff] }
  0x81   :  { %v905_v3 = vsel %vm873_vm11, %v857_v51, %v889_v33  ;;  %v87_v20 = vadd.f32 %v71_v11, %v37_v63  ;;  %v123_v23 = vmul.f32 %v5948_v14, %v3700_v50  ;;  %v548_v16 = vadd.f32 %v532_v9, %v497_v2  ;;  %v3747_v14 = vld [vmem:[%s8131_s1 + $0x200] sm:$0xff]  ;;  %v3909_v9 = vld [vmem:[%s8131_s1 + $0x710] sm:$0xff]  ;;  %v3780_v33 = vld [vmem:[%s8131_s1 + $0x308] sm:$0xff] }
  0x82   :  { %v974_v24 = vpack.c.bf16 %v905_v3, %v904_v26  ;;  %v549_v7 = vadd.f32 %v533_v43, %v498_v29  ;;  %v88_v32 = vadd.f32 %v72_v58, %v38_v41  ;;  %v173_v4 = vmul.f32 %v5967_v47, %v3715_v56  ;;  %v3910_v43 = vld [vmem:[%s8131_s1 + $0x718] sm:$0xff]  ;;  %v3779_v63 = vld [vmem:[%s8131_s1 + $0x300] sm:$0xff] }
  0x83   :  { %v138_v27 = vadd.f32 %v122_v22, %v87_v20  ;;  %v174_v35 = vmul.f32 %v5967_v47, %v3716_v10  ;;  %v224_v37 = vmul.f32 %v5981_v30, %v3731_v18  ;;  %v599_v42 = vadd.f32 %v583_v57, %v548_v16  ;;  %v3795_v2 = vld [vmem:[%s8131_s1 + $0x380] sm:$0xff] }
  0x84   :  { %1081 = vmatpush.bf16.msra.mxu0 %v974_v24  ;;  %v600_v44 = vadd.f32 %v584_v49, %v549_v7  ;;  %v139_v5 = vadd.f32 %v123_v23, %v88_v32  ;;  %v225_v47 = vmul.f32 %v5981_v30, %v3732_v1  ;;  %v736_v48 = vmul.f32 %v6172_v46, %v3893_v0  ;;  %v3925_v30 = vld [vmem:[%s8131_s1 + $0x790] sm:$0xff]  ;;  %v3812_v7 = vld [vmem:[%s8131_s1 + $0x408] sm:$0xff] }
  0x85   :  { %v737_v57 = vmul.f32 %v6172_v46, %v3894_v13  ;;  %v189_v49 = vadd.f32 %v173_v4, %v138_v27  ;;  %v275_v40 = vmul.f32 %v6002_v17, %v3747_v14  ;;  %v650_v51 = vadd.f32 %v634_v55, %v599_v42 }
  0x86   :  { %v651_v60 = vadd.f32 %v635_v39, %v600_v44  ;;  %v190_v62 = vadd.f32 %v174_v35, %v139_v5  ;;  %v276_v6 = vmul.f32 %v6002_v17, %v3748_v36  ;;  %v787_v19 = vmul.f32 %v6193_v38, %v3909_v9  ;;  %v3828_v35 = vld [vmem:[%s8131_s1 + $0x488] sm:$0xff]  ;;  %v3859_v9 = vld [vmem:[%s8131_s1 + $0x580] sm:$0xff] }
  0x87   :  { %v788_v55 = vmul.f32 %v6193_v38, %v3910_v43  ;;  %v240_v39 = vadd.f32 %v224_v37, %v189_v49  ;;  %v326_v50 = vmul.f32 %v6020_v54, %v3763_v15  ;;  %v701_v41 = vadd.f32 %v6261_v25, %v650_v51  ;;  %v3843_v37 = vld [vmem:[%s8131_s1 + $0x500] sm:$0xff] }
  0x88   :  { %v702_v11 = vadd.f32 %v686_v53, %v651_v60  ;;  %v241_v26 = vadd.f32 %v225_v47, %v190_v62  ;;  %v327_v17 = vmul.f32 %v6020_v54, %v3764_v59  ;;  %v838_v29 = vmul.f32 %v6214_v12, %v3925_v30  ;;  %v3796_v54 = vld [vmem:[%s8131_s1 + $0x388] sm:$0xff]  ;;  %v3811_v53 = vld [vmem:[%s8131_s1 + $0x400] sm:$0xff] }
  0x89   :  { %v839_v58 = vmul.f32 %v6214_v12, %v3926_v61  ;;  %v291_v56 = vadd.f32 %v275_v40, %v240_v39  ;;  %v377_v10 = vmul.f32 %v6040_v8, %v3779_v63  ;;  %v752_v18 = vadd.f32 %v736_v48, %v701_v41  ;;  %v3860_v59 = vld [vmem:[%s8131_s1 + $0x588] sm:$0xff]  ;;  %v3875_v51 = vld [vmem:[%s8131_s1 + $0x600] sm:$0xff] }
  0x8a   :  { %v753_v3 = vadd.f32 %v737_v57, %v702_v11  ;;  %v292_v20 = vadd.f32 %v276_v6, %v241_v26  ;;  %v378_v25 = vmul.f32 %v6040_v8, %v3780_v33  ;;  %v428_v23 = vmul.f32 %v6053_v28, %v3795_v2  ;;  %v3827_v8 = vld [vmem:[%s8131_s1 + $0x480] sm:$0xff]  ;;  %v3892_v39 = vld [vmem:[%s8131_s1 + $0x688] sm:$0xff] }
  0x8b   :  { %v342_v22 = vadd.f32 %v326_v50, %v291_v56  ;;  %v803_v1 = vadd.f32 %v787_v19, %v752_v18  ;;  %v429_v13 = vmul.f32 %v6053_v28, %v3796_v54  ;;  %v479_v32 = vmul.f32 %v6066_v31, %v3811_v53  ;;  %v3844_v28 = vld [vmem:[%s8131_s1 + $0x508] sm:$0xff]  ;;  %v3907_v50 = vld [vmem:[%s8131_s1 + $0x700] sm:$0xff] }
  0x8c   :  { %v804_v24 = vadd.f32 %v788_v55, %v753_v3  ;;  %v343_v16 = vadd.f32 %v327_v17, %v292_v20  ;;  %v480_v42 = vmul.f32 %v6066_v31, %v3812_v7  ;;  %v530_v44 = vmul.f32 %v6079_v34, %v3827_v8  ;;  %v3923_v17 = vld [vmem:[%s8131_s1 + $0x780] sm:$0xff] }
  0x8d   :  { %v393_v0 = vadd.f32 %v377_v10, %v342_v22  ;;  %v854_v14 = vadd.f32 %v838_v29, %v803_v1  ;;  %v531_v48 = vmul.f32 %v6079_v34, %v3828_v35  ;;  %v581_v31 = vmul.f32 %v6089_v45, %v3843_v37  ;;  %v3876_v34 = vld [vmem:[%s8131_s1 + $0x608] sm:$0xff] }
  0x8e   :  { %v855_v27 = vadd.f32 %v839_v58, %v804_v24  ;;  %v394_v4 = vadd.f32 %v378_v25, %v343_v16  ;;  %v582_v40 = vmul.f32 %v6089_v45, %v3844_v28  ;;  %v632_v62 = vmul.f32 %v6099_v21, %v3859_v9  ;;  %v3891_v45 = vld [vmem:[%s8131_s1 + $0x680] sm:$0xff]  ;;  %v4877_v28 = vld [vmem:[%s8138_s8 + $0x1e4] sm:$0xf0] }
  0x8f   :  { %v444_v36 = vadd.f32 %v428_v23, %v393_v0  ;;  %vm870_vm12 = vcmp.gt.f32.partialorder %v854_v14, 0.0  ;;  %v886_v43 = vmul.f32 0.2, %v854_v14  ;;  %v633_v19 = vmul.f32 %v6099_v21, %v3860_v59  ;;  %v3908_v21 = vld [vmem:[%s8131_s1 + $0x708] sm:$0xff]  ;;  %v4802_v0 = vld [vmem:[%s8133_s3 + $0x10] sm:$0xff] }
  0x90   :  { %vm871_vm13 = vcmp.gt.f32.partialorder %v855_v27, 0.0  ;;  %v887_v5 = vmul.f32 0.2, %v855_v27  ;;  %v445_v47 = vadd.f32 %v429_v13, %v394_v4  ;;  %v683_v55 = vmul.f32 %v6112_v52, %v3875_v51  ;;  %v4803_v13 = vld [vmem:[%s8133_s3 + $0x18] sm:$0xff]  ;;  %v4809_v59 = vld [vmem:[%s8133_s3 + $0x48] sm:$0xff] }
  0x91   :  { %v495_v15 = vadd.f32 %v479_v32, %v444_v36  ;;  %v902_v57 = vsel %vm870_vm12, %v854_v14, %v886_v43  ;;  %v684_v11 = vmul.f32 %v6112_v52, %v3876_v34  ;;  %v734_v26 = vmul.f32 %v6172_v46, %v3891_v45  ;;  %v3924_v52 = vld [vmem:[%s8131_s1 + $0x788] sm:$0xff]  ;;  %v4804_v32 = vld [vmem:[%s8133_s3 + $0x20] sm:$0xff]  ;;  %v4807_v4 = vld [vmem:[%s8133_s3 + $0x38] sm:$0xff] }
  0x92   :  { %v903_v49 = vsel %vm871_vm13, %v855_v27, %v887_v5  ;;  %v496_v30 = vadd.f32 %v480_v42, %v445_v47  ;;  %v735_v58 = vmul.f32 %v6172_v46, %v3892_v39  ;;  %v785_v56 = vmul.f32 %v6193_v38, %v3907_v50  ;;  %v4805_v14 = vld [vmem:[%s8133_s3 + $0x28] sm:$0xff]  ;;  %v4806_v27 = vld [vmem:[%s8133_s3 + $0x30] sm:$0xff]  ;;  %v4808_v36 = vld [vmem:[%s8133_s3 + $0x40] sm:$0xff] }
  0x93   :  { %v973_v60 = vpack.c.bf16 %v903_v49, %v902_v57  ;;  %v546_v61 = vadd.f32 %v530_v44, %v495_v15  ;;  %v786_v3 = vmul.f32 %v6193_v38, %v3908_v21  ;;  %v836_v20 = vmul.f32 %v6214_v12, %v3923_v17  ;;  %v4800_v38 = vld [vmem:[%s8133_s3] sm:$0xff]  ;;  %v4033_v47 = vld [vmem:[%s8138_s8 + $0x70] sm:$0xf]  ;;  %v4831_v15 = vld [vmem:[%s8138_s8 + $0x74] sm:$0xf0] }
  0x94   :  { %v547_v6 = vadd.f32 %v531_v48, %v496_v30  ;;  %v837_v53 = vmul.f32 %v6214_v12, %v3924_v52  ;;  %v4801_v12 = vld [vmem:[%s8133_s3 + $0x8] sm:$0xff]  ;;  %v1165_v35 = vlaneseq  ;;  %v4029_v57 = vld [vmem:[%s8138_s8 + $0x60] sm:$0xf]  ;;  %v4827_v30 = vld [vmem:[%s8138_s8 + $0x54] sm:$0xf0]  ;;  %vm1190_vm1 = vcmask 261120  }
  0x95   :  { %1082 = vmatpush.bf16.msra.mxu0 %v973_v60  ;;  %v597_v63 = vadd.f32 %v581_v31, %v546_v61  ;;  %v6468_v31 = vor.u32 %v4831_v15, %v4033_v47  ;;  %v4829_v49 = vld [vmem:[%s8138_s8 + $0x64] sm:$0xf0]  ;;  %v4025_v60 = vld [vmem:[%s8138_s8 + $0x50] sm:$0xf]  ;;  %v4823_v39 = vld [vmem:[%s8138_s8 + $0x34] sm:$0xf0] }
  0x96   :  { %v598_v33 = vadd.f32 %v582_v40, %v547_v6  ;;  %v6444_v37 = vand.u32 127, %v1165_v35  ;;  %v6477_v40 = vor.u32 %v4829_v49, %v4029_v57  ;;  %v6489_v61 = vor.u32 %v4827_v30, %v4025_v60  ;;  %v4825_v34 = vld [vmem:[%s8138_s8 + $0x44] sm:$0xf0]  ;;  %v4810_v21 = vld [vmem:[%s8133_s3 + $0x50] sm:$0xff]  ;;  %vm6566_vm2 = vmpackc.low %vm1190_vm1, %vm1190_vm1 }
  0x97   :  { %v648_v41 = vadd.f32 %v632_v62, %v597_v63  ;;  %1495 = vmatpush.bf16.msra.mxu1 %v6468_v31  ;;  %v4021_v62 = vld [vmem:[%s8138_s8 + $0x40] sm:$0xf]  ;;  %v4817_v52 = vld [vmem:[%s8138_s8 + $0x4] sm:$0xf0]  ;;  %v4057_v47 = vld [vmem:[%s8138_s8 + $0xd0] sm:$0xf] }
  0x98   :  { %v649_v2 = vadd.f32 %v633_v19, %v598_v33  ;;  %v1167_v44 = vand.u32 15, %v6444_v37  ;;  %v6498_v45 = vor.u32 %v4825_v34, %v4021_v62  ;;  %v4845_v35 = vld [vmem:[%s8138_s8 + $0xe4] sm:$0xf0]  ;;  %v4843_v15 = vld [vmem:[%s8138_s8 + $0xd4] sm:$0xf0]  ;;  %vm1659_vm4 = vcmask 523264  }
  0x99   :  { %v699_v29 = vadd.f32 %v683_v55, %v648_v41  ;;  %v4017_v55 = vld [vmem:[%s8138_s8 + $0x30] sm:$0xf]  ;;  %v4013_v41 = vld [vmem:[%s8138_s8 + $0x20] sm:$0xf]  ;;  %v6620_v49 = vor.u32 %v4843_v15, %v4057_v47  ;;  %v4841_v30 = vld [vmem:[%s8138_s8 + $0xc4] sm:$0xf0] }
  0x9a   :  { %v700_v10 = vadd.f32 %v684_v11, %v649_v2  ;;  %vm6452_vm0 = vcmp.eq.s32.totalorder %v1167_v44, 0  ;;  %v6513_v33 = vor.u32 %v4823_v39, %v4017_v55  ;;  %v4821_v11 = vld [vmem:[%s8138_s8 + $0x24] sm:$0xf0]  ;;  %v4009_v2 = vld [vmem:[%s8138_s8 + $0x10] sm:$0xf]  ;;  %vm6855_vm3 = vcmp.eq.s32.totalorder %v1167_v44, 15 }
  0x9b   :  { %v750_v18 = vadd.f32 %v734_v26, %v699_v29  ;;  %1496 = vmatpush.bf16.msra.mxu1 %v6477_v40  ;;  %v6522_v26 = vor.u32 %v4821_v11, %v4013_v41  ;;  %v4819_v29 = vld [vmem:[%s8138_s8 + $0x14] sm:$0xf0]  ;;  %v4121_v57 = vld [vmem:[%s8138_s8 + $0x1d0] sm:$0xf]  ;;  %v4053_v60 = vld [vmem:[%s8138_s8 + $0xc0] sm:$0xf] }
  0x9c   :  { %v751_v25 = vadd.f32 %v735_v58, %v700_v10  ;;  %v6534_v58 = vor.u32 %v4819_v29, %v4009_v2  ;;  %v4117_v62 = vld [vmem:[%s8138_s8 + $0x1c0] sm:$0xf]  ;;  %v6638_v34 = vor.u32 %v4841_v30, %v4053_v60  ;;  %v4049_v39 = vld [vmem:[%s8138_s8 + $0xb0] sm:$0xf]  ;;  %v4839_v41 = vld [vmem:[%s8138_s8 + $0xb4] sm:$0xf0] }
  0x9d   :  { %v801_v54 = vadd.f32 %v785_v56, %v750_v18  ;;  %v4005_v56 = vld [vmem:[%s8138_s8] sm:$0xf]  ;;  %v4113_v11 = vld [vmem:[%s8138_s8 + $0x1b0] sm:$0xf]  ;;  %v4863_v30 = vld [vmem:[%s8138_s8 + $0x174] sm:$0xf0] }
  0x9e   :  { %v802_v22 = vadd.f32 %v786_v3, %v751_v25  ;;  %v6543_v10 = vor.u32 %v4817_v52, %v4005_v56  ;;  %v4045_v29 = vld [vmem:[%s8138_s8 + $0xa0] sm:$0xf]  ;;  %v4837_v56 = vld [vmem:[%s8138_s8 + $0xa4] sm:$0xf0]  ;;  %v4097_v60 = vld [vmem:[%s8138_s8 + $0x170] sm:$0xf] }
  0x9f   :  { %v852_v23 = vadd.f32 %v836_v20, %v801_v54  ;;  %1497 = vmatpush.bf16.msra.mxu1 %v6489_v61  ;;  %v4811_v54 = vld [vmem:[%s8133_s3 + $0x58] sm:$0xff]  ;;  %v4109_v52 = vld [vmem:[%s8138_s8 + $0x1a0] sm:$0xf] }
  0xa0   :  { %v853_v1 = vadd.f32 %v837_v53, %v802_v22  ;;  %8152 = vst [vmem:[#allocation5_spill] sm:$0xff] %v6543_v10 }
  0xa1   :  { %vm868_vm14 = vcmp.gt.f32.partialorder %v852_v23, 0.0  ;;  %v884_v46 = vmul.f32 0.2, %v852_v23 }
  0xa2   :  { %vm869_vm15 = vcmp.gt.f32.partialorder %v853_v1, 0.0  ;;  %v885_v24 = vmul.f32 0.2, %v853_v1 }
  0xa3   :  { %v900_v16 = vsel %vm868_vm14, %v852_v23, %v884_v46  ;;  %1498 = vmatpush.bf16.msra.mxu1 %v6498_v45 }
  0xa4   :  { %v901_v7 = vsel %vm869_vm15, %v853_v1, %v885_v24  ;;  %v4812_v24 = vld [vmem:[%s8133_s3 + $0x60] sm:$0xff] }
  0xa5   :  { %v972_v8 = vpack.c.bf16 %v901_v7, %v900_v16 }
  0xa7   :  { %1083 = vmatpush.bf16.msra.mxu0 %v972_v8  ;;  %1499 = vmatpush.bf16.msra.mxu1 %v6513_v33 }
  0xaa   :  { %1084 = vmatmul.bf16.vlgmr.msra.gmra.mxu0 %v4800_v38 }
  0xab   :  { %1500 = vmatpush.bf16.msra.mxu1 %v6522_v26 }
  0xaf   :  { %1501 = vmatpush.bf16.msra.mxu1 %v6534_v58 }
  0xb3   :  { %1502 = vmatpush.bf16.msra.mxu1 %v6543_v10 }
  0xba   :  { %1089 = vmatmul.bf16.gmra.mxu0 %v4801_v12  ;;  %v4065_v12 = vld [vmem:[%s8138_s8 + $0xf0] sm:$0xf] }
  0xca   :  { %1094 = vmatmul.bf16.gmra.mxu0 %v4802_v0  ;;  %v4847_v0 = vld [vmem:[%s8138_s8 + $0xf4] sm:$0xf0] }
  0xda   :  { %1099 = vmatmul.bf16.gmra.mxu0 %v4803_v13  ;;  %v4129_v13 = vld [vmem:[%s8138_s8 + $0x1f0] sm:$0xf] }
  0xea   :  { %1104 = vmatmul.bf16.gmra.mxu0 %v4804_v32  ;;  %v6579_v32 = vor.u32 %v4847_v0, %v4065_v12  ;;  %v4833_v12 = vld [vmem:[%s8138_s8 + $0x84] sm:$0xf0]  ;;  %v4101_v0 = vld [vmem:[%s8138_s8 + $0x180] sm:$0xf] }
  0xec   :  { %1524 = vmatpush.bf16.msra.mxu2 %v6579_v32 }
  0xfa   :  { %1109 = vmatmul.bf16.gmra.mxu0 %v4805_v14  ;;  %v4879_v14 = vld [vmem:[%s8138_s8 + $0x1f4] sm:$0xf0] }
 0x10a   :  { %1114 = vmatmul.bf16.gmra.mxu0 %v4806_v27  ;;  %v6586_v27 = vor.u32 %v4879_v14, %v4129_v13  ;;  %v4865_v14 = vld [vmem:[%s8138_s8 + $0x184] sm:$0xf0] }
 0x10c   :  { %1582 = vmatpush.bf16.msrb.mxu1 %v6586_v27 }
 0x11a   :  { %1119 = vmatmul.bf16.gmra.mxu0 %v4807_v4  ;;  %v4061_v4 = vld [vmem:[%s8138_s8 + $0xe0] sm:$0xf] }
 0x127   :  { %v1085_v42 = vpop.f32.mrf.mxu0 }
 0x128   :  { %v1182_v43 = vsel %vm6452_vm0, 0.0, %v1085_v42  ;;  %v6599_v42 = vor.u32 %v4845_v35, %v4061_v4  ;;  %v6720_v4 = vor.u32 %v4865_v14, %v4101_v0  ;;  %v4069_v14 = vld [vmem:[%s8138_s8 + $0x100] sm:$0xf] }
 0x12a   :  { %1124 = vmatmul.bf16.gmra.mxu0 %v4808_v36  ;;  %v4125_v36 = vld [vmem:[%s8138_s8 + $0x1e0] sm:$0xf]  ;;  %1525 = vmatpush.bf16.msra.mxu2 %v6599_v42 }
 0x12e   :  { %1526 = vmatpush.bf16.msra.mxu2 %v6620_v49 }
 0x12f   :  { %v1087_v9 = vpop.f32.mrf.mxu0 }
 0x130   :  { %v1183_v5 = vsel %vm6452_vm0, 0.0, %v1087_v9  ;;  %v4813_v9 = vld [vmem:[%s8133_s3 + $0x68] sm:$0xff] }
 0x131   :  { %v6466_v48 = vpack.c.bf16 %v1183_v5, %v1182_v43  ;;  %v6607_v43 = vor.u32 %v4877_v28, %v4125_v36  ;;  %v4815_v28 = vld [vmem:[%s8133_s3 + $0x78] sm:$0xff] }
 0x132   :  { %1527 = vmatpush.bf16.msra.mxu2 %v6638_v34 }
 0x133   :  { %1583 = vmatpush.bf16.msrb.mxu1 %v6607_v43 }
 0x137   :  { %v1090_v51 = vpop.f32.mrf.mxu0 }
 0x138   :  { %v1184_v63 = vsel %vm6452_vm0, 0.0, %v1090_v51 }
 0x13a   :  { %1129 = vmatmul.bf16.gmra.mxu0 %v4809_v59  ;;  %v4875_v59 = vld [vmem:[%s8138_s8 + $0x1d4] sm:$0xf0] }
 0x13b   :  { %v6625_v51 = vor.u32 %v4875_v59, %v4121_v57 }
 0x13d   :  { %1584 = vmatpush.bf16.msrb.mxu1 %v6625_v51 }
 0x13f   :  { %v1092_v6 = vpop.f32.mrf.mxu0 }
 0x140   :  { %v1185_v19 = vsel %vm6452_vm0, 0.0, %v1092_v6  ;;  %v4873_v6 = vld [vmem:[%s8138_s8 + $0x1c4] sm:$0xf0] }
 0x141   :  { %v6511_v50 = vpack.c.bf16 %v1185_v19, %v1184_v63  ;;  %v6643_v63 = vor.u32 %v4873_v6, %v4117_v62  ;;  %v6742_v62 = vor.u32 %v4863_v30, %v4097_v60  ;;  %v4093_v6 = vld [vmem:[%s8138_s8 + $0x160] sm:$0xf] }
 0x143   :  { %1585 = vmatpush.bf16.msrb.mxu1 %v6643_v63  ;;  %8155 = vst [vmem:[#allocation6_spill] sm:$0xff] %v6742_v62  ;;  %1553 = vmatpush.bf16.msra.mxu3 %v6742_v62 }
 0x147   :  { %v1095_v17 = vpop.f32.mrf.mxu0 }
 0x148   :  { %v1186_v3 = vsel %vm6452_vm0, 0.0, %v1095_v17  ;;  %v4871_v17 = vld [vmem:[%s8138_s8 + $0x1b4] sm:$0xf0] }
 0x149   :  { %v6663_v2 = vor.u32 %v4871_v17, %v4113_v11  ;;  %v4085_v17 = vld [vmem:[%s8138_s8 + $0x140] sm:$0xf] }
 0x14a   :  { %1134 = vmatmul.bf16.gmra.mxu0 %v4810_v21  ;;  %v6656_v21 = vor.u32 %v4839_v41, %v4049_v39  ;;  %v4859_v41 = vld [vmem:[%s8138_s8 + $0x154] sm:$0xf0] }
 0x14b   :  { %1586 = vmatpush.bf16.msrb.mxu1 %v6663_v2 }
 0x14c   :  { %1528 = vmatpush.bf16.msra.mxu2 %v6656_v21 }
 0x14f   :  { %v1097_v18 = vpop.f32.mrf.mxu0 }
 0x150   :  { %v1187_v20 = vsel %vm6452_vm0, 0.0, %v1097_v18  ;;  %v6676_v18 = vor.u32 %v4837_v56, %v4045_v29  ;;  %v4857_v29 = vld [vmem:[%s8138_s8 + $0x144] sm:$0xf0] }
 0x151   :  { %v6550_v25 = vpack.c.bf16 %v1187_v20, %v1186_v3  ;;  %v4869_v3 = vld [vmem:[%s8138_s8 + $0x1a4] sm:$0xf0]  ;;  %v4814_v20 = vld [vmem:[%s8133_s3 + $0x70] sm:$0xff]  ;;  %v6772_v56 = vor.u32 %v4857_v29, %v4085_v17 }
 0x152   :  { %1529 = vmatpush.bf16.msra.mxu2 %v6676_v18 }
 0x153   :  { %8158 = vst [vmem:[#allocation9_spill] sm:$0xff] %v6772_v56 }
 0x157   :  { %v1100_v53 = vpop.f32.mrf.mxu0 }
 0x158   :  { %v1188_v23 = vsel %vm6452_vm0, 0.0, %v1100_v53 }
 0x15a   :  { %1139 = vmatmul.bf16.gmra.mxu0 %v4811_v54  ;;  %v6684_v54 = vor.u32 %v4869_v3, %v4109_v52 }
 0x15c   :  { %1587 = vmatpush.bf16.msrb.mxu1 %v6684_v54 }
 0x15f   :  { %v1102_v22 = vpop.f32.mrf.mxu0 }
 0x160   :  { %v1189_v1 = vsel %vm6452_vm0, 0.0, %v1102_v22  ;;  %v4041_v22 = vld [vmem:[%s8138_s8 + $0x90] sm:$0xf] }
 0x161   :  { %v6559_v46 = vpack.c.bf16 %v1189_v1, %v1188_v23  ;;  %v4835_v23 = vld [vmem:[%s8138_s8 + $0x94] sm:$0xf0]  ;;  %v4105_v1 = vld [vmem:[%s8138_s8 + $0x190] sm:$0xf] }
 0x167   :  { %v1105_v16 = vpop.f32.mrf.mxu0 }
 0x16a   :  { %1144 = vmatmul.bf16.gmra.mxu0 %v4812_v24  ;;  %v6697_v24 = vor.u32 %v4835_v23, %v4041_v22  ;;  %v4077_v23 = vld [vmem:[%s8138_s8 + $0x120] sm:$0xf] }
 0x16c   :  { %1530 = vmatpush.bf16.msra.mxu2 %v6697_v24 }
 0x16f   :  { %v1107_v7 = vpop.f32.mrf.mxu0 }
 0x170   :  { %v4132_v38 = vpack.c.bf16 %v1107_v7, %v1105_v16  ;;  %v4867_v16 = vld [vmem:[%s8138_s8 + $0x194] sm:$0xf0] }
 0x171   :  { %v6702_v7 = vor.u32 %v4867_v16, %v4105_v1  ;;  %v4853_v1 = vld [vmem:[%s8138_s8 + $0x124] sm:$0xf0] }
 0x172   :  { %4133 = vmatmul.msk.bf16.vlgmr.msra.gmra.mxu1 %vm6566_vm2, %v4132_v38  ;;  %v4037_v38 = vld [vmem:[%s8138_s8 + $0x80] sm:$0xf]  ;;  %v6797_v16 = vor.u32 %v4853_v1, %v4077_v23 }
 0x173   :  { %1588 = vmatpush.bf16.msrb.mxu1 %v6702_v7  ;;  %v6715_v13 = vor.u32 %v4833_v12, %v4037_v38  ;;  %v4851_v12 = vld [vmem:[%s8138_s8 + $0x114] sm:$0xf0] }
 0x174   :  { %8160 = vst [vmem:[#allocation11_spill] sm:$0xff] %v6797_v16 }
 0x175   :  { %1531 = vmatpush.bf16.msra.mxu2 %v6715_v13 }
 0x177   :  { %v1110_v5 = vpop.f32.mrf.mxu0  ;;  %1589 = vmatpush.bf16.msrb.mxu1 %v6720_v4 }
 0x17a   :  { %1149 = vmatmul.bf16.gmra.mxu0 %v4813_v9 }
 0x17b   :  { %2178 = vmatpush.bf16.msra.mxu1 %v6742_v62 }
 0x17f   :  { %v1112_v19 = vpop.f32.mrf.mxu0 }
 0x180   :  { %v4135_v55 = vpack.c.bf16 %v1112_v19, %v1110_v5  ;;  %v4861_v19 = vld [vmem:[%s8138_s8 + $0x164] sm:$0xf0] }
 0x182   :  { %4136 = vmatmul.msk.bf16.gmra.mxu1 %vm6566_vm2, %v4135_v55  ;;  %v6752_v55 = vor.u32 %v4861_v19, %v4093_v6  ;;  %v921_v6 = vld [vmem:[%s8137_s7 + $0x28] sm:$0xff]  ;;  %v916_v19 = vld [vmem:[%s8137_s7] sm:$0xff] }
 0x184   :  { %8156 = vst [vmem:[#allocation7_spill] sm:$0xff] %v6752_v55  ;;  %1554 = vmatpush.bf16.msra.mxu3 %v6752_v55  ;;  %2179 = vmatpush.bf16.msra.mxu1 %v6752_v55 }
 0x187   :  { %v1115_v53 = vpop.f32.mrf.mxu0 }
 0x18a   :  { %1154 = vmatmul.bf16.gmra.mxu0 %v4814_v20  ;;  %v4081_v20 = vld [vmem:[%s8138_s8 + $0x130] sm:$0xf] }
 0x18f   :  { %v1117_v35 = vpop.f32.mrf.mxu0 }
 0x190   :  { %v4138_v36 = vpack.c.bf16 %v1117_v35, %v1115_v53  ;;  %v4855_v53 = vld [vmem:[%s8138_s8 + $0x134] sm:$0xf0]  ;;  %v4849_v35 = vld [vmem:[%s8138_s8 + $0x104] sm:$0xf0] }
 0x191   :  { %v6787_v22 = vor.u32 %v4855_v53, %v4081_v20 }
 0x192   :  { %4139 = vmatmul.msk.bf16.gmra.mxu1 %vm6566_vm2, %v4138_v36  ;;  %v6817_v36 = vor.u32 %v4849_v35, %v4069_v14 }
 0x193   :  { %8159 = vst [vmem:[#allocation10_spill] sm:$0xff] %v6787_v22 }
 0x194   :  { %8162 = vst [vmem:[#allocation13_spill] sm:$0xff] %v6817_v36 }
 0x197   :  { %v1120_v9 = vpop.f32.mrf.mxu0 }
 0x19a   :  { %1159 = vmatmul.bf16.gmra.mxu0 %v4815_v28 }
 0x19f   :  { %v1122_v5 = vpop.f32.mrf.mxu0 }
 0x1a0   :  { %v4141_v47 = vpack.c.bf16 %v1122_v5, %v1120_v9  ;;  %v5083_v5 = vmov 0  }
 0x1a1   :  { %4994 = vset.pattern.permute.xlu0 %v5083_v5  ;;  %4995 = vset.pattern.permute.xlu1 %v5083_v5 }
 0x1a2   :  { %4142 = vmatmul.msk.bf16.gmra.mxu1 %vm6566_vm2, %v4141_v47  ;;  %4996 = vset.pattern.permute.xlu2 %v5083_v5 }
 0x1a7   :  { %v1125_v15 = vpop.f32.mrf.mxu0 }
 0x1af   :  { %v1127_v57 = vpop.f32.mrf.mxu0 }
 0x1b0   :  { %v4144_v59 = vpack.c.bf16 %v1127_v57, %v1125_v15  ;;  %v922_v15 = vld [vmem:[%s8137_s7 + $0x30] sm:$0xff] }
 0x1b1   :  { %1643 = vperm.xlu0 %4994, %v922_v15  }
 0x1b2   :  { %4145 = vmatmul.msk.bf16.vlgmr.msra.gmra.mxu2 %vm6566_vm2, %v4144_v59  ;;  %4169 = vmatmul.msk.bf16.vlgmr.msrb.gmra.mxu1 %vm6566_vm2, %v6466_v48  ;;  %v4089_v48 = vld [vmem:[%s8138_s8 + $0x150] sm:$0xf]  ;;  %v920_v59 = vld [vmem:[%s8137_s7 + $0x20] sm:$0xff] }
 0x1b3   :  { %v6761_v11 = vor.u32 %v4859_v41, %v4089_v48  ;;  %1633 = vperm.xlu1 %4995, %v920_v59   ;;  %v917_v48 = vld [vmem:[%s8137_s7 + $0x8] sm:$0xff] }
 0x1b5   :  { %8157 = vst [vmem:[#allocation8_spill] sm:$0xff] %v6761_v11  ;;  %1555 = vmatpush.bf16.msra.mxu3 %v6761_v11  ;;  %2180 = vmatpush.bf16.msra.mxu1 %v6761_v11 }
 0x1b7   :  { %v1130_v39 = vpop.f32.mrf.mxu0 }
 0x1b9   :  { %1556 = vmatpush.bf16.msra.mxu3 %v6772_v56  ;;  %2181 = vmatpush.bf16.msra.mxu1 %v6772_v56 }
 0x1bb   :  { %1638 = vperm.xlu1 %4995, %v921_v6  }
 0x1bd   :  { %1557 = vmatpush.bf16.msra.mxu3 %v6787_v22  ;;  %2182 = vmatpush.bf16.msra.mxu1 %v6787_v22 }
 0x1bf   :  { %v1132_v52 = vpop.f32.mrf.mxu0 }
 0x1c0   :  { %v4147_v3 = vpack.c.bf16 %v1132_v52, %v1130_v39 }
 0x1c1   :  { %1558 = vmatpush.bf16.msra.mxu3 %v6797_v16  ;;  %2183 = vmatpush.bf16.msra.mxu1 %v6797_v16 }
 0x1c2   :  { %4148 = vmatmul.msk.bf16.gmra.mxu2 %vm6566_vm2, %v4147_v3  ;;  %4172 = vmatmul.msk.bf16.gmra.mxu1 %vm6566_vm2, %v6511_v50  ;;  %v4073_v50 = vld [vmem:[%s8138_s8 + $0x110] sm:$0xf] }
 0x1c3   :  { %v6807_v0 = vor.u32 %v4851_v12, %v4073_v50  ;;  %1618 = vperm.xlu1 %4995, %v917_v48  }
 0x1c5   :  { %8161 = vst [vmem:[#allocation12_spill] sm:$0xff] %v6807_v0  ;;  %1559 = vmatpush.bf16.msra.mxu3 %v6807_v0  ;;  %2184 = vmatpush.bf16.msra.mxu1 %v6807_v0 }
 0x1c7   :  { %v1135_v38 = vpop.f32.mrf.mxu0 }
 0x1c9   :  { %1560 = vmatpush.bf16.msra.mxu3 %v6817_v36  ;;  %2185 = vmatpush.bf16.msra.mxu1 %v6817_v36 }
 0x1cd   :  { %2140 = vmatpush.bf16.msrb.mxu3 %v6468_v31 }
 0x1cf   :  { %v1137_v28 = vpop.f32.mrf.mxu0 }
 0x1d0   :  { %v4150_v9 = vpack.c.bf16 %v1137_v28, %v1135_v38  ;;  %v918_v38 = vld [vmem:[%s8137_s7 + $0x10] sm:$0xff]  ;;  %v919_v28 = vld [vmem:[%s8137_s7 + $0x18] sm:$0xff] }
 0x1d1   :  { %2141 = vmatpush.bf16.msrb.mxu3 %v6477_v40  ;;  %1623 = vperm.xlu2 %4996, %v918_v38  }
 0x1d2   :  { %4151 = vmatmul.msk.bf16.gmra.mxu2 %vm6566_vm2, %v4150_v9  ;;  %4175 = vmatmul.msk.bf16.gmra.mxu1 %vm6566_vm2, %v6550_v25  ;;  %v923_v25 = vld [vmem:[%s8137_s7 + $0x38] sm:$0xff] }
 0x1d3   :  { %1648 = vperm.xlu0 %4994, %v923_v25  }
 0x1d5   :  { %2142 = vmatpush.bf16.msrb.mxu3 %v6489_v61 }
 0x1d7   :  { %v1140_v47 = vpop.f32.mrf.mxu0 }
 0x1d9   :  { %2143 = vmatpush.bf16.msrb.mxu3 %v6498_v45  ;;  %1628 = vperm.xlu2 %4996, %v919_v28  }
 0x1db   :  { %1613 = vperm.xlu0 %4994, %v916_v19  }
 0x1dd   :  { %2144 = vmatpush.bf16.msrb.mxu3 %v6513_v33 }
 0x1df   :  { %v1142_v57 = vpop.f32.mrf.mxu0 }
 0x1e0   :  { %v4153_v60 = vpack.c.bf16 %v1142_v57, %v1140_v47 }
 0x1e1   :  { %2145 = vmatpush.bf16.msrb.mxu3 %v6522_v26 }
 0x1e2   :  { %4154 = vmatmul.msk.bf16.gmra.mxu2 %vm6566_vm2, %v4153_v60  ;;  %4178 = vmatmul.msk.bf16.gmra.mxu1 %vm6566_vm2, %v6559_v46 }
 0x1e5   :  { %2146 = vmatpush.bf16.msrb.mxu3 %v6534_v58 }
 0x1e7   :  { %v1145_v30 = vpop.f32.mrf.mxu0 }
 0x1e8   :  { %v1171_v41 = vsel %vm6855_vm3, 0.0, %v1145_v30 }
 0x1e9   :  { %2147 = vmatpush.bf16.msrb.mxu3 %v6543_v10 }
 0x1ef   :  { %v1147_v46 = vpop.f32.mrf.mxu0  ;;  %v1504_v9 = vpop.f32.mrf.mxu1 }
 0x1f0   :  { %v1172_v17 = vsel %vm6855_vm3, 0.0, %v1147_v46 }
 0x1f1   :  { %v4156_v29 = vpack.c.bf16 %v1172_v17, %v1171_v41 }
 0x1f3   :  { %4157 = vmatmul.msk.bf16.vlgmr.msra.gmra.mxu3 %vm6566_vm2, %v4156_v29 }
 0x1f4   :  { %2159 = vmatpush.bf16.msra.mxu3 %v6579_v32 }
 0x1f7   :  { %v1150_v44 = vpop.f32.mrf.mxu0  ;;  %v6901_v25 = vpop.f32.mrf.mxu1 }
 0x1f8   :  { %2160 = vmatpush.bf16.msra.mxu3 %v6599_v42  ;;  %v1173_v3 = vsel %vm6855_vm3, 0.0, %v1150_v44 }
 0x1fc   :  { %2161 = vmatpush.bf16.msra.mxu3 %v6620_v49 }
 0x1ff   :  { %v1152_v52 = vpop.f32.mrf.mxu0  ;;  %v1509_v59 = vpop.f32.mrf.mxu1 }
 0x200   :  { %v1174_v20 = vsel %vm6855_vm3, 0.0, %v1152_v52  ;;  %2162 = vmatpush.bf16.msra.mxu3 %v6638_v34 }
 0x201   :  { %v4159_v53 = vpack.c.bf16 %v1174_v20, %v1173_v3 }
 0x203   :  { %4160 = vmatmul.msk.bf16.gmra.mxu3 %vm6566_vm2, %v4159_v53 }
 0x204   :  { %2163 = vmatpush.bf16.msra.mxu3 %v6656_v21 }
 0x207   :  { %v1155_v23 = vpop.f32.mrf.mxu0  ;;  %v6903_v60 = vpop.f32.mrf.mxu1 }
 0x208   :  { %2164 = vmatpush.bf16.msra.mxu3 %v6676_v18  ;;  %v1175_v50 = vsel %vm6855_vm3, 0.0, %v1155_v23 }
 0x20c   :  { %2165 = vmatpush.bf16.msra.mxu3 %v6697_v24 }
 0x20f   :  { %v1157_v1 = vpop.f32.mrf.mxu0  ;;  %v1514_v30 = vpop.f32.mrf.mxu1 }
 0x210   :  { %v1176_v12 = vsel %vm6855_vm3, 0.0, %v1157_v1  ;;  %2166 = vmatpush.bf16.msra.mxu3 %v6715_v13 }
 0x211   :  { %v4162_v14 = vpack.c.bf16 %v1176_v12, %v1175_v50 }
 0x213   :  { %4163 = vmatmul.msk.bf16.gmra.mxu3 %vm6566_vm2, %v4162_v14 }
 0x217   :  { %v1160_v35 = vpop.f32.mrf.mxu0  ;;  %v1516_v6 = vpop.f32.mrf.mxu1 }
 0x218   :  { %v1177_v47 = vsel %vm6855_vm3, 0.0, %v1160_v35 }
 0x21f   :  { %v1162_v5 = vpop.f32.mrf.mxu0  ;;  %v1519_v19 = vpop.f32.mrf.mxu1 }
 0x220   :  { %v1178_v15 = vsel %vm6855_vm3, 0.0, %v1162_v5 }
 0x221   :  { %v4165_v57 = vpack.c.bf16 %v1178_v15, %v1177_v47 }
 0x223   :  { %4166 = vmatmul.msk.bf16.gmra.mxu3 %vm6566_vm2, %v4165_v57  ;;  %v1644_v23 = vpop.permute.xlu0 %1643 }
 0x225   :  { %v1634_v15 = vpop.permute.xlu1 %1633 }
 0x227   :  { %v1521_v46 = vpop.f32.mrf.mxu1 }
 0x22f   :  { %v1591_v41 = vpop.f32.mrf.mxu1 }
 0x235   :  { %v1533_v48 = vpop.f32.mrf.mxu2 }
 0x236   :  { %v1534_v5 = vadd.f32 %v1533_v48, %v1504_v9  ;;  %v1639_v48 = vpop.permute.xlu1 %1638 }
 0x237   :  { %v6905_v29 = vpop.f32.mrf.mxu1 }
 0x23d   :  { %v1535_v17 = vpop.f32.mrf.mxu2 }
 0x23f   :  { %v1596_v52 = vpop.f32.mrf.mxu1 }
 0x245   :  { %v1538_v44 = vpop.f32.mrf.mxu2  ;;  %v1649_v12 = vpop.permute.xlu0 %1648 }
 0x247   :  { %v1598_v53 = vpop.f32.mrf.mxu1 }
 0x24d   :  { %v1540_v8 = vpop.f32.mrf.mxu2  ;;  %v1614_v55 = vpop.permute.xlu0 %1613 }
 0x24f   :  { %v1601_v50 = vpop.f32.mrf.mxu1 }
 0x255   :  { %v1543_v1 = vpop.f32.mrf.mxu2 }
 0x256   :  { %v1544_v14 = vadd.f32 %v1543_v1, %v1514_v30 }
 0x257   :  { %v1603_v16 = vpop.f32.mrf.mxu1 }
 0x25d   :  { %v1545_v35 = vpop.f32.mrf.mxu2 }
 0x25e   :  { %v1546_v22 = vadd.f32 %v1545_v35, %v1516_v6 }
 0x265   :  { %v1548_v1 = vpop.f32.mrf.mxu2 }
 0x276   :  { %v1562_v39 = vpop.f32.mrf.mxu3 }
 0x277   :  { %v1563_v57 = vadd.f32 %v1562_v39, %v1534_v5  ;;  %v1549_v39 = vadd.f32 %v1548_v1, %v1519_v19 }
 0x279   :  { %v1592_v56 = vadd.f32 %v1591_v41, %v1563_v57  ;;  %v1539_v41 = vadd.f32 %v1538_v44, %v1509_v59  ;;  %v1541_v57 = vadd.f32 %v1540_v8, %v6903_v60 }
 0x27b   :  { %v1651_v10 = vadd.f32 %v1614_v55, %v1592_v56 }
 0x27e   :  { %v1564_v3 = vpop.f32.mrf.mxu3 }
 0x286   :  { %v1567_v20 = vpop.f32.mrf.mxu3 }
 0x287   :  { %v1568_v5 = vadd.f32 %v1567_v20, %v1539_v41 }
 0x289   :  { %v1597_v56 = vadd.f32 %v1596_v52, %v1568_v5 }
 0x28e   :  { %v1569_v38 = vpop.f32.mrf.mxu3 }
 0x28f   :  { %v1570_v44 = vadd.f32 %v1569_v38, %v1541_v57 }
 0x296   :  { %v1572_v28 = vpop.f32.mrf.mxu3 }
 0x297   :  { %v1573_v47 = vadd.f32 %v1572_v28, %v1544_v14  ;;  %v1606_v28 = vpop.f32.mrf.mxu1 }
 0x299   :  { %v1602_v36 = vadd.f32 %v1601_v50, %v1573_v47  ;;  %v1660_v50 = vsel %vm1659_vm4, %v1651_v10, 0.0 }
 0x29b   :  { %v6907_v0 = vadd.f32 %v1634_v15, %v1602_v36  ;;  %v1536_v15 = vadd.f32 %v1535_v17, %v6901_v25 }
 0x29d   :  { %v1672_v11 = vsel %vm1659_vm4, %v6907_v0, 0.0 }
 0x29e   :  { %v1574_v62 = vpop.f32.mrf.mxu3  ;;  %1673 = vadd.xlane.f32.xlu1 %v1672_v11  ;;  %v1550_v11 = vpop.f32.mrf.mxu2 }
 0x29f   :  { %v1575_v30 = vadd.f32 %v1574_v62, %v1546_v22  ;;  %v1624_v22 = vpop.permute.xlu2 %1623  ;;  %v1551_v55 = vadd.f32 %v1550_v11, %v1521_v46  ;;  %v1608_v1 = vpop.f32.mrf.mxu1 }
 0x2a0   :  { %v1653_v59 = vadd.f32 %v1624_v22, %v1597_v56 }
 0x2a1   :  { %v1604_v9 = vadd.f32 %v1603_v16, %v1575_v30 }
 0x2a2   :  { %v1666_v52 = vsel %vm1659_vm4, %v1653_v59, 0.0 }
 0x2a3   :  { %v1656_v14 = vadd.f32 %v1639_v48, %v1604_v9  ;;  %v1565_v9 = vadd.f32 %v1564_v3, %v1536_v15 }
 0x2a5   :  { %v1675_v36 = vsel %vm1659_vm4, %v1656_v14, 0.0 }
 0x2a6   :  { %1676 = vadd.xlane.f32.xlu2 %v1675_v36  ;;  %1661 = vadd.xlane.f32.xlu1 %v1660_v50  ;;  %v1577_v6 = vpop.f32.mrf.mxu3  ;;  %v1619_v36 = vpop.permute.xlu1 %1618 }
 0x2a7   :  { %v1578_v35 = vadd.f32 %v1577_v6, %v1549_v39  ;;  %v1599_v39 = vadd.f32 %v1598_v53, %v1570_v44  ;;  %v1629_v50 = vpop.permute.xlu2 %1628 }
 0x2a9   :  { %v1607_v47 = vadd.f32 %v1606_v28, %v1578_v35  ;;  %v1654_v60 = vadd.f32 %v1629_v50, %v1599_v39 }
 0x2ab   :  { %v1657_v62 = vadd.f32 %v1644_v23, %v1607_v47  ;;  %v1594_v23 = vadd.f32 %v6905_v29, %v1565_v9  ;;  %v1669_v17 = vsel %vm1659_vm4, %v1654_v60, 0.0 }
 0x2ad   :  { %v1678_v16 = vsel %vm1659_vm4, %v1657_v62, 0.0  ;;  %v1652_v25 = vadd.f32 %v1619_v36, %v1594_v23 }
 0x2ae   :  { %v1579_v19 = vpop.f32.mrf.mxu3  ;;  %1679 = vadd.xlane.f32.xlu2 %v1678_v16 }
 0x2af   :  { %v1580_v30 = vadd.f32 %v1579_v19, %v1551_v55  ;;  %v1663_v3 = vsel %vm1659_vm4, %v1652_v25, 0.0 }
 0x2b1   :  { %v1609_v20 = vadd.f32 %v1608_v1, %v1580_v30 }
 0x2b3   :  { %v1658_v48 = vadd.f32 %v1649_v12, %v1609_v20 }
 0x2b5   :  { %v1681_v46 = vsel %vm1659_vm4, %v1658_v48, 0.0 }
 0x2b6   :  { %1682 = vadd.xlane.f32.xlu0 %v1681_v46  ;;  %1667 = vadd.xlane.f32.xlu2 %v1666_v52 }
 0x2be   :  { %1670 = vadd.xlane.f32.xlu0 %v1669_v17  ;;  %1664 = vadd.xlane.f32.xlu2 %v1663_v3 }
 0x311   :  { %v1674_v8 = vpop.xlane.xlu1 %1673 }
 0x312   :  { %v1688_v23 = vmul.f32 0.015625, %v1674_v8 }
 0x314   :  { %v6950_v52 = vsub.f32 %v6907_v0, %v1688_v23  ;;  %v939_v0 = vld [vmem:[%s8137_s7 + $0xb8] sm:$0xff] }
 0x319   :  { %v1677_v38 = vpop.xlane.xlu2 %1676  ;;  %v1662_v29 = vpop.xlane.xlu1 %1661 }
 0x31a   :  { %v1684_v53 = vmul.f32 0.015625, %v1662_v29  ;;  %v1689_v12 = vmul.f32 0.015625, %v1677_v38  ;;  %v937_v29 = vld [vmem:[%s8137_s7 + $0xa8] sm:$0xff] }
 0x31c   :  { %v6921_v28 = vsub.f32 %v1651_v10, %v1684_v53  ;;  %v6925_v41 = vsub.f32 %v1656_v14, %v1689_v12  ;;  %v938_v53 = vld [vmem:[%s8137_s7 + $0xb0] sm:$0xff] }
 0x31e   :  { %v1700_v6 = vmul.f32 %v6921_v28, %v6921_v28  ;;  %v1705_v11 = vmul.f32 %v6925_v41, %v6925_v41 }
 0x320   :  { %v1708_v35 = vsel %vm1659_vm4, %v1700_v6, 0.0  ;;  %v1723_v55 = vsel %vm1659_vm4, %v1705_v11, 0.0 }
 0x321   :  { %1709 = vadd.xlane.f32.xlu0 %v1708_v35  ;;  %v1680_v5 = vpop.xlane.xlu2 %1679 }
 0x322   :  { %v1690_v47 = vmul.f32 0.015625, %v1680_v5 }
 0x324   :  { %v6930_v22 = vsub.f32 %v1657_v62, %v1690_v47 }
 0x326   :  { %v1706_v14 = vmul.f32 %v6930_v22, %v6930_v22 }
 0x328   :  { %v1726_v62 = vsel %vm1659_vm4, %v1706_v14, 0.0 }
 0x329   :  { %1724 = vadd.xlane.f32.xlu0 %v1723_v55  ;;  %v1683_v10 = vpop.xlane.xlu0 %1682  ;;  %v1668_v56 = vpop.xlane.xlu2 %1667 }
 0x32a   :  { %v1686_v16 = vmul.f32 0.015625, %v1668_v56  ;;  %v1691_v19 = vmul.f32 0.015625, %v1683_v10 }
 0x32c   :  { %v6933_v15 = vsub.f32 %v1653_v59, %v1686_v16  ;;  %v6939_v30 = vsub.f32 %v1658_v48, %v1691_v19 }
 0x32e   :  { %v1702_v57 = vmul.f32 %v6933_v15, %v6933_v15  ;;  %v1707_v46 = vmul.f32 %v6939_v30, %v6939_v30 }
 0x330   :  { %v1714_v1 = vsel %vm1659_vm4, %v1702_v57, 0.0  ;;  %v1729_v17 = vsel %vm1659_vm4, %v1707_v46, 0.0 }
 0x331   :  { %v1671_v9 = vpop.xlane.xlu0 %1670  ;;  %1727 = vadd.xlane.f32.xlu0 %v1726_v62  ;;  %1715 = vadd.xlane.f32.xlu1 %v1714_v1  ;;  %v1665_v44 = vpop.xlane.xlu2 %1664 }
 0x332   :  { %v1687_v20 = vmul.f32 0.015625, %v1671_v9  ;;  %v1685_v39 = vmul.f32 0.015625, %v1665_v44 }
 0x334   :  { %v6943_v59 = vsub.f32 %v1654_v60, %v1687_v20  ;;  %v6952_v36 = vsub.f32 %v1652_v25, %v1685_v39  ;;  %v1704_v60 = vmul.f32 %v6950_v52, %v6950_v52  ;;  %v936_v25 = vld [vmem:[%s8137_s7 + $0xa0] sm:$0xff] }
 0x336   :  { %v1703_v48 = vmul.f32 %v6943_v59, %v6943_v59  ;;  %v1701_v3 = vmul.f32 %v6952_v36, %v6952_v36  ;;  %v1720_v8 = vsel %vm1659_vm4, %v1704_v60, 0.0 }
 0x338   :  { %v1717_v50 = vsel %vm1659_vm4, %v1703_v48, 0.0  ;;  %v1711_v38 = vsel %vm1659_vm4, %v1701_v3, 0.0 }
 0x339   :  { %1718 = vadd.xlane.f32.xlu2 %v1717_v50  ;;  %1730 = vadd.xlane.f32.xlu1 %v1729_v17 }
 0x341   :  { %1721 = vadd.xlane.f32.xlu2 %v1720_v8  ;;  %1712 = vadd.xlane.f32.xlu1 %v1711_v38 }
 0x345   :  { %1921 = vperm.xlu0 %4994, %v939_v0  }
 0x34d   :  { %1906 = vperm.xlu0 %4994, %v936_v25  }
 0x359   :  { %1911 = vperm.xlu2 %4996, %v937_v29  }
 0x35a   :  { %1916 = vperm.xlu1 %4995, %v938_v53  }
 0x394   :  { %v1710_v12 = vpop.xlane.xlu0 %1709 }
 0x395   :  { %v1732_v10 = vmul.f32 0.015625, %v1710_v12 }
 0x397   :  { %v6979_v14 = vadd.f32 1e-05, %v1732_v10 }
 0x39c   :  { %v1725_v6 = vpop.xlane.xlu0 %1724 }
 0x39d   :  { %v1737_v35 = vmul.f32 0.015625, %v1725_v6 }
 0x39f   :  { %v6974_v5 = vadd.f32 1e-05, %v1737_v35 }
 0x3a1   :  { %5013 = vrsqrt.f32 %v6974_v5  ;;  %vm1804_vm9 = vweird.f32 %v6974_v5 }
 0x3a4   :  { %v1716_v47 = vpop.xlane.xlu1 %1715  ;;  %v1728_v56 = vpop.xlane.xlu0 %1727 }
 0x3a5   :  { %v1734_v11 = vmul.f32 0.015625, %v1716_v47  ;;  %v1738_v19 = vmul.f32 0.015625, %v1728_v56 }
 0x3a7   :  { %v1742_v55 = vadd.f32 1e-05, %v1734_v11  ;;  %v6977_v16 = vpop.eup %5013  ;;  %v6983_v20 = vadd.f32 1e-05, %v1738_v19  ;;  %v926_v19 = vld [vmem:[%s8137_s7 + $0x50] sm:$0xff] }
 0x3a8   :  { %v1799_v1 = vmul.f32 %v6977_v16, %v6974_v5  ;;  %vm1805_vm8 = vweird.f32 %v6977_v16 }
 0x3a9   :  { %5015 = vrsqrt.f32 %v1742_v55  ;;  %vm1774_vm6 = vweird.f32 %v1742_v55  ;;  %vm1806_vm11 = vmor %vm1804_vm9, %vm1805_vm8  ;;  %vm1754_vm8 = vweird.f32 %v6979_v14 }
 0x3aa   :  { %5017 = vrsqrt.f32 %v6979_v14  ;;  %v1800_v48 = vmul.f32 %v6977_v16, %v1799_v1 }
 0x3ac   :  { %v1731_v57 = vpop.xlane.xlu1 %1730  ;;  %v1719_v62 = vpop.xlane.xlu2 %1718  ;;  %v1801_v3 = vmul.f32 0.5, %v1800_v48 }
 0x3ad   :  { %v1739_v9 = vmul.f32 0.015625, %v1731_v57  ;;  %v1735_v44 = vmul.f32 0.015625, %v1719_v62 }
 0x3ae   :  { %v1802_v47 = vsub.f32 1.5, %v1801_v3 }
 0x3af   :  { %v6985_v23 = vadd.f32 1e-05, %v1739_v9  ;;  %v1743_v39 = vadd.f32 1e-05, %v1735_v44  ;;  %v5016_v46 = vpop.eup %5015 }
 0x3b0   :  { %v1769_v50 = vmul.f32 %v5016_v46, %v1742_v55  ;;  %v6991_v0 = vpop.eup %5017  ;;  %vm1775_vm5 = vweird.f32 %v5016_v46 }
 0x3b1   :  { %5019 = vrsqrt.f32 %v6985_v23  ;;  %v1749_v62 = vmul.f32 %v6991_v0, %v6979_v14  ;;  %vm1776_vm7 = vmor %vm1774_vm6, %vm1775_vm5  ;;  %vm1784_vm12 = vweird.f32 %v1743_v39  ;;  %vm1824_vm15 = vweird.f32 %v6985_v23 }
 0x3b2   :  { %5021 = vrsqrt.f32 %v1743_v39  ;;  %v1770_v17 = vmul.f32 %v5016_v46, %v1769_v50  ;;  %vm1755_vm6 = vweird.f32 %v6991_v0 }
 0x3b3   :  { %5023 = vrsqrt.f32 %v6983_v20  ;;  %vm1756_vm9 = vmor %vm1754_vm8, %vm1755_vm6 }
 0x3b4   :  { %v1722_v60 = vpop.xlane.xlu2 %1721  ;;  %v1771_v8 = vmul.f32 0.5, %v1770_v17  ;;  %v1713_v10 = vpop.xlane.xlu1 %1712 }
 0x3b5   :  { %v1736_v38 = vmul.f32 0.015625, %v1722_v60  ;;  %v1733_v55 = vmul.f32 0.015625, %v1713_v10  ;;  %v1803_v60 = vmul.f32 %v6977_v16, %v1802_v47  ;;  %v929_v47 = vld [vmem:[%s8137_s7 + $0x68] sm:$0xff]  ;;  %v927_v10 = vld [vmem:[%s8137_s7 + $0x58] sm:$0xff] }
 0x3b6   :  { %v1772_v29 = vsub.f32 1.5, %v1771_v8 }
 0x3b7   :  { %v6993_v25 = vpop.eup %5019  ;;  %v6995_v53 = vadd.f32 1e-05, %v1736_v38  ;;  %v1750_v38 = vmul.f32 %v6991_v0, %v1749_v62  ;;  %v1807_v5 = vsel %vm1806_vm11, %v6977_v16, %v1803_v60  ;;  %v928_v60 = vld [vmem:[%s8137_s7 + $0x60] sm:$0xff] }
 0x3b8   :  { %v5022_v12 = vpop.eup %5021  ;;  %v1819_v6 = vmul.f32 %v6993_v25, %v6985_v23  ;;  %v1773_v57 = vmul.f32 %v5016_v46, %v1772_v29  ;;  %v1833_v62 = vmul.f32 %v1807_v5, %v929_v47  ;;  %vm1825_vm14 = vweird.f32 %v6993_v25  ;;  %v924_v5 = vld [vmem:[%s8137_s7 + $0x40] sm:$0xff] }
 0x3b9   :  { %v6999_v35 = vpop.eup %5023  ;;  %v1779_v11 = vmul.f32 %v5022_v12, %v1743_v39  ;;  %5025 = vrsqrt.f32 %v6995_v53  ;;  %vm1785_vm10 = vweird.f32 %v5022_v12  ;;  %v1751_v39 = vmul.f32 0.5, %v1750_v38  ;;  %vm1826_vm2 = vmor %vm1824_vm15, %vm1825_vm14 }
 0x3ba   :  { %v1820_v56 = vmul.f32 %v6993_v25, %v1819_v6  ;;  %v1809_v9 = vmul.f32 %v6999_v35, %v6983_v20  ;;  %v1777_v44 = vsel %vm1776_vm7, %v5016_v46, %v1773_v57  ;;  %v7015_v6 = vadd.f32 1e-05, %v1733_v55  ;;  %vm1786_vm13 = vmor %vm1784_vm12, %vm1785_vm10 }
 0x3bb   :  { %v1780_v1 = vmul.f32 %v5022_v12, %v1779_v11  ;;  %v1830_v17 = vmul.f32 %v1777_v44, %v926_v19  ;;  %vm1794_vm3 = vweird.f32 %v6995_v53  ;;  %vm1815_vm7 = vweird.f32 %v6999_v35 }
 0x3bc   :  { %v1821_v48 = vmul.f32 0.5, %v1820_v56  ;;  %v1810_v29 = vmul.f32 %v6999_v35, %v1809_v9  ;;  %5027 = vrsqrt.f32 %v7015_v6  ;;  %vm1814_vm10 = vweird.f32 %v6983_v20 }
 0x3bd   :  { %v1781_v50 = vmul.f32 0.5, %v1780_v1  ;;  %1848 = vperm.xlu1 %4995, %v1830_v17   ;;  %vm1816_vm11 = vmor %vm1814_vm10, %vm1815_vm7 }
 0x3be   :  { %v1822_v46 = vsub.f32 1.5, %v1821_v48  ;;  %v1811_v9 = vmul.f32 0.5, %v1810_v29  ;;  %v1752_v48 = vsub.f32 1.5, %v1751_v39 }
 0x3bf   :  { %v1782_v3 = vsub.f32 1.5, %v1781_v50  ;;  %v5026_v8 = vpop.eup %5025  ;;  %v931_v50 = vld [vmem:[%s8137_s7 + $0x78] sm:$0xff] }
 0x3c0   :  { %v1789_v11 = vmul.f32 %v5026_v8, %v6995_v53  ;;  %v1823_v44 = vmul.f32 %v6993_v25, %v1822_v46  ;;  %vm1795_vm0 = vweird.f32 %v5026_v8  ;;  %v935_v53 = vld [vmem:[%s8137_s7 + $0x98] sm:$0xff] }
 0x3c1   :  { %v1783_v56 = vmul.f32 %v5022_v12, %v1782_v3  ;;  %vm1796_vm5 = vmor %vm1794_vm3, %vm1795_vm0 }
 0x3c2   :  { %v1790_v19 = vmul.f32 %v5026_v8, %v1789_v11  ;;  %v1827_v17 = vsel %vm1826_vm2, %v6993_v25, %v1823_v44  ;;  %v5028_v23 = vpop.eup %5027  ;;  %v1753_v11 = vmul.f32 %v6991_v0, %v1752_v48 }
 0x3c3   :  { %v1787_v57 = vsel %vm1786_vm13, %v5022_v12, %v1783_v56  ;;  %v1812_v12 = vsub.f32 1.5, %v1811_v9  ;;  %v1835_v29 = vmul.f32 %v1827_v17, %v931_v50  ;;  %v1759_v25 = vmul.f32 %v5028_v23, %v7015_v6  ;;  %v930_v56 = vld [vmem:[%s8137_s7 + $0x70] sm:$0xff]  ;;  %v1922_v50 = vpop.permute.xlu0 %1921  ;;  %v1912_v17 = vpop.permute.xlu2 %1911 }
 0x3c4   :  { %v1831_v1 = vmul.f32 %v1787_v57, %v927_v10  ;;  %v1791_v55 = vmul.f32 0.5, %v1790_v19  ;;  %v1757_v10 = vsel %vm1756_vm9, %v6991_v0, %v1753_v11  ;;  %v932_v19 = vld [vmem:[%s8137_s7 + $0x80] sm:$0xff]  ;;  %v933_v0 = vld [vmem:[%s8137_s7 + $0x88] sm:$0xff]  ;;  %vm1765_vm12 = vweird.f32 %v5028_v23  ;;  %vm7130_vm9 = vmpackc.low %vm1659_vm4, %vm1659_vm4 }
 0x3c5   :  { %1863 = vperm.xlu1 %4995, %v1833_v62   ;;  %v1813_v47 = vmul.f32 %v6999_v35, %v1812_v12  ;;  %v1828_v20 = vmul.f32 %v1757_v10, %v924_v5  ;;  %vm1764_vm13 = vweird.f32 %v7015_v6  ;;  %v1958_v12 = vld [vmem:[%s8137_s7 + $0xd0] sm:$0xff]  ;;  %v1957_v6 = vld [vmem:[%s8137_s7 + $0xc8] sm:$0xff] }
 0x3c6   :  { %1853 = vperm.xlu0 %4994, %v1831_v1   ;;  %v1792_v16 = vsub.f32 1.5, %v1791_v55  ;;  %v934_v1 = vld [vmem:[%s8137_s7 + $0x90] sm:$0xff]  ;;  %vm1766_vm14 = vmor %vm1764_vm13, %vm1765_vm12  ;;  %v925_v55 = vld [vmem:[%s8137_s7 + $0x48] sm:$0xff] }
 0x3c7   :  { %v1817_v14 = vsel %vm1816_vm11, %v6999_v35, %v1813_v47  ;;  %v1959_v35 = vld [vmem:[%s8137_s7 + $0xd8] sm:$0xff] }
 0x3c8   :  { %v1793_v3 = vmul.f32 %v5026_v8, %v1792_v16  ;;  %v1834_v57 = vmul.f32 %v1817_v14, %v930_v56  ;;  %v1956_v16 = vld [vmem:[%s8137_s7 + $0xc0] sm:$0xff] }
 0x3ca   :  { %v1797_v38 = vsel %vm1796_vm5, %v5026_v8, %v1793_v3  ;;  %v1760_v8 = vmul.f32 %v5028_v23, %v1759_v25 }
 0x3cb   :  { %v1832_v46 = vmul.f32 %v1797_v38, %v928_v60 }
 0x3cc   :  { %v1761_v39 = vmul.f32 0.5, %v1760_v8  ;;  %v1917_v60 = vpop.permute.xlu1 %1916 }
 0x3cd   :  { %1858 = vperm.xlu2 %4996, %v1832_v46   ;;  %1901 = vperm.xlu1 %4995, %v935_v53  }
 0x3ce   :  { %1873 = vperm.xlu0 %4994, %v1835_v29   ;;  %v1762_v62 = vsub.f32 1.5, %v1761_v39 }
 0x3d0   :  { %v1763_v9 = vmul.f32 %v5028_v23, %v1762_v62 }
 0x3d2   :  { %v1767_v44 = vsel %vm1766_vm14, %v5028_v23, %v1763_v9  ;;  %v1907_v23 = vpop.permute.xlu0 %1906 }
 0x3d3   :  { %v1829_v48 = vmul.f32 %v1767_v44, %v925_v55 }
 0x3d5   :  { %1868 = vperm.xlu2 %4996, %v1834_v57   ;;  %1886 = vperm.xlu1 %4995, %v932_v19  }
 0x3d6   :  { %1838 = vperm.xlu0 %4994, %v1828_v20  }
 0x3dd   :  { %1896 = vperm.xlu2 %4996, %v934_v1   ;;  %2233 = vperm.xlu1 %4995, %v1959_v35  }
 0x3de   :  { %1891 = vperm.xlu0 %4994, %v933_v0  }
 0x3e5   :  { %1843 = vperm.xlu2 %4996, %v1829_v48  }
 0x3e6   :  { %2218 = vperm.xlu0 %4994, %v1956_v16  }
 0x3ed   :  { %2228 = vperm.xlu2 %4996, %v1958_v12  }
 0x3f5   :  { %2223 = vperm.xlu2 %4996, %v1957_v6  }
 0x427   :  { %v1859_v3 = vpop.permute.xlu2 %1858 }
 0x428   :  { %v1880_v47 = vmul.f32 %v1859_v3, %v6950_v52 }
 0x42a   :  { %v1928_v20 = vadd.f32 %v1907_v23, %v1880_v47 }
 0x42c   :  { %v1944_v55 = vmul.f32 0.2, %v1928_v20  ;;  %vm1936_vm3 = vcmp.gt.f32.partialorder %v1928_v20, 0.0 }
 0x42e   :  { %v1952_v12 = vsel %vm1936_vm3, %v1928_v20, %v1944_v55 }
 0x42f   :  { %v1849_v38 = vpop.permute.xlu1 %1848  ;;  %v1869_v53 = vpop.permute.xlu2 %1868 }
 0x430   :  { %v1882_v25 = vmul.f32 %v1869_v53, %v6930_v22  ;;  %v1878_v0 = vmul.f32 %v1849_v38, %v6933_v15 }
 0x432   :  { %v1930_v8 = vadd.f32 %v1917_v60, %v1882_v25 }
 0x434   :  { %v1946_v62 = vmul.f32 0.2, %v1930_v8  ;;  %vm1938_vm15 = vcmp.gt.f32.partialorder %v1930_v8, 0.0 }
 0x436   :  { %v1954_v35 = vsel %vm1938_vm15, %v1930_v8, %v1946_v62 }
 0x437   :  { %v1864_v46 = vpop.permute.xlu1 %1863  ;;  %v1897_v14 = vpop.permute.xlu2 %1896 }
 0x438   :  { %v1854_v29 = vpop.permute.xlu0 %1853  ;;  %v1881_v11 = vmul.f32 %v1864_v46, %v6925_v41  ;;  %v1926_v52 = vadd.f32 %v1897_v14, %v1878_v0 }
 0x439   :  { %v1879_v57 = vmul.f32 %v1854_v29, %v6943_v59 }
 0x43a   :  { %v1929_v10 = vadd.f32 %v1912_v17, %v1881_v11  ;;  %v1942_v15 = vmul.f32 0.2, %v1926_v52  ;;  %vm1934_vm6 = vcmp.gt.f32.partialorder %v1926_v52, 0.0 }
 0x43c   :  { %v1945_v1 = vmul.f32 0.2, %v1929_v10  ;;  %vm1937_vm2 = vcmp.gt.f32.partialorder %v1929_v10, 0.0  ;;  %v1950_v38 = vsel %vm1934_vm6, %v1926_v52, %v1942_v15 }
 0x43e   :  { %v1953_v48 = vsel %vm1937_vm2, %v1929_v10, %v1945_v1 }
 0x43f   :  { %v1902_v19 = vpop.permute.xlu1 %1901  ;;  %v1844_v6 = vpop.permute.xlu2 %1843  ;;  %v1986_v17 = vpack.c.bf16 %v1953_v48, %v1952_v12  ;;  %v8172_v48 = vld [vmem:[#allocation6_spill] sm:$0xff]  ;;  %v8173_v12 = vld [vmem:[#allocation7_spill] sm:$0xff] }
 0x440   :  { %v1874_v5 = vpop.permute.xlu0 %1873  ;;  %v1927_v22 = vadd.f32 %v1902_v19, %v1879_v57  ;;  %v1877_v23 = vmul.f32 %v1844_v6, %v6952_v36  ;;  %v4881_v36 = vld [vmem:[%s8134_s4 + $0x8] sm:$0xff]  ;;  %v8174_v6 = vld [vmem:[#allocation8_spill] sm:$0xff] }
 0x441   :  { %v1883_v56 = vmul.f32 %v1874_v5, %v6939_v30  ;;  %v4880_v5 = vld [vmem:[%s8134_s4] sm:$0xff] }
 0x442   :  { %v1943_v16 = vmul.f32 0.2, %v1927_v22  ;;  %vm1935_vm5 = vcmp.gt.f32.partialorder %v1927_v22, 0.0 }
 0x443   :  { %v1931_v39 = vadd.f32 %v1922_v50, %v1883_v56 }
 0x444   :  { %v1951_v3 = vsel %vm1935_vm5, %v1927_v22, %v1943_v16 }
 0x445   :  { %vm1939_vm0 = vcmp.gt.f32.partialorder %v1931_v39, 0.0  ;;  %v1947_v41 = vmul.f32 0.2, %v1931_v39  ;;  %v1985_v29 = vpack.c.bf16 %v1951_v3, %v1950_v38  ;;  %v8175_v3 = vld [vmem:[#allocation9_spill] sm:$0xff] }
 0x447   :  { %v1955_v9 = vsel %vm1939_vm0, %v1931_v39, %v1947_v41  ;;  %v1887_v50 = vpop.permute.xlu1 %1886 }
 0x448   :  { %v1839_v30 = vpop.permute.xlu0 %1838  ;;  %v1987_v44 = vpack.c.bf16 %v1955_v9, %v1954_v35 }
 0x449   :  { %v1876_v59 = vmul.f32 %v1839_v30, %v6921_v28  ;;  %v2101_v30 = vand.u32 31, %v6444_v37 }
 0x44a   :  { %2056 = vmatpush.bf16.msrb.mxu2 %v1987_v44 }
 0x44b   :  { %v1924_v60 = vadd.f32 %v1887_v50, %v1876_v59  ;;  %vm7164_vm10 = vcmp.eq.s32.totalorder %v2101_v30, 31 }
 0x44d   :  { %v1940_v25 = vmul.f32 0.2, %v1924_v60  ;;  %vm1932_vm7 = vcmp.gt.f32.partialorder %v1924_v60, 0.0 }
 0x44e   :  { %2057 = vmatpush.bf16.msrb.mxu2 %v1986_v17 }
 0x44f   :  { %v1948_v11 = vsel %vm1932_vm7, %v1924_v60, %v1940_v25  ;;  %v8177_v25 = vld [vmem:[#allocation11_spill] sm:$0xff] }
 0x450   :  { %v1892_v53 = vpop.permute.xlu0 %1891 }
 0x451   :  { %v1925_v46 = vadd.f32 %v1892_v53, %v1877_v23 }
 0x452   :  { %2058 = vmatpush.bf16.msrb.mxu2 %v1985_v29 }
 0x453   :  { %v1941_v28 = vmul.f32 0.2, %v1925_v46  ;;  %vm1933_vm8 = vcmp.gt.f32.partialorder %v1925_v46, 0.0 }
 0x455   :  { %v1949_v47 = vsel %vm1933_vm8, %v1925_v46, %v1941_v28  ;;  %v8176_v46 = vld [vmem:[#allocation10_spill] sm:$0xff]  ;;  %v8178_v28 = vld [vmem:[#allocation12_spill] sm:$0xff] }
 0x456   :  { %v1984_v8 = vpack.c.bf16 %v1949_v47, %v1948_v11  ;;  %v8179_v11 = vld [vmem:[#allocation13_spill] sm:$0xff] }
 0x458   :  { %2059 = vmatpush.bf16.msrb.mxu2 %v1984_v8 }
 0x45b   :  { %4211 = vmatmul.msk.bf16.vlgmr.msrb.gmra.mxu2 %vm1659_vm4, %v4880_v5 }
 0x45c   :  { %2624 = vmatpush.bf16.msra.mxu2 %v6579_v32  ;;  %v4882_v32 = vld [vmem:[%s8134_s4 + $0x10] sm:$0xff] }
 0x460   :  { %2625 = vmatpush.bf16.msra.mxu2 %v6599_v42  ;;  %v4883_v42 = vld [vmem:[%s8134_s4 + $0x18] sm:$0xff] }
 0x464   :  { %2626 = vmatpush.bf16.msra.mxu2 %v6620_v49  ;;  %v4884_v49 = vld [vmem:[%s8134_s4 + $0x20] sm:$0xff] }
 0x468   :  { %2627 = vmatpush.bf16.msra.mxu2 %v6638_v34  ;;  %v4885_v34 = vld [vmem:[%s8134_s4 + $0x28] sm:$0xff] }
 0x46b   :  { %4212 = vmatmul.msk.bf16.gmra.mxu2 %vm1659_vm4, %v4881_v36 }
 0x46c   :  { %2628 = vmatpush.bf16.msra.mxu2 %v6656_v21  ;;  %v4886_v21 = vld [vmem:[%s8134_s4 + $0x30] sm:$0xff] }
 0x470   :  { %2629 = vmatpush.bf16.msra.mxu2 %v6676_v18  ;;  %v4887_v18 = vld [vmem:[%s8134_s4 + $0x38] sm:$0xff] }
 0x474   :  { %2630 = vmatpush.bf16.msra.mxu2 %v6697_v24 }
 0x478   :  { %2631 = vmatpush.bf16.msra.mxu2 %v6715_v13 }
 0x47b   :  { %4213 = vmatmul.msk.bf16.gmra.mxu2 %vm1659_vm4, %v4882_v32 }
 0x48b   :  { %4214 = vmatmul.msk.bf16.gmra.mxu2 %vm1659_vm4, %v4883_v42 }
 0x49b   :  { %4215 = vmatmul.msk.bf16.gmra.mxu2 %vm1659_vm4, %v4884_v49 }
 0x4ab   :  { %4216 = vmatmul.msk.bf16.gmra.mxu2 %vm1659_vm4, %v4885_v34 }
 0x4bb   :  { %4217 = vmatmul.msk.bf16.gmra.mxu2 %vm1659_vm4, %v4886_v21 }
 0x4cb   :  { %4218 = vmatmul.msk.bf16.gmra.mxu2 %vm1659_vm4, %v4887_v18  ;;  %vm7158_vm4 = vcmp.eq.s32.totalorder %v2101_v30, 0 }
 0x4de   :  { %v2061_v24 = vpop.f32.mrf.mxu2 }
 0x4e6   :  { %v2063_v13 = vpop.f32.mrf.mxu2 }
 0x4ee   :  { %v2066_v10 = vpop.f32.mrf.mxu2 }
 0x4ef   :  { %v2114_v17 = vsel %vm7158_vm4, 0.0, %v2066_v10 }
 0x4f6   :  { %v2068_v56 = vpop.f32.mrf.mxu2 }
 0x4f7   :  { %v2115_v50 = vsel %vm7158_vm4, 0.0, %v2068_v56  ;;  %v2219_v56 = vpop.permute.xlu0 %2218 }
 0x4f8   :  { %v4241_v23 = vpack.c.bf16 %v2115_v50, %v2114_v17 }
 0x4fe   :  { %v2071_v14 = vpop.f32.mrf.mxu2 }
 0x506   :  { %v2073_v19 = vpop.f32.mrf.mxu2 }
 0x507   :  { %v4220_v57 = vpack.c.bf16 %v2073_v19, %v2071_v14 }
 0x509   :  { %4221 = vmatmul.msk.bf16.vlgmr.msrb.gmra.mxu3 %vm7130_vm9, %v4220_v57 }
 0x50a   :  { %2197 = vmatpush.bf16.msrb.mxu3 %v6586_v27 }
 0x50e   :  { %v2076_v39 = vpop.f32.mrf.mxu2  ;;  %2198 = vmatpush.bf16.msrb.mxu3 %v6607_v43 }
 0x512   :  { %2199 = vmatpush.bf16.msrb.mxu3 %v6625_v51 }
 0x516   :  { %v2078_v62 = vpop.f32.mrf.mxu2  ;;  %2200 = vmatpush.bf16.msrb.mxu3 %v6643_v63 }
 0x517   :  { %v4223_v0 = vpack.c.bf16 %v2078_v62, %v2076_v39 }
 0x519   :  { %4224 = vmatmul.msk.bf16.gmra.mxu3 %vm7130_vm9, %v4223_v0  ;;  %v2229_v0 = vpop.permute.xlu2 %2228 }
 0x51a   :  { %2201 = vmatpush.bf16.msrb.mxu3 %v6663_v2 }
 0x51e   :  { %v2081_v22 = vpop.f32.mrf.mxu2  ;;  %2202 = vmatpush.bf16.msrb.mxu3 %v6684_v54 }
 0x522   :  { %2203 = vmatpush.bf16.msrb.mxu3 %v6702_v7 }
 0x526   :  { %v2083_v41 = vpop.f32.mrf.mxu2  ;;  %2204 = vmatpush.bf16.msrb.mxu3 %v6720_v4 }
 0x527   :  { %v4226_v1 = vpack.c.bf16 %v2083_v41, %v2081_v22 }
 0x529   :  { %4227 = vmatmul.msk.bf16.vlgmr.msra.gmra.mxu3 %vm7130_vm9, %v4226_v1 }
 0x52a   :  { %2610 = vmatpush.bf16.msra.mxu3 %v6468_v31 }
 0x52e   :  { %v2086_v52 = vpop.f32.mrf.mxu2  ;;  %2611 = vmatpush.bf16.msra.mxu3 %v6477_v40  ;;  %v2113_v40 = vsel %vm7158_vm4, 0.0, %v2063_v13 }
 0x532   :  { %2612 = vmatpush.bf16.msra.mxu3 %v6489_v61 }
 0x536   :  { %v2088_v35 = vpop.f32.mrf.mxu2  ;;  %2613 = vmatpush.bf16.msra.mxu3 %v6498_v45  ;;  %v2112_v45 = vsel %vm7158_vm4, 0.0, %v2061_v24 }
 0x537   :  { %v4229_v9 = vpack.c.bf16 %v2088_v35, %v2086_v52  ;;  %v4238_v44 = vpack.c.bf16 %v2113_v40, %v2112_v45  ;;  %v2234_v45 = vpop.permute.xlu1 %2233 }
 0x539   :  { %4230 = vmatmul.msk.bf16.gmra.mxu3 %vm7130_vm9, %v4229_v9 }
 0x53a   :  { %2614 = vmatpush.bf16.msra.mxu3 %v6513_v33 }
 0x53e   :  { %v2091_v55 = vpop.f32.mrf.mxu2  ;;  %2615 = vmatpush.bf16.msra.mxu3 %v6522_v26  ;;  %v8171_v26 = vld [vmem:[#allocation5_spill] sm:$0xff] }
 0x542   :  { %2616 = vmatpush.bf16.msra.mxu3 %v6534_v58  ;;  %v2105_v58 = vsel %vm7164_vm10, 0.0, %v2091_v55 }
 0x546   :  { %v2093_v33 = vpop.f32.mrf.mxu2  ;;  %2617 = vmatpush.bf16.msra.mxu3 %v8171_v26 }
 0x547   :  { %v2106_v16 = vsel %vm7164_vm10, 0.0, %v2093_v33  ;;  %v2224_v33 = vpop.permute.xlu2 %2223 }
 0x548   :  { %v4232_v59 = vpack.c.bf16 %v2106_v16, %v2105_v58 }
 0x549   :  { %4239 = vmatmul.msk.bf16.vlgmr.msrb.gmra.mxu3 %vm7130_vm9, %v4238_v44 }
 0x54a   :  { %4233 = vmatmul.msk.bf16.vlgmr.msra.gmra.mxu1 %vm7130_vm9, %v4232_v59  ;;  %2638 = vmatpush.bf16.msrb.mxu3 %v8172_v48 }
 0x54e   :  { %v2096_v15 = vpop.f32.mrf.mxu2  ;;  %2639 = vmatpush.bf16.msrb.mxu3 %v8173_v12 }
 0x54f   :  { %v2107_v38 = vsel %vm7164_vm10, 0.0, %v2096_v15 }
 0x552   :  { %2640 = vmatpush.bf16.msrb.mxu3 %v8174_v6 }
 0x556   :  { %v2098_v60 = vpop.f32.mrf.mxu2  ;;  %2641 = vmatpush.bf16.msrb.mxu3 %v8175_v3 }
 0x557   :  { %v2108_v53 = vsel %vm7164_vm10, 0.0, %v2098_v60 }
 0x558   :  { %v4235_v29 = vpack.c.bf16 %v2108_v53, %v2107_v38 }
 0x559   :  { %4242 = vmatmul.msk.bf16.gmra.mxu3 %vm7130_vm9, %v4241_v23 }
 0x55a   :  { %4236 = vmatmul.msk.bf16.gmra.mxu1 %vm7130_vm9, %v4235_v29  ;;  %2642 = vmatpush.bf16.msrb.mxu3 %v8176_v46 }
 0x55e   :  { %2643 = vmatpush.bf16.msrb.mxu3 %v8177_v25  ;;  %v1966_v25 = vld [vmem:[%s8137_s7 + $0x110] sm:$0xff] }
 0x562   :  { %2644 = vmatpush.bf16.msrb.mxu3 %v8178_v28  ;;  %v1967_v28 = vld [vmem:[%s8137_s7 + $0x118] sm:$0xff] }
 0x566   :  { %2645 = vmatpush.bf16.msrb.mxu3 %v8179_v11 }
 0x58c   :  { %v2149_v47 = vpop.f32.mrf.mxu3 }
 0x594   :  { %v2151_v8 = vpop.f32.mrf.mxu3 }
 0x59c   :  { %v2154_v5 = vpop.f32.mrf.mxu3 }
 0x5a4   :  { %v2156_v36 = vpop.f32.mrf.mxu3 }
 0x5ac   :  { %v2168_v32 = vpop.f32.mrf.mxu3 }
 0x5ad   :  { %v2169_v18 = vadd.f32 %v2168_v32, %v2149_v47 }
 0x5b4   :  { %v2170_v42 = vpop.f32.mrf.mxu3 }
 0x5b5   :  { %v2171_v1 = vadd.f32 %v2170_v42, %v2151_v8 }
 0x5bc   :  { %v2173_v49 = vpop.f32.mrf.mxu3 }
 0x5bd   :  { %v2174_v39 = vadd.f32 %v2173_v49, %v2154_v5 }
 0x5c4   :  { %v2175_v34 = vpop.f32.mrf.mxu3 }
 0x5c5   :  { %v2176_v9 = vadd.f32 %v2175_v34, %v2156_v36 }
 0x5c7   :  { %v2187_v21 = vpop.f32.mrf.mxu1 }
 0x5c8   :  { %v2188_v24 = vadd.f32 %v2187_v21, %v2169_v18 }
 0x5cc   :  { %v2206_v13 = vpop.f32.mrf.mxu3 }
 0x5cd   :  { %v2207_v10 = vadd.f32 %v2206_v13, %v2188_v24  ;;  %v1960_v24 = vld [vmem:[%s8137_s7 + $0xe0] sm:$0xff] }
 0x5cf   :  { %v2189_v14 = vpop.f32.mrf.mxu1  ;;  %v2236_v19 = vadd.f32 %v2219_v56, %v2207_v10 }
 0x5d0   :  { %v2190_v55 = vadd.f32 %v2189_v14, %v2171_v1  ;;  %v1965_v1 = vld [vmem:[%s8137_s7 + $0x108] sm:$0xff] }
 0x5d1   :  { %2240 = vadd.xlane.f32.xlu2 %v2236_v19 }
 0x5d4   :  { %v2208_v20 = vpop.f32.mrf.mxu3 }
 0x5d5   :  { %v2209_v30 = vadd.f32 %v2208_v20, %v2190_v55 }
 0x5d7   :  { %v2192_v57 = vpop.f32.mrf.mxu1  ;;  %v2237_v44 = vadd.f32 %v2224_v33, %v2209_v30 }
 0x5d8   :  { %v2193_v62 = vadd.f32 %v2192_v57, %v2174_v39 }
 0x5dc   :  { %v2211_v22 = vpop.f32.mrf.mxu3 }
 0x5dd   :  { %v2212_v41 = vadd.f32 %v2211_v22, %v2193_v62 }
 0x5df   :  { %v2238_v52 = vadd.f32 %v2229_v0, %v2212_v41  ;;  %v2194_v35 = vpop.f32.mrf.mxu1 }
 0x5e0   :  { %v2195_v31 = vadd.f32 %v2194_v35, %v2176_v9 }
 0x5e1   :  { %2244 = vadd.xlane.f32.xlu1 %v2238_v52 }
 0x5e4   :  { %v2213_v40 = vpop.f32.mrf.mxu3 }
 0x5e5   :  { %v2214_v61 = vadd.f32 %v2213_v40, %v2195_v31  ;;  %v1962_v31 = vld [vmem:[%s8137_s7 + $0xf0] sm:$0xff] }
 0x5e7   :  { %v2239_v26 = vadd.f32 %v2234_v45, %v2214_v61 }
 0x5e9   :  { %2246 = vadd.xlane.f32.xlu0 %v2239_v26  ;;  %2242 = vadd.xlane.f32.xlu1 %v2237_v44 }
 0x644   :  { %v2241_v58 = vpop.xlane.xlu2 %2240 }
 0x645   :  { %v2248_v16 = vmul.f32 0.0078125, %v2241_v58 }
 0x647   :  { %v7199_v59 = vsub.f32 %v2236_v19, %v2248_v16 }
 0x649   :  { %v2256_v48 = vmul.f32 %v7199_v59, %v7199_v59 }
 0x64b   :  { %2260 = vadd.xlane.f32.xlu1 %v2256_v48 }
 0x654   :  { %v2245_v15 = vpop.xlane.xlu1 %2244 }
 0x655   :  { %v2250_v12 = vmul.f32 0.0078125, %v2245_v15 }
 0x657   :  { %v7203_v6 = vsub.f32 %v2238_v52, %v2250_v12  ;;  %v1963_v12 = vld [vmem:[%s8137_s7 + $0xf8] sm:$0xff] }
 0x659   :  { %v2258_v50 = vmul.f32 %v7203_v6, %v7203_v6 }
 0x65b   :  { %2264 = vadd.xlane.f32.xlu0 %v2258_v50 }
 0x65c   :  { %v2247_v17 = vpop.xlane.xlu0 %2246  ;;  %v2243_v60 = vpop.xlane.xlu1 %2242 }
 0x65d   :  { %v2251_v3 = vmul.f32 0.0078125, %v2247_v17  ;;  %v2249_v23 = vmul.f32 0.0078125, %v2243_v60  ;;  %v1964_v17 = vld [vmem:[%s8137_s7 + $0x100] sm:$0xff] }
 0x65f   :  { %v7207_v38 = vsub.f32 %v2239_v26, %v2251_v3  ;;  %v7209_v53 = vsub.f32 %v2237_v44, %v2249_v23 }
 0x661   :  { %v2259_v29 = vmul.f32 %v7207_v38, %v7207_v38  ;;  %v2257_v46 = vmul.f32 %v7209_v53, %v7209_v53 }
 0x663   :  { %2266 = vadd.xlane.f32.xlu2 %v2259_v29  ;;  %2262 = vadd.xlane.f32.xlu0 %v2257_v46  ;;  %v1961_v29 = vld [vmem:[%s8137_s7 + $0xe8] sm:$0xff] }
 0x677   :  { %2356 = vperm.xlu0 %4994, %v1966_v25   ;;  %v2381_v25 = vld [vmem:[%s8137_s7 + $0x128] sm:$0xff] }
 0x67b   :  { %2361 = vperm.xlu2 %4996, %v1967_v28  }
 0x6be   :  { %v2261_v11 = vpop.xlane.xlu1 %2260 }
 0x6bf   :  { %v2268_v47 = vmul.f32 0.0078125, %v2261_v11  ;;  %v2380_v11 = vld [vmem:[%s8137_s7 + $0x120] sm:$0xff] }
 0x6c1   :  { %v2272_v8 = vadd.f32 1e-05, %v2268_v47 }
 0x6c3   :  { %5029 = vrsqrt.f32 %v2272_v8  ;;  %vm2282_vm12 = vweird.f32 %v2272_v8 }
 0x6c9   :  { %v5030_v5 = vpop.eup %5029 }
 0x6ca   :  { %v2277_v36 = vmul.f32 %v5030_v5, %v2272_v8  ;;  %vm2283_vm11 = vweird.f32 %v5030_v5  ;;  %v4862_v8 = vld [vmem:[%s8138_s8 + $0x174] sm:$0xf] }
 0x6cb   :  { %vm2284_vm13 = vmor %vm2282_vm12, %vm2283_vm11 }
 0x6cc   :  { %v2278_v32 = vmul.f32 %v5030_v5, %v2277_v36 }
 0x6ce   :  { %v2279_v42 = vmul.f32 0.5, %v2278_v32  ;;  %v2265_v49 = vpop.xlane.xlu0 %2264 }
 0x6cf   :  { %v2270_v34 = vmul.f32 0.0078125, %v2265_v49 }
 0x6d0   :  { %v2280_v21 = vsub.f32 1.5, %v2279_v42 }
 0x6d1   :  { %v2274_v18 = vadd.f32 1e-05, %v2270_v34 }
 0x6d2   :  { %v2281_v13 = vmul.f32 %v5030_v5, %v2280_v21 }
 0x6d3   :  { %5031 = vrsqrt.f32 %v2274_v18  ;;  %vm2302_vm15 = vweird.f32 %v2274_v18 }
 0x6d4   :  { %v2285_v10 = vsel %vm2284_vm13, %v5030_v5, %v2281_v13  ;;  %v4355_v5 = vld [vmem:[%s8138_s8 + $0x178] sm:$0xf0] }
 0x6d5   :  { %v2316_v56 = vmul.f32 %v2285_v10, %v1960_v24  ;;  %v4358_v36 = vor.u32 %v4862_v8, %v4355_v5  ;;  %v4363_v8 = vld [vmem:[%s8138_s8 + $0x198] sm:$0xf0] }
 0x6d6   :  { %v2263_v14 = vpop.xlane.xlu0 %2262  ;;  %v2267_v19 = vpop.xlane.xlu2 %2266 }
 0x6d7   :  { %v2269_v20 = vmul.f32 0.0078125, %v2263_v14  ;;  %v2271_v57 = vmul.f32 0.0078125, %v2267_v19  ;;  %2322 = vperm.xlu0 %4994, %v2316_v56   ;;  %2694 = vmatpush.bf16.msrb.mxu0 %v4358_v36  ;;  %v4860_v19 = vld [vmem:[%s8138_s8 + $0x164] sm:$0xf] }
 0x6d8   :  { %v4864_v36 = vld [vmem:[%s8138_s8 + $0x184] sm:$0xf] }
 0x6d9   :  { %v5032_v39 = vpop.eup %5031  ;;  %v2273_v62 = vadd.f32 1e-05, %v2269_v20  ;;  %v2275_v0 = vadd.f32 1e-05, %v2271_v57 }
 0x6da   :  { %v2297_v22 = vmul.f32 %v5032_v39, %v2274_v18  ;;  %vm2303_vm14 = vweird.f32 %v5032_v39 }
 0x6db   :  { %5033 = vrsqrt.f32 %v2273_v62  ;;  %vm2304_vm0 = vmor %vm2302_vm15, %vm2303_vm14  ;;  %vm2312_vm3 = vweird.f32 %v2275_v0  ;;  %vm2292_vm7 = vweird.f32 %v2273_v62 }
 0x6dc   :  { %v2298_v41 = vmul.f32 %v5032_v39, %v2297_v22  ;;  %5035 = vrsqrt.f32 %v2275_v0 }
 0x6de   :  { %v2299_v52 = vmul.f32 0.5, %v2298_v41  ;;  %v2362_v47 = vpop.permute.xlu2 %2361 }
 0x6df   :  { %2351 = vperm.xlu0 %4994, %v1965_v1  }
 0x6e0   :  { %v2300_v35 = vsub.f32 1.5, %v2299_v52 }
 0x6e1   :  { %v5034_v9 = vpop.eup %5033 }
 0x6e2   :  { %v5036_v55 = vpop.eup %5035  ;;  %v2287_v30 = vmul.f32 %v5034_v9, %v2273_v62  ;;  %v2301_v40 = vmul.f32 %v5032_v39, %v2300_v35  ;;  %vm2293_vm6 = vweird.f32 %v5034_v9 }
 0x6e3   :  { %v2307_v61 = vmul.f32 %v5036_v55, %v2275_v0  ;;  %vm2313_vm2 = vweird.f32 %v5036_v55  ;;  %vm2294_vm8 = vmor %vm2292_vm7, %vm2293_vm6 }
 0x6e4   :  { %v2288_v45 = vmul.f32 %v5034_v9, %v2287_v30  ;;  %v2305_v33 = vsel %vm2304_vm0, %v5032_v39, %v2301_v40  ;;  %vm2314_vm5 = vmor %vm2312_vm3, %vm2313_vm2  ;;  %v4343_v40 = vld [vmem:[%s8138_s8 + $0x148] sm:$0xf0] }
 0x6e5   :  { %v2308_v26 = vmul.f32 %v5036_v55, %v2307_v61  ;;  %v2318_v44 = vmul.f32 %v2305_v33, %v1962_v31  ;;  %v4888_v31 = vld [vmem:[%s8135_s5] sm:$0xff]  ;;  %v4878_v61 = vld [vmem:[%s8138_s8 + $0x1f4] sm:$0xf] }
 0x6e6   :  { %v2289_v58 = vmul.f32 0.5, %v2288_v45  ;;  %v4387_v45 = vld [vmem:[%s8138_s8 + $0x1f8] sm:$0xf0] }
 0x6e7   :  { %v2309_v16 = vmul.f32 0.5, %v2308_v26  ;;  %2332 = vperm.xlu2 %4996, %v2318_v44   ;;  %v4390_v33 = vor.u32 %v4878_v61, %v4387_v45  ;;  %v4891_v26 = vld [vmem:[%s8135_s5 + $0x18] sm:$0xff]  ;;  %v4816_v45 = vld [vmem:[%s8138_s8 + $0x4] sm:$0xf] }
 0x6e8   :  { %v2290_v15 = vsub.f32 1.5, %v2289_v58  ;;  %v4854_v58 = vld [vmem:[%s8138_s8 + $0x134] sm:$0xf]  ;;  %v4323_v61 = vld [vmem:[%s8138_s8 + $0xf8] sm:$0xf0] }
 0x6e9   :  { %v2310_v48 = vsub.f32 1.5, %v2309_v16  ;;  %v2357_v32 = vpop.permute.xlu0 %2356  ;;  %v4339_v16 = vld [vmem:[%s8138_s8 + $0x138] sm:$0xf0] }
 0x6ea   :  { %v2291_v23 = vmul.f32 %v5034_v9, %v2290_v15  ;;  %v4342_v15 = vor.u32 %v4854_v58, %v4339_v16 }
 0x6eb   :  { %v2311_v50 = vmul.f32 %v5036_v55, %v2310_v48  ;;  %v4874_v48 = vld [vmem:[%s8138_s8 + $0x1d4] sm:$0xf] }
 0x6ec   :  { %v2295_v46 = vsel %vm2294_vm8, %v5034_v9, %v2291_v23  ;;  %v4870_v23 = vld [vmem:[%s8138_s8 + $0x1b4] sm:$0xf] }
 0x6ed   :  { %v2315_v60 = vsel %vm2314_vm5, %v5036_v55, %v2311_v50  ;;  %v2317_v28 = vmul.f32 %v2295_v46, %v1961_v29  ;;  %v4371_v29 = vld [vmem:[%s8138_s8 + $0x1b8] sm:$0xf0] }
 0x6ee   :  { %v2319_v3 = vmul.f32 %v2315_v60, %v1963_v12  ;;  %v4379_v12 = vld [vmem:[%s8138_s8 + $0x1d8] sm:$0xf0]  ;;  %v4375_v60 = vld [vmem:[%s8138_s8 + $0x1c8] sm:$0xf0]  ;;  %v4374_v46 = vor.u32 %v4870_v23, %v4371_v29  ;;  %v4840_v23 = vld [vmem:[%s8138_s8 + $0xc4] sm:$0xf] }
 0x6ef   :  { %2346 = vperm.xlu2 %4996, %v1964_v17   ;;  %v4382_v50 = vor.u32 %v4874_v48, %v4379_v12  ;;  %v4872_v17 = vld [vmem:[%s8138_s8 + $0x1c4] sm:$0xf]  ;;  %v4311_v29 = vld [vmem:[%s8138_s8 + $0xc8] sm:$0xf0] }
 0x6f0   :  { %2337 = vperm.xlu1 %4995, %v2319_v3   ;;  %v4378_v3 = vor.u32 %v4872_v17, %v4375_v60  ;;  %v4844_v48 = vld [vmem:[%s8138_s8 + $0xe4] sm:$0xf]  ;;  %v4315_v17 = vld [vmem:[%s8138_s8 + $0xd8] sm:$0xf0] }
 0x6f7   :  { %2479 = vperm.xlu2 %4996, %v2381_v25   ;;  %v4868_v25 = vld [vmem:[%s8138_s8 + $0x1a4] sm:$0xf] }
 0x6f8   :  { %2327 = vperm.xlu1 %4995, %v2317_v28   ;;  %v4367_v28 = vld [vmem:[%s8138_s8 + $0x1a8] sm:$0xf0] }
 0x700   :  { %2474 = vperm.xlu1 %4995, %v2380_v11   ;;  %v4370_v11 = vor.u32 %v4868_v25, %v4367_v28  ;;  %v4838_v25 = vld [vmem:[%s8138_s8 + $0xb4] sm:$0xf]  ;;  %v4307_v28 = vld [vmem:[%s8138_s8 + $0xb8] sm:$0xf0] }
 0x741   :  { %v2333_v42 = vpop.permute.xlu2 %2332 }
 0x742   :  { %v2342_v49 = vmul.f32 %v2333_v42, %v7203_v6  ;;  %v4351_v6 = vld [vmem:[%s8138_s8 + $0x168] sm:$0xf0] }
 0x744   :  { %v2366_v34 = vadd.f32 %v2357_v32, %v2342_v49  ;;  %v4359_v32 = vld [vmem:[%s8138_s8 + $0x188] sm:$0xf0]  ;;  %v4830_v49 = vld [vmem:[%s8138_s8 + $0x74] sm:$0xf] }
 0x745   :  { %v4362_v42 = vor.u32 %v4864_v36, %v4359_v32  ;;  %v4303_v36 = vld [vmem:[%s8138_s8 + $0xa8] sm:$0xf0] }
 0x746   :  { %v2374_v13 = vmul.f32 0.2, %v2366_v34  ;;  %vm2370_vm9 = vcmp.gt.f32.partialorder %v2366_v34, 0.0 }
 0x748   :  { %v2378_v57 = vsel %vm2370_vm9, %v2366_v34, %v2374_v13  ;;  %v4291_v34 = vld [vmem:[%s8138_s8 + $0x78] sm:$0xf0] }
 0x749   :  { %v2323_v21 = vpop.permute.xlu0 %2322  ;;  %v2347_v20 = vpop.permute.xlu2 %2346 }
 0x74a   :  { %v2340_v10 = vmul.f32 %v2323_v21, %v7199_v59  ;;  %v4294_v21 = vor.u32 %v4830_v49, %v4291_v34  ;;  %v4299_v49 = vld [vmem:[%s8138_s8 + $0x98] sm:$0xf0] }
 0x74c   :  { %v2364_v39 = vadd.f32 %v2347_v20, %v2340_v10  ;;  %2666 = vmatpush.bf16.msrb.mxu2 %v4294_v21  ;;  %v2457_v20 = vand.u32 63, %v6444_v37 }
 0x74e   :  { %v2372_v1 = vmul.f32 0.2, %v2364_v39  ;;  %vm2368_vm10 = vcmp.gt.f32.partialorder %v2364_v39, 0.0  ;;  %vm4988_vm13 = vcmp.ne.s32.totalorder %v2457_v20, 63 }
 0x74f   :  { %vm4393_vm14 = vmpackc.low %vm4988_vm13, %vm4988_vm13 }
 0x750   :  { %v2376_v9 = vsel %vm2368_vm10, %v2364_v39, %v2372_v1  ;;  %v4822_v1 = vld [vmem:[%s8138_s8 + $0x34] sm:$0xf]  ;;  %vm2813_vm10 = vcmask 130048  }
 0x751   :  { %v2352_v41 = vpop.permute.xlu0 %2351 }
 0x762   :  { %v2338_v18 = vpop.permute.xlu1 %2337 }
 0x763   :  { %v2343_v24 = vmul.f32 %v2338_v18, %v7207_v38  ;;  %v4354_v38 = vor.u32 %v4860_v19, %v4351_v6  ;;  %v4828_v18 = vld [vmem:[%s8138_s8 + $0x64] sm:$0xf]  ;;  %v4826_v19 = vld [vmem:[%s8138_s8 + $0x54] sm:$0xf] }
 0x765   :  { %v2367_v56 = vadd.f32 %v2362_v47, %v2343_v24  ;;  %2695 = vmatpush.bf16.msrb.mxu0 %v4354_v38  ;;  %v4866_v47 = vld [vmem:[%s8138_s8 + $0x194] sm:$0xf]  ;;  %v4287_v24 = vld [vmem:[%s8138_s8 + $0x68] sm:$0xf0]  ;;  %v4824_v38 = vld [vmem:[%s8138_s8 + $0x44] sm:$0xf] }
 0x766   :  { %v4366_v5 = vor.u32 %v4866_v47, %v4363_v8  ;;  %v4290_v13 = vor.u32 %v4828_v18, %v4287_v24  ;;  %v4310_v47 = vor.u32 %v4838_v25, %v4307_v28  ;;  %v4832_v18 = vld [vmem:[%s8138_s8 + $0x84] sm:$0xf]  ;;  %v4295_v24 = vld [vmem:[%s8138_s8 + $0x88] sm:$0xf0] }
 0x767   :  { %vm2371_vm4 = vcmp.gt.f32.partialorder %v2367_v56, 0.0  ;;  %v2375_v14 = vmul.f32 0.2, %v2367_v56 }
 0x768   :  { %2667 = vmatpush.bf16.msrb.mxu2 %v4290_v13  ;;  %v4298_v13 = vor.u32 %v4832_v18, %v4295_v24 }
 0x769   :  { %v2379_v62 = vsel %vm2371_vm4, %v2367_v56, %v2375_v14  ;;  %v4852_v56 = vld [vmem:[%s8138_s8 + $0x124] sm:$0xf]  ;;  %v4335_v14 = vld [vmem:[%s8138_s8 + $0x128] sm:$0xf0] }
 0x76a   :  { %v2328_v0 = vpop.permute.xlu1 %2327  ;;  %v2395_v22 = vpack.c.bf16 %v2379_v62, %v2378_v57  ;;  %v4338_v6 = vor.u32 %v4852_v56, %v4335_v14  ;;  %v4283_v57 = vld [vmem:[%s8138_s8 + $0x58] sm:$0xf0] }
 0x76b   :  { %v2341_v59 = vmul.f32 %v2328_v0, %v7209_v53  ;;  %v4889_v53 = vld [vmem:[%s8135_s5 + $0x8] sm:$0xff]  ;;  %v4286_v39 = vor.u32 %v4826_v19, %v4283_v57 }
 0x76c   :  { %2434 = vmatpush.bf16.msrb.mxu1 %v2395_v22  ;;  %v4279_v0 = vld [vmem:[%s8138_s8 + $0x48] sm:$0xf0] }
 0x76d   :  { %v2365_v52 = vadd.f32 %v2352_v41, %v2341_v59  ;;  %2668 = vmatpush.bf16.msrb.mxu2 %v4286_v39  ;;  %v4282_v22 = vor.u32 %v4824_v38, %v4279_v0 }
 0x76f   :  { %vm2369_vm11 = vcmp.gt.f32.partialorder %v2365_v52, 0.0  ;;  %v2373_v35 = vmul.f32 0.2, %v2365_v52 }
 0x771   :  { %v2377_v55 = vsel %vm2369_vm11, %v2365_v52, %v2373_v35  ;;  %2669 = vmatpush.bf16.msrb.mxu2 %v4282_v22  ;;  %v4275_v52 = vld [vmem:[%s8138_s8 + $0x38] sm:$0xf0]  ;;  %vm2862_vm11 = vcmask 1040384  }
 0x772   :  { %v2394_v30 = vpack.c.bf16 %v2377_v55, %v2376_v9  ;;  %v4278_v35 = vor.u32 %v4822_v1, %v4275_v52  ;;  %v4820_v9 = vld [vmem:[%s8138_s8 + $0x24] sm:$0xf]  ;;  %v4271_v55 = vld [vmem:[%s8138_s8 + $0x28] sm:$0xf0] }
 0x774   :  { %2435 = vmatpush.bf16.msrb.mxu1 %v2394_v30  ;;  %v4274_v30 = vor.u32 %v4820_v9, %v4271_v55 }
 0x775   :  { %2670 = vmatpush.bf16.msrb.mxu2 %v4278_v35 }
 0x777   :  { %4259 = vmatmul.msk.bf16.vlgmr.msrb.gmra.mxu1 %vm1190_vm1, %v4888_v31 }
 0x778   :  { %2652 = vmatpush.bf16.msra.mxu1 %v6586_v27  ;;  %v4858_v27 = vld [vmem:[%s8138_s8 + $0x154] sm:$0xf] }
 0x779   :  { %2671 = vmatpush.bf16.msrb.mxu2 %v4274_v30 }
 0x77c   :  { %2653 = vmatpush.bf16.msra.mxu1 %v6607_v43  ;;  %v4347_v43 = vld [vmem:[%s8138_s8 + $0x158] sm:$0xf0] }
 0x780   :  { %2654 = vmatpush.bf16.msra.mxu1 %v6625_v51  ;;  %v4856_v51 = vld [vmem:[%s8138_s8 + $0x144] sm:$0xf] }
 0x784   :  { %2655 = vmatpush.bf16.msra.mxu1 %v6643_v63  ;;  %v4350_v63 = vor.u32 %v4858_v27, %v4347_v43  ;;  %v4267_v27 = vld [vmem:[%s8138_s8 + $0x18] sm:$0xf0] }
 0x786   :  { %2696 = vmatpush.bf16.msrb.mxu0 %v4350_v63  ;;  %v4331_v63 = vld [vmem:[%s8138_s8 + $0x118] sm:$0xf0] }
 0x787   :  { %4260 = vmatmul.msk.bf16.gmra.mxu1 %vm1190_vm1, %v4889_v53  ;;  %v4818_v53 = vld [vmem:[%s8138_s8 + $0x14] sm:$0xf] }
 0x788   :  { %2656 = vmatpush.bf16.msra.mxu1 %v6663_v2  ;;  %v4346_v2 = vor.u32 %v4856_v51, %v4343_v40  ;;  %v4270_v43 = vor.u32 %v4818_v53, %v4267_v27  ;;  %v4850_v51 = vld [vmem:[%s8138_s8 + $0x114] sm:$0xf] }
 0x789   :  { %v4334_v40 = vor.u32 %v4850_v51, %v4331_v63 }
 0x78a   :  { %2697 = vmatpush.bf16.msrb.mxu0 %v4346_v2  ;;  %v4846_v2 = vld [vmem:[%s8138_s8 + $0xf4] sm:$0xf]  ;;  %2672 = vmatpush.bf16.msrb.mxu2 %v4270_v43 }
 0x78b   :  { %v4326_v58 = vor.u32 %v4846_v2, %v4323_v61 }
 0x78c   :  { %2657 = vmatpush.bf16.msra.mxu1 %v6684_v54  ;;  %v4890_v54 = vld [vmem:[%s8135_s5 + $0x10] sm:$0xff]  ;;  %s3688_s5 = sshll.u32 %s5084_s13, 4  ;;  %s3689_s5 = int_to_ptr.vmem [resolvable:$true] %s3688_s5 }
 0x78e   :  { %2698 = vmatpush.bf16.msrb.mxu0 %v4342_v15  ;;  %v4319_v15 = vld [vmem:[%s8138_s8 + $0xe8] sm:$0xf0] }
 0x78f   :  { %v4322_v12 = vor.u32 %v4844_v48, %v4319_v15 }
 0x790   :  { %2658 = vmatpush.bf16.msra.mxu1 %v6702_v7  ;;  %v4876_v7 = vld [vmem:[%s8138_s8 + $0x1e4] sm:$0xf] }
 0x792   :  { %2699 = vmatpush.bf16.msrb.mxu0 %v4338_v6 }
 0x794   :  { %2659 = vmatpush.bf16.msra.mxu1 %v6720_v4  ;;  %v4383_v4 = vld [vmem:[%s8138_s8 + $0x1e8] sm:$0xf0] }
 0x795   :  { %v4386_v44 = vor.u32 %v4876_v7, %v4383_v4  ;;  %v4327_v7 = vld [vmem:[%s8138_s8 + $0x108] sm:$0xf0] }
 0x796   :  { %2700 = vmatpush.bf16.msrb.mxu0 %v4334_v40 }
 0x797   :  { %4261 = vmatmul.msk.bf16.gmra.mxu1 %vm1190_vm1, %v4890_v54 }
 0x798   :  { %2708 = vmatpush.bf16.msrb.mxu1 %v4390_v33  ;;  %v4263_v33 = vld [vmem:[%s8138_s8 + $0x8] sm:$0xf0] }
 0x799   :  { %v4266_v54 = vor.u32 %v4816_v45, %v4263_v33 }
 0x79b   :  { %2673 = vmatpush.bf16.msrb.mxu2 %v4266_v54 }
 0x79c   :  { %2709 = vmatpush.bf16.msrb.mxu1 %v4386_v44 }
 0x7a0   :  { %2710 = vmatpush.bf16.msrb.mxu1 %v4382_v50  ;;  %v4842_v50 = vld [vmem:[%s8138_s8 + $0xd4] sm:$0xf] }
 0x7a4   :  { %2711 = vmatpush.bf16.msrb.mxu1 %v4378_v3  ;;  %v4318_v3 = vor.u32 %v4842_v50, %v4315_v17 }
 0x7a7   :  { %4262 = vmatmul.msk.bf16.gmra.mxu1 %vm1190_vm1, %v4891_v26  ;;  %vm7378_vm1 = vcmp.ne.s32.totalorder %v2457_v20, 0  ;;  %v4848_v26 = vld [vmem:[%s8138_s8 + $0x104] sm:$0xf] }
 0x7a8   :  { %2712 = vmatpush.bf16.msrb.mxu1 %v4374_v46  ;;  %vm4398_vm12 = vmpackc.low %vm7378_vm1, %vm7378_vm1  ;;  %v4330_v4 = vor.u32 %v4848_v26, %v4327_v7  ;;  %v4314_v46 = vor.u32 %v4840_v23, %v4311_v29  ;;  %vm3677_vm1 = vcmask 1041408  }
 0x7aa   :  { %2701 = vmatpush.bf16.msrb.mxu0 %v4330_v4 }
 0x7ac   :  { %2713 = vmatpush.bf16.msrb.mxu1 %v4370_v11 }
 0x7b0   :  { %2714 = vmatpush.bf16.msrb.mxu1 %v4366_v5  ;;  %v4836_v5 = vld [vmem:[%s8138_s8 + $0xa4] sm:$0xf] }
 0x7b1   :  { %v4306_v32 = vor.u32 %v4836_v5, %v4303_v36 }
 0x7b4   :  { %2715 = vmatpush.bf16.msrb.mxu1 %v4362_v42  ;;  %v4834_v42 = vld [vmem:[%s8138_s8 + $0x94] sm:$0xf] }
 0x7b5   :  { %v4302_v21 = vor.u32 %v4834_v42, %v4299_v49 }
 0x7f4   :  { %v2437_v10 = vpop.f32.mrf.mxu1 }
 0x7fc   :  { %v2439_v59 = vpop.f32.mrf.mxu1 }
 0x7fd   :  { %v4399_v41 = vpack.c.bf16 %v2439_v59, %v2437_v10  ;;  %v2475_v59 = vpop.permute.xlu1 %2474 }
 0x7ff   :  { %4400 = vmatmul.msk.bf16.vlgmr.msra.gmra.mxu1 %vm4398_vm12, %v4399_v41 }
 0x804   :  { %v2442_v31 = vpop.f32.mrf.mxu1 }
 0x80c   :  { %v2444_v44 = vpop.f32.mrf.mxu1 }
 0x80d   :  { %v2468_v16 = vpack.c.bf16 %v2444_v44, %v2442_v31  ;;  %v2480_v31 = vpop.permute.xlu2 %2479 }
 0x80f   :  { %2618 = vmatmul.bf16.vlgmr.msra.gmra.mxu3 %v2468_v16  ;;  %4410 = vmatmul.msk.bf16.vlgmr.msrb.gmra.mxu1 %vm4398_vm12, %v4399_v41  ;;  %vm3679_vm12 = vcmask 1043456  }
 0x810   :  { %2680 = vmatpush.bf16.msra.mxu3 %v4326_v58 }
 0x814   :  { %v2447_v60 = vpop.f32.mrf.mxu1  ;;  %2681 = vmatpush.bf16.msra.mxu3 %v4322_v12 }
 0x818   :  { %2682 = vmatpush.bf16.msra.mxu3 %v4318_v3 }
 0x81c   :  { %v2449_v11 = vpop.f32.mrf.mxu1  ;;  %2683 = vmatpush.bf16.msra.mxu3 %v4314_v46 }
 0x81d   :  { %v2469_v8 = vpack.c.bf16 %v2449_v11, %v2447_v60 }
 0x81f   :  { %2632 = vmatmul.bf16.vlgmr.msra.gmra.mxu2 %v2469_v8 }
 0x820   :  { %2684 = vmatpush.bf16.msra.mxu3 %v4310_v47  ;;  %v2384_v47 = vld [vmem:[%s8137_s7 + $0x140] sm:$0xff] }
 0x824   :  { %v2452_v34 = vpop.f32.mrf.mxu1  ;;  %2685 = vmatpush.bf16.msra.mxu3 %v4306_v32 }
 0x828   :  { %2686 = vmatpush.bf16.msra.mxu3 %v4302_v21 }
 0x82c   :  { %v2454_v10 = vpop.f32.mrf.mxu1  ;;  %2687 = vmatpush.bf16.msra.mxu3 %v4298_v13 }
 0x82d   :  { %v4394_v56 = vpack.c.bf16 %v2454_v10, %v2452_v34 }
 0x82f   :  { %4395 = vmatmul.msk.bf16.vlgmr.msrb.gmra.mxu3 %vm4393_vm14, %v4394_v56  ;;  %2674 = vmatmul.bf16.vlgmr.msrb.gmra.mxu2 %v2468_v16 }
 0x830   :  { %4405 = vmatmul.msk.bf16.vlgmr.msrb.gmra.mxu0 %vm4393_vm14, %v4394_v56 }
 0x83f   :  { %2688 = vmatmul.bf16.vlgmr.msra.gmra.mxu3 %v2469_v8 }
 0x87c   :  { %v2661_v57 = vpop.f32.mrf.mxu1 }
 0x884   :  { %v2663_v38 = vpop.f32.mrf.mxu1 }
 0x88c   :  { %v2717_v55 = vpop.f32.mrf.mxu1 }
 0x892   :  { %v2619_v14 = vpop.f32.mrf.mxu3 }
 0x893   :  { %v2620_v37 = vadd.f32 %v2619_v14, %v2475_v59  ;;  %v2382_v14 = vld [vmem:[%s8137_s7 + $0x130] sm:$0xff] }
 0x894   :  { %v2719_v7 = vpop.f32.mrf.mxu1 }
 0x89a   :  { %v2621_v6 = vpop.f32.mrf.mxu3 }
 0x89b   :  { %v2622_v27 = vadd.f32 %v2621_v6, %v2480_v31 }
 0x8a2   :  { %v2633_v19 = vpop.f32.mrf.mxu2 }
 0x8a3   :  { %v2634_v20 = vadd.f32 %v2633_v19, %v2620_v37  ;;  %v2385_v37 = vld [vmem:[%s8137_s7 + $0x148] sm:$0xff] }
 0x8aa   :  { %v2635_v39 = vpop.f32.mrf.mxu2 }
 0x8ab   :  { %v2636_v63 = vadd.f32 %v2635_v39, %v2622_v27 }
 0x8ad   :  { %v2703_v1 = vpop.f32.mrf.mxu0 }
 0x8b2   :  { %v2647_v62 = vpop.f32.mrf.mxu3  ;;  %v2675_v22 = vpop.f32.mrf.mxu2 }
 0x8b3   :  { %v2676_v41 = vadd.f32 %v2675_v22, %v2475_v59  ;;  %v2648_v35 = vadd.f32 %v2647_v62, %v2634_v20 }
 0x8b5   :  { %v2662_v43 = vadd.f32 %v2661_v57, %v2648_v35  ;;  %v2705_v54 = vpop.f32.mrf.mxu0 }
 0x8ba   :  { %v2649_v0 = vpop.f32.mrf.mxu3  ;;  %v2677_v53 = vpop.f32.mrf.mxu2 }
 0x8bb   :  { %v2678_v40 = vadd.f32 %v2677_v53, %v2480_v31  ;;  %v2650_v45 = vadd.f32 %v2649_v0, %v2636_v63  ;;  %v2383_v0 = vld [vmem:[%s8137_s7 + $0x138] sm:$0xff]  ;;  %v4778_v53 = vld [vmem:[%s8139_s9 + $0x2d0] sm:$0xf] }
 0x8bc   :  { %v4959_v31 = vld [vmem:[%s8139_s9 + $0x218] sm:$0xf0]  ;;  %v4670_v63 = vld [vmem:[%s8139_s9 + $0x1f8] sm:$0xf] }
 0x8bd   :  { %v2664_v4 = vadd.f32 %v2663_v38, %v2650_v45  ;;  %v4980_v45 = vld [vmem:[%s8139_s9 + $0x2c0] sm:$0xf0] }
 0x8c2   :  { %v2689_v52 = vpop.f32.mrf.mxu3 }
 0x8c3   :  { %v2690_v9 = vadd.f32 %v2689_v52, %v2676_v41  ;;  %v4694_v41 = vld [vmem:[%s8139_s9 + $0x228] sm:$0xf] }
 0x8c4   :  { %v4790_v52 = vld [vmem:[%s8139_s9 + $0x2e8] sm:$0xf] }
 0x8c5   :  { %v2704_v30 = vadd.f32 %v2703_v1, %v2690_v9  ;;  %v4962_v1 = vld [vmem:[%s8139_s9 + $0x230] sm:$0xf0] }
 0x8c6   :  { %v4695_v35 = vor.u32 %v4962_v1, %v4694_v41  ;;  %v4986_v9 = vld [vmem:[%s8139_s9 + $0x2f0] sm:$0xf0]  ;;  %v4622_v41 = vld [vmem:[%s8139_s9 + $0x198] sm:$0xf]  ;;  %v4944_v1 = vld [vmem:[%s8139_s9 + $0x1a0] sm:$0xf0] }
 0x8c7   :  { %v2718_v51 = vadd.f32 %v2717_v55, %v2704_v30  ;;  %v4791_v55 = vor.u32 %v4986_v9, %v4790_v52  ;;  %v4682_v30 = vld [vmem:[%s8139_s9 + $0x210] sm:$0xf]  ;;  %v4718_v52 = vld [vmem:[%s8139_s9 + $0x258] sm:$0xf] }
 0x8c8   :  { %3542 = vmatpush.bf16.msra.mxu0 %v4695_v35  ;;  %v4683_v27 = vor.u32 %v4959_v31, %v4682_v30  ;;  %v4935_v30 = vld [vmem:[%s8139_s9 + $0x158] sm:$0xf0]  ;;  %v4623_v31 = vor.u32 %v4944_v1, %v4622_v41  ;;  %v4430_v41 = vld [vmem:[%s8139_s9 + $0x18] sm:$0xf] }
 0x8c9   :  { %v2722_v2 = vadd.f32 %v2718_v51, %v2662_v43  ;;  %3555 = vmatpush.bf16.msra.mxu1 %v4791_v55  ;;  %v4586_v55 = vld [vmem:[%s8139_s9 + $0x150] sm:$0xf] }
 0x8ca   :  { %v2691_v61 = vpop.f32.mrf.mxu3 }
 0x8cb   :  { %v2692_v33 = vadd.f32 %v2691_v61, %v2678_v40  ;;  %2723 = vadd.xlane.f32.xlu0 %v2722_v2  ;;  %v4956_v40 = vld [vmem:[%s8139_s9 + $0x200] sm:$0xf0]  ;;  %v4766_v2 = vld [vmem:[%s8139_s9 + $0x2b8] sm:$0xf] }
 0x8cc   :  { %3543 = vmatpush.bf16.msra.mxu0 %v4683_v27  ;;  %v4671_v61 = vor.u32 %v4956_v40, %v4670_v63  ;;  %v2810_v27 = vld [vmem:[%s8136_s6] sm:$0x3]  ;;  %v4908_v63 = vld [vmem:[%s8139_s9 + $0x80] sm:$0xf0] }
 0x8cd   :  { %v2706_v26 = vadd.f32 %v2705_v54, %v2692_v33  ;;  %v4767_v33 = vor.u32 %v4980_v45, %v4766_v2  ;;  %v4610_v40 = vld [vmem:[%s8139_s9 + $0x180] sm:$0xf]  ;;  %v4941_v2 = vld [vmem:[%s8139_s9 + $0x188] sm:$0xf0]  ;;  %v4587_v45 = vor.u32 %v4935_v30, %v4586_v55  ;;  %v4526_v55 = vld [vmem:[%s8139_s9 + $0xd8] sm:$0xf] }
 0x8ce   :  { %v4920_v30 = vld [vmem:[%s8139_s9 + $0xe0] sm:$0xf0] }
 0x8cf   :  { %v2720_v44 = vadd.f32 %v2719_v7, %v2706_v26 }
 0x8d0   :  { %3544 = vmatpush.bf16.msra.mxu0 %v4671_v61 }
 0x8d1   :  { %v2725_v58 = vadd.f32 %v2720_v44, %v2664_v4 }
 0x8d3   :  { %2726 = vadd.xlane.f32.xlu1 %v2725_v58  ;;  %v4754_v58 = vld [vmem:[%s8139_s9 + $0x2a0] sm:$0xf] }
 0x93e   :  { %v2724_v16 = vpop.xlane.xlu0 %2723 }
 0x93f   :  { %v2728_v48 = vmul.f32 0.00390625, %v2724_v16 }
 0x941   :  { %v7487_v15 = vsub.f32 %v2662_v43, %v2728_v48  ;;  %v7489_v12 = vsub.f32 %v2718_v51, %v2728_v48  ;;  %v4983_v43 = vld [vmem:[%s8139_s9 + $0x2d8] sm:$0xf0]  ;;  %v4977_v48 = vld [vmem:[%s8139_s9 + $0x2a8] sm:$0xf0] }
 0x942   :  { %v4779_v51 = vor.u32 %v4983_v43, %v4778_v53  ;;  %v4968_v53 = vld [vmem:[%s8139_s9 + $0x260] sm:$0xf0] }
 0x943   :  { %v2734_v50 = vmul.f32 %v7487_v15, %v7487_v15  ;;  %v2735_v17 = vmul.f32 %v7489_v12, %v7489_v12  ;;  %v4719_v43 = vor.u32 %v4968_v53, %v4718_v52  ;;  %v4648_v53 = vld [vmem:[%s8139_s9 + $0x1d4] sm:$0xf0] }
 0x944   :  { %3556 = vmatpush.bf16.msra.mxu1 %v4779_v51  ;;  %v4478_v51 = vld [vmem:[%s8139_s9 + $0x78] sm:$0xf] }
 0x945   :  { %v2738_v60 = vadd.f32 %v2735_v17, %v2734_v50 }
 0x946   :  { %v2727_v3 = vpop.xlane.xlu1 %2726 }
 0x947   :  { %v2729_v23 = vmul.f32 0.00390625, %v2727_v3  ;;  %2739 = vadd.xlane.f32.xlu2 %v2738_v60  ;;  %v4646_v3 = vld [vmem:[%s8139_s9 + $0x1c8] sm:$0xf] }
 0x948   :  { %3557 = vmatpush.bf16.msra.mxu1 %v4767_v33  ;;  %v4574_v33 = vld [vmem:[%s8139_s9 + $0x138] sm:$0xf] }
 0x949   :  { %v7495_v29 = vsub.f32 %v2664_v4, %v2729_v23  ;;  %v7497_v46 = vsub.f32 %v2720_v44, %v2729_v23  ;;  %v4658_v4 = vld [vmem:[%s8139_s9 + $0x1e0] sm:$0xf]  ;;  %v4953_v44 = vld [vmem:[%s8139_s9 + $0x1e8] sm:$0xf0]  ;;  %v4950_v23 = vld [vmem:[%s8139_s9 + $0x1d0] sm:$0xf0] }
 0x94a   :  { %v4659_v16 = vor.u32 %v4953_v44, %v4658_v4  ;;  %v4611_v4 = vor.u32 %v4941_v2, %v4610_v40  ;;  %v4527_v2 = vor.u32 %v4920_v30, %v4526_v55  ;;  %v4624_v55 = vld [vmem:[%s8139_s9 + $0x1a4] sm:$0xf0] }
 0x94b   :  { %v2736_v25 = vmul.f32 %v7495_v29, %v7495_v29  ;;  %v2737_v28 = vmul.f32 %v7497_v46, %v7497_v46 }
 0x94c   :  { %3545 = vmatpush.bf16.msra.mxu0 %v4659_v16  ;;  %v4696_v16 = vld [vmem:[%s8139_s9 + $0x234] sm:$0xf0] }
 0x94d   :  { %v2741_v11 = vadd.f32 %v2737_v28, %v2736_v25  ;;  %v4742_v25 = vld [vmem:[%s8139_s9 + $0x288] sm:$0xf] }
 0x94f   :  { %2742 = vadd.xlane.f32.xlu0 %v2741_v11 }
 0x963   :  { %2786 = vperm.xlu0 %4994, %v2384_v47   ;;  %v4502_v47 = vld [vmem:[%s8139_s9 + $0xa8] sm:$0xf] }
 0x9ba   :  { %v2740_v8 = vpop.xlane.xlu2 %2739 }
 0x9bb   :  { %v2744_v5 = vmul.f32 0.00390625, %v2740_v8  ;;  %v4914_v8 = vld [vmem:[%s8139_s9 + $0xb0] sm:$0xf0] }
 0x9bd   :  { %v2746_v36 = vadd.f32 1e-05, %v2744_v5  ;;  %v4598_v5 = vld [vmem:[%s8139_s9 + $0x168] sm:$0xf] }
 0x9bf   :  { %5037 = vrsqrt.f32 %v2746_v36  ;;  %vm2754_vm0 = vweird.f32 %v2746_v36 }
 0x9c2   :  { %v2743_v32 = vpop.xlane.xlu0 %2742 }
 0x9c3   :  { %v2745_v42 = vmul.f32 0.00390625, %v2743_v32  ;;  %v4974_v32 = vld [vmem:[%s8139_s9 + $0x290] sm:$0xf0] }
 0x9c5   :  { %v5038_v49 = vpop.eup %5037  ;;  %v2747_v34 = vadd.f32 1e-05, %v2745_v42 }
 0x9c6   :  { %v2749_v21 = vmul.f32 %v5038_v49, %v2746_v36  ;;  %vm2755_vm15 = vweird.f32 %v5038_v49  ;;  %v4647_v36 = vor.u32 %v4950_v23, %v4646_v3  ;;  %v4905_v23 = vld [vmem:[%s8139_s9 + $0x68] sm:$0xf0] }
 0x9c7   :  { %5039 = vrsqrt.f32 %v2747_v34  ;;  %vm2756_vm2 = vmor %vm2754_vm0, %vm2755_vm15  ;;  %vm2764_vm5 = vweird.f32 %v2747_v34 }
 0x9c8   :  { %v2750_v18 = vmul.f32 %v5038_v49, %v2749_v21  ;;  %3546 = vmatpush.bf16.msra.mxu0 %v4647_v36  ;;  %v4780_v36 = vld [vmem:[%s8139_s9 + $0x2dc] sm:$0xf0] }
 0x9ca   :  { %v2751_v24 = vmul.f32 0.5, %v2750_v18 }
 0x9cc   :  { %v2752_v13 = vsub.f32 1.5, %v2751_v24  ;;  %v4634_v24 = vld [vmem:[%s8139_s9 + $0x1b0] sm:$0xf] }
 0x9cd   :  { %v5040_v10 = vpop.eup %5039 }
 0x9ce   :  { %v2759_v56 = vmul.f32 %v5040_v10, %v2747_v34  ;;  %v2753_v19 = vmul.f32 %v5038_v49, %v2752_v13  ;;  %vm2765_vm3 = vweird.f32 %v5040_v10  ;;  %v4743_v34 = vor.u32 %v4974_v32, %v4742_v25  ;;  %v4947_v13 = vld [vmem:[%s8139_s9 + $0x1b8] sm:$0xf0]  ;;  %v4562_v25 = vld [vmem:[%s8139_s9 + $0x120] sm:$0xf]  ;;  %v4454_v32 = vld [vmem:[%s8139_s9 + $0x48] sm:$0xf] }
 0x9cf   :  { %vm2766_vm6 = vmor %vm2764_vm5, %vm2765_vm3 }
 0x9d0   :  { %v2760_v6 = vmul.f32 %v5040_v10, %v2759_v56  ;;  %v2757_v57 = vsel %vm2756_vm2, %v5038_v49, %v2753_v19  ;;  %v4938_v49 = vld [vmem:[%s8139_s9 + $0x170] sm:$0xf0]  ;;  %v4635_v56 = vor.u32 %v4947_v13, %v4634_v24  ;;  %v4672_v24 = vld [vmem:[%s8139_s9 + $0x204] sm:$0xf0]  ;;  %v4979_v13 = vld [vmem:[%s8139_s9 + $0x2bc] sm:$0xf] }
 0x9d1   :  { %v2768_v39 = vmul.f32 %v2757_v57, %v2382_v14  ;;  %v4971_v14 = vld [vmem:[%s8139_s9 + $0x278] sm:$0xf0]  ;;  %v4503_v57 = vor.u32 %v4914_v8, %v4502_v47  ;;  %v4684_v47 = vld [vmem:[%s8139_s9 + $0x21c] sm:$0xf0]  ;;  %v4982_v8 = vld [vmem:[%s8139_s9 + $0x2d4] sm:$0xf] }
 0x9d2   :  { %v2761_v62 = vmul.f32 0.5, %v2760_v6  ;;  %3547 = vmatpush.bf16.msra.mxu0 %v4635_v56  ;;  %v4768_v56 = vld [vmem:[%s8139_s9 + $0x2c4] sm:$0xf0] }
 0x9d3   :  { %2772 = vperm.xlu1 %4995, %v2768_v39   ;;  %v4599_v39 = vor.u32 %v4938_v49, %v4598_v5  ;;  %v4902_v49 = vld [vmem:[%s8139_s9 + $0x50] sm:$0xf0] }
 0x9d4   :  { %v2762_v38 = vsub.f32 1.5, %v2761_v62  ;;  %v4490_v62 = vld [vmem:[%s8139_s9 + $0x90] sm:$0xf] }
 0x9d6   :  { %v2763_v22 = vmul.f32 %v5040_v10, %v2762_v38  ;;  %v4911_v38 = vld [vmem:[%s8139_s9 + $0x98] sm:$0xf0]  ;;  %3548 = vmatpush.bf16.msra.mxu0 %v4623_v31  ;;  %v4949_v31 = vld [vmem:[%s8139_s9 + $0x1cc] sm:$0xf] }
 0x9d7   :  { %v4491_v61 = vor.u32 %v4911_v38, %v4490_v62  ;;  %v4538_v62 = vld [vmem:[%s8139_s9 + $0xf0] sm:$0xf]  ;;  %v4923_v38 = vld [vmem:[%s8139_s9 + $0xf8] sm:$0xf0] }
 0x9d8   :  { %v2767_v59 = vsel %vm2766_vm6, %v5040_v10, %v2763_v22  ;;  %v4730_v10 = vld [vmem:[%s8139_s9 + $0x270] sm:$0xf] }
 0x9d9   :  { %v2769_v20 = vmul.f32 %v2767_v59, %v2383_v0  ;;  %v4731_v0 = vor.u32 %v4971_v14, %v4730_v10  ;;  %v4442_v14 = vld [vmem:[%s8139_s9 + $0x30] sm:$0xf] }
 0x9da   :  { %3549 = vmatpush.bf16.msra.mxu0 %v4611_v4  ;;  %v4937_v4 = vld [vmem:[%s8139_s9 + $0x16c] sm:$0xf] }
 0x9db   :  { %2777 = vperm.xlu2 %4996, %v2769_v20   ;;  %2791 = vperm.xlu1 %4995, %v2385_v37  }
 0xa35   :  { %v2778_v50 = vpop.permute.xlu2 %2777 }
 0xa36   :  { %v2782_v28 = vmul.f32 %v2778_v50, %v7495_v29  ;;  %v2783_v11 = vmul.f32 %v2778_v50, %v7497_v46  ;;  %v4466_v50 = vld [vmem:[%s8139_s9 + $0x60] sm:$0xf] }
 0xa45   :  { %v2773_v54 = vpop.permute.xlu1 %2772 }
 0xa46   :  { %v2780_v26 = vmul.f32 %v2773_v54, %v7487_v15  ;;  %v2781_v7 = vmul.f32 %v2773_v54, %v7489_v12  ;;  %v2787_v15 = vpop.permute.xlu0 %2786  ;;  %v4755_v12 = vor.u32 %v4977_v48, %v4754_v58  ;;  %v4706_v54 = vld [vmem:[%s8139_s9 + $0x240] sm:$0xf]  ;;  %v4961_v58 = vld [vmem:[%s8139_s9 + $0x22c] sm:$0xf] }
 0xa47   :  { %v4699_v48 = vor.u32 %v4961_v58, %v4696_v16 }
 0xa48   :  { %v2794_v17 = vadd.f32 %v2787_v15, %v2780_v26  ;;  %v2795_v60 = vadd.f32 %v2787_v15, %v2781_v7  ;;  %3558 = vmatpush.bf16.msra.mxu1 %v4755_v12  ;;  %v4965_v26 = vld [vmem:[%s8139_s9 + $0x248] sm:$0xf0]  ;;  %v4932_v7 = vld [vmem:[%s8139_s9 + $0x140] sm:$0xf0]  ;;  %v4792_v12 = vld [vmem:[%s8139_s9 + $0x2f4] sm:$0xf0] }
 0xa49   :  { %v4707_v44 = vor.u32 %v4965_v26, %v4706_v54  ;;  %v4985_v15 = vld [vmem:[%s8139_s9 + $0x2ec] sm:$0xf]  ;;  %v4575_v3 = vor.u32 %v4932_v7, %v4574_v33  ;;  %3594 = vmatpush.bf16.msrb.mxu0 %v4699_v48  ;;  %v4514_v54 = vld [vmem:[%s8139_s9 + $0xc0] sm:$0xf]  ;;  %v4504_v7 = vld [vmem:[%s8139_s9 + $0xb4] sm:$0xf0] }
 0xa4a   :  { %v2802_v29 = vmul.f32 0.2, %v2794_v17  ;;  %v2803_v42 = vmul.f32 0.2, %v2795_v60  ;;  %vm2798_vm7 = vcmp.gt.f32.partialorder %v2794_v17, 0.0  ;;  %vm2799_vm8 = vcmp.gt.f32.partialorder %v2795_v60, 0.0 }
 0xa4b   :  { %v4913_v33 = vld [vmem:[%s8139_s9 + $0xac] sm:$0xf] }
 0xa4c   :  { %3559 = vmatpush.bf16.msra.mxu1 %v4743_v34  ;;  %v2806_v22 = vsel %vm2798_vm7, %v2794_v17, %v2802_v29  ;;  %v2807_v59 = vsel %vm2799_vm8, %v2795_v60, %v2803_v42  ;;  %v4795_v17 = vor.u32 %v4985_v15, %v4792_v12  ;;  %v4479_v60 = vor.u32 %v4908_v63, %v4478_v51  ;;  %v4550_v34 = vld [vmem:[%s8139_s9 + $0x108] sm:$0xf]  ;;  %v4744_v51 = vld [vmem:[%s8139_s9 + $0x294] sm:$0xf0]  ;;  %v4917_v26 = vld [vmem:[%s8139_s9 + $0xc8] sm:$0xf0] }
 0xa4d   :  { %v2792_v46 = vpop.permute.xlu1 %2791  ;;  %v4783_v29 = vor.u32 %v4982_v8, %v4780_v36  ;;  %v4467_v42 = vor.u32 %v4905_v23, %v4466_v50  ;;  %v4515_v16 = vor.u32 %v4917_v26, %v4514_v54  ;;  %v4507_v48 = vor.u32 %v4913_v33, %v4504_v7  ;;  %v4910_v12 = vld [vmem:[%s8139_s9 + $0x94] sm:$0xf]  ;;  %v4492_v50 = vld [vmem:[%s8139_s9 + $0x9c] sm:$0xf0]  ;;  %v4904_v36 = vld [vmem:[%s8139_s9 + $0x64] sm:$0xf] }
 0xa4e   :  { %v2796_v21 = vadd.f32 %v2792_v46, %v2782_v28  ;;  %v2797_v18 = vadd.f32 %v2792_v46, %v2783_v11  ;;  %v4929_v28 = vld [vmem:[%s8139_s9 + $0x128] sm:$0xf0]  ;;  %v4958_v11 = vld [vmem:[%s8139_s9 + $0x214] sm:$0xf]  ;;  %v4940_v33 = vld [vmem:[%s8139_s9 + $0x184] sm:$0xf] }
 0xa4f   :  { %v4687_v5 = vor.u32 %v4958_v11, %v4684_v47  ;;  %v4563_v46 = vor.u32 %v4929_v28, %v4562_v25  ;;  %v4907_v25 = vld [vmem:[%s8139_s9 + $0x7c] sm:$0xf]  ;;  %v4480_v28 = vld [vmem:[%s8139_s9 + $0x84] sm:$0xf0]  ;;  %v4612_v54 = vld [vmem:[%s8139_s9 + $0x18c] sm:$0xf0] }
 0xa50   :  { %vm2800_vm9 = vcmp.gt.f32.partialorder %v2796_v21, 0.0  ;;  %vm2801_vm4 = vcmp.gt.f32.partialorder %v2797_v18, 0.0  ;;  %v2804_v19 = vmul.f32 0.2, %v2796_v21  ;;  %v2805_v6 = vmul.f32 0.2, %v2797_v18  ;;  %3560 = vmatpush.bf16.msra.mxu1 %v4731_v0 }
 0xa51   :  { %3595 = vmatpush.bf16.msrb.mxu0 %v4687_v5  ;;  %v4952_v0 = vld [vmem:[%s8139_s9 + $0x1e4] sm:$0xf]  ;;  %v4931_v11 = vld [vmem:[%s8139_s9 + $0x13c] sm:$0xf]  ;;  %v4576_v47 = vld [vmem:[%s8139_s9 + $0x144] sm:$0xf0]  ;;  %v4483_v8 = vor.u32 %v4907_v25, %v4480_v28 }
 0xa52   :  { %v2808_v37 = vsel %vm2800_vm9, %v2796_v21, %v2804_v19  ;;  %v2809_v20 = vsel %vm2801_vm4, %v2797_v18, %v2805_v6  ;;  %v4926_v21 = vld [vmem:[%s8139_s9 + $0x110] sm:$0xf0]  ;;  %v4955_v18 = vld [vmem:[%s8139_s9 + $0x1fc] sm:$0xf]  ;;  %v4771_v19 = vor.u32 %v4979_v13, %v4768_v56  ;;  %v4455_v6 = vor.u32 %v4902_v49, %v4454_v32  ;;  %v4468_v32 = vld [vmem:[%s8139_s9 + $0x6c] sm:$0xf0] }
 0xa53   :  { %v2811_v35 = vpack.c.bf16 %v2808_v37, %v2806_v22  ;;  %v2812_v9 = vpack.c.bf16 %v2809_v20, %v2807_v59  ;;  %v4675_v10 = vor.u32 %v4955_v18, %v4672_v24  ;;  %v4660_v22 = vld [vmem:[%s8139_s9 + $0x1ec] sm:$0xf0]  ;;  %v4976_v59 = vld [vmem:[%s8139_s9 + $0x2a4] sm:$0xf]  ;;  %v4579_v5 = vor.u32 %v4931_v11, %v4576_v47  ;;  %v4925_v18 = vld [vmem:[%s8139_s9 + $0x10c] sm:$0xf] }
 0xa54   :  { %3561 = vmatpush.bf16.msra.mxu1 %v4719_v43  ;;  %v4663_v37 = vor.u32 %v4952_v0, %v4660_v22  ;;  %v4756_v20 = vld [vmem:[%s8139_s9 + $0x2ac] sm:$0xf0]  ;;  %v4651_v43 = vor.u32 %v4949_v31, %v4648_v53  ;;  %v4552_v24 = vld [vmem:[%s8139_s9 + $0x114] sm:$0xf0]  ;;  %v4898_v56 = vld [vmem:[%s8139_s9 + $0x34] sm:$0xf] }
 0xa55   :  { %2824 = vmatpush.bf16.msra.mxu2 %v2811_v35  ;;  %2837 = vmatpush.bf16.msrb.mxu3 %v2812_v9  ;;  %v4759_v1 = vor.u32 %v4976_v59, %v4756_v20  ;;  %v4539_v35 = vor.u32 %v4923_v38, %v4538_v62  ;;  %v4896_v9 = vld [vmem:[%s8139_s9 + $0x20] sm:$0xf0]  ;;  %v4636_v38 = vld [vmem:[%s8139_s9 + $0x1bc] sm:$0xf0]  ;;  %v4970_v0 = vld [vmem:[%s8139_s9 + $0x274] sm:$0xf] }
 0xa56   :  { %3596 = vmatpush.bf16.msrb.mxu0 %v4675_v10  ;;  %v4431_v40 = vor.u32 %v4896_v9, %v4430_v41  ;;  %v4555_v10 = vor.u32 %v4925_v18, %v4552_v24  ;;  %v4732_v22 = vld [vmem:[%s8139_s9 + $0x27c] sm:$0xf0]  ;;  %v4895_v20 = vld [vmem:[%s8139_s9 + $0x1c] sm:$0xf]  ;;  %v4432_v41 = vld [vmem:[%s8139_s9 + $0x24] sm:$0xf0] }
 0xa57   :  { %v4943_v9 = vld [vmem:[%s8139_s9 + $0x19c] sm:$0xf]  ;;  %v4964_v26 = vld [vmem:[%s8139_s9 + $0x244] sm:$0xf]  ;;  %v4708_v7 = vld [vmem:[%s8139_s9 + $0x24c] sm:$0xf0] }
 0xa58   :  { %4412 = vmatmul.msk.bf16.vlgmr.msrb.gmra.mxu3 %vm2813_vm10, %v2810_v27  ;;  %4411 = vmatmul.msk.bf16.vlgmr.msra.gmra.mxu2 %vm2813_vm10, %v2810_v27  ;;  %v4973_v27 = vld [vmem:[%s8139_s9 + $0x28c] sm:$0xf]  ;;  %v4627_v31 = vor.u32 %v4943_v9, %v4624_v55  ;;  %v4967_v53 = vld [vmem:[%s8139_s9 + $0x25c] sm:$0xf]  ;;  %v4912_v24 = vld [vmem:[%s8139_s9 + $0xa0] sm:$0xf0] }
 0xa59   :  { %3516 = vmatpush.bf16.msrb.mxu2 %v4503_v57  ;;  %3529 = vmatpush.bf16.msra.mxu3 %v4599_v39  ;;  %v4551_v57 = vor.u32 %v4926_v21, %v4550_v34  ;;  %v4899_v39 = vld [vmem:[%s8139_s9 + $0x38] sm:$0xf0]  ;;  %v4747_v63 = vor.u32 %v4973_v27, %v4744_v51  ;;  %v4901_v34 = vld [vmem:[%s8139_s9 + $0x4c] sm:$0xf]  ;;  %v4456_v21 = vld [vmem:[%s8139_s9 + $0x54] sm:$0xf0] }
 0xa5a   :  { %3562 = vmatpush.bf16.msra.mxu1 %v4707_v44  ;;  %v4443_v52 = vor.u32 %v4899_v39, %v4442_v14  ;;  %3597 = vmatpush.bf16.msrb.mxu0 %v4663_v37  ;;  %v4600_v44 = vld [vmem:[%s8139_s9 + $0x174] sm:$0xf0]  ;;  %v4459_v13 = vor.u32 %v4901_v34, %v4456_v21  ;;  %v4444_v14 = vld [vmem:[%s8139_s9 + $0x3c] sm:$0xf0]  ;;  %v4946_v39 = vld [vmem:[%s8139_s9 + $0x1b4] sm:$0xf]  ;;  %v4735_v37 = vor.u32 %v4970_v0, %v4732_v22 }
 0xa5b   :  { %v4603_v15 = vor.u32 %v4937_v4, %v4600_v44  ;;  %v4639_v59 = vor.u32 %v4946_v39, %v4636_v38  ;;  %v4720_v27 = vld [vmem:[%s8139_s9 + $0x264] sm:$0xf0]  ;;  %v4892_v51 = vld [vmem:[%s8139_s9 + $0x4] sm:$0xf]  ;;  %v4615_v4 = vor.u32 %v4940_v33, %v4612_v54  ;;  %v4711_v44 = vor.u32 %v4964_v26, %v4708_v7  ;;  %v4963_v28 = vld [vmem:[%s8139_s9 + $0x238] sm:$0xf0] }
 0xa5c   :  { %v4960_v39 = vld [vmem:[%s8139_s9 + $0x220] sm:$0xf0]  ;;  %v4666_v54 = vld [vmem:[%s8139_s9 + $0x1e8] sm:$0xf]  ;;  %v4954_v26 = vld [vmem:[%s8139_s9 + $0x1f0] sm:$0xf0] }
 0xa5d   :  { %3517 = vmatpush.bf16.msrb.mxu2 %v4491_v61  ;;  %3530 = vmatpush.bf16.msra.mxu3 %v4587_v45  ;;  %v4418_v61 = vld [vmem:[%s8139_s9] sm:$0xf]  ;;  %v4893_v45 = vld [vmem:[%s8139_s9 + $0x8] sm:$0xf0]  ;;  %v4984_v38 = vld [vmem:[%s8139_s9 + $0x2e0] sm:$0xf0] }
 0xa5e   :  { %3607 = vmatpush.bf16.msrb.mxu1 %v4795_v17  ;;  %3598 = vmatpush.bf16.msrb.mxu0 %v4651_v43  ;;  %v4419_v58 = vor.u32 %v4893_v45, %v4418_v61  ;;  %v4934_v17 = vld [vmem:[%s8139_s9 + $0x154] sm:$0xf]  ;;  %v4723_v43 = vor.u32 %v4967_v53, %v4720_v27  ;;  %v4516_v61 = vld [vmem:[%s8139_s9 + $0xcc] sm:$0xf0]  ;;  %v4774_v53 = vld [vmem:[%s8139_s9 + $0x2c0] sm:$0xf] }
 0xa5f   :  { %v4981_v27 = vld [vmem:[%s8139_s9 + $0x2c8] sm:$0xf0]  ;;  %v4762_v7 = vld [vmem:[%s8139_s9 + $0x2a8] sm:$0xf] }
 0xa60   :  { %v4775_v33 = vor.u32 %v4981_v27, %v4774_v53  ;;  %v4714_v53 = vld [vmem:[%s8139_s9 + $0x248] sm:$0xf]  ;;  %v4966_v27 = vld [vmem:[%s8139_s9 + $0x250] sm:$0xf0] }
 0xa61   :  { %3518 = vmatpush.bf16.msrb.mxu2 %v4479_v60  ;;  %3531 = vmatpush.bf16.msra.mxu3 %v4575_v3  ;;  %v4588_v60 = vld [vmem:[%s8139_s9 + $0x15c] sm:$0xf0]  ;;  %v4495_v3 = vor.u32 %v4910_v12, %v4492_v50  ;;  %v4606_v12 = vld [vmem:[%s8139_s9 + $0x170] sm:$0xf]  ;;  %v4939_v50 = vld [vmem:[%s8139_s9 + $0x178] sm:$0xf0] }
 0xa62   :  { %3608 = vmatpush.bf16.msrb.mxu1 %v4783_v29  ;;  %v4591_v23 = vor.u32 %v4934_v17, %v4588_v60  ;;  %v4928_v29 = vld [vmem:[%s8139_s9 + $0x124] sm:$0xf]  ;;  %3599 = vmatpush.bf16.msrb.mxu0 %v4639_v59  ;;  %v4702_v17 = vld [vmem:[%s8139_s9 + $0x230] sm:$0xf]  ;;  %v4486_v59 = vld [vmem:[%s8139_s9 + $0x80] sm:$0xf] }
 0xa65   :  { %3519 = vmatpush.bf16.msrb.mxu2 %v4467_v42  ;;  %3532 = vmatpush.bf16.msra.mxu3 %v4563_v46  ;;  %v4564_v42 = vld [vmem:[%s8139_s9 + $0x12c] sm:$0xf0]  ;;  %v4471_v46 = vor.u32 %v4904_v36, %v4468_v32 }
 0xa66   :  { %3609 = vmatpush.bf16.msrb.mxu1 %v4771_v19  ;;  %v4567_v49 = vor.u32 %v4928_v29, %v4564_v42  ;;  %v4447_v19 = vor.u32 %v4898_v56, %v4444_v14  ;;  %3600 = vmatpush.bf16.msrb.mxu0 %v4627_v31  ;;  %v4607_v42 = vor.u32 %v4939_v50, %v4606_v12  ;;  %v4957_v31 = vld [vmem:[%s8139_s9 + $0x208] sm:$0xf0]  ;;  %v4927_v12 = vld [vmem:[%s8139_s9 + $0x118] sm:$0xf0] }
 0xa67   :  { %v4667_v50 = vor.u32 %v4954_v26, %v4666_v54 }
 0xa69   :  { %3520 = vmatpush.bf16.msrb.mxu2 %v4455_v6  ;;  %3533 = vmatpush.bf16.msra.mxu3 %v4551_v57  ;;  %v4922_v6 = vld [vmem:[%s8139_s9 + $0xf4] sm:$0xf]  ;;  %v4540_v57 = vld [vmem:[%s8139_s9 + $0xfc] sm:$0xf0] }
 0xa6a   :  { %3610 = vmatpush.bf16.msrb.mxu1 %v4759_v1  ;;  %v4543_v62 = vor.u32 %v4922_v6, %v4540_v57  ;;  %v4919_v1 = vld [vmem:[%s8139_s9 + $0xdc] sm:$0xf]  ;;  %3601 = vmatpush.bf16.msrb.mxu0 %v4615_v4  ;;  %v4690_v57 = vld [vmem:[%s8139_s9 + $0x218] sm:$0xf]  ;;  %v4978_v4 = vld [vmem:[%s8139_s9 + $0x2b0] sm:$0xf0] }
 0xa6b   :  { %v4691_v9 = vor.u32 %v4960_v39, %v4690_v57  ;;  %v4921_v57 = vld [vmem:[%s8139_s9 + $0xe8] sm:$0xf0] }
 0xa6d   :  { %3521 = vmatpush.bf16.msrb.mxu2 %v4443_v52  ;;  %3534 = vmatpush.bf16.msra.mxu3 %v4539_v35  ;;  %v4435_v52 = vor.u32 %v4895_v20, %v4432_v41  ;;  %v4528_v35 = vld [vmem:[%s8139_s9 + $0xe4] sm:$0xf0]  ;;  %v4582_v20 = vld [vmem:[%s8139_s9 + $0x140] sm:$0xf]  ;;  %v4933_v41 = vld [vmem:[%s8139_s9 + $0x148] sm:$0xf0] }
 0xa6e   :  { %3611 = vmatpush.bf16.msrb.mxu1 %v4747_v63  ;;  %v4531_v30 = vor.u32 %v4919_v1, %v4528_v35  ;;  %v4420_v63 = vld [vmem:[%s8139_s9 + $0xc] sm:$0xf0] }
 0xa6f   :  { %v2999_v35 = vld [vmem:[%s8137_s7 + $0x150] sm:$0x1] }
 0xa70   :  { %4990 = vpush %v2999_v35  ;;  %v4918_v35 = vld [vmem:[%s8139_s9 + $0xd0] sm:$0xf0] }
 0xa71   :  { %3522 = vmatpush.bf16.msrb.mxu2 %v4431_v40  ;;  %3535 = vmatpush.bf16.msra.mxu3 %v4527_v2  ;;  %v4916_v40 = vld [vmem:[%s8139_s9 + $0xc4] sm:$0xf]  ;;  %v4423_v2 = vor.u32 %v4892_v51, %v4420_v63  ;;  %v4583_v51 = vor.u32 %v4933_v41, %v4582_v20  ;;  %v4474_v63 = vld [vmem:[%s8139_s9 + $0x68] sm:$0xf] }
 0xa72   :  { %3612 = vmatpush.bf16.msrb.mxu1 %v4735_v37  ;;  %v4519_v45 = vor.u32 %v4916_v40, %v4516_v61  ;;  %v4909_v37 = vld [vmem:[%s8139_s9 + $0x88] sm:$0xf0]  ;;  %v4906_v40 = vld [vmem:[%s8139_s9 + $0x70] sm:$0xf0]  ;;  %v4426_v41 = vld [vmem:[%s8139_s9 + $0x8] sm:$0xf] }
 0xa73   :  { %v4930_v61 = vld [vmem:[%s8139_s9 + $0x130] sm:$0xf0] }
 0xa75   :  { %3523 = vmatpush.bf16.msrb.mxu2 %v4419_v58  ;;  %3536 = vmatpush.bf16.msra.mxu3 %v4515_v16  ;;  %v4510_v58 = vld [vmem:[%s8139_s9 + $0xb0] sm:$0xf]  ;;  %v4915_v16 = vld [vmem:[%s8139_s9 + $0xb8] sm:$0xf0] }
 0xa76   :  { %3613 = vmatpush.bf16.msrb.mxu1 %v4723_v43  ;;  %v4511_v29 = vor.u32 %v4915_v16, %v4510_v58  ;;  %v4487_v43 = vor.u32 %v4909_v37, %v4486_v59  ;;  %v4462_v16 = vld [vmem:[%s8139_s9 + $0x50] sm:$0xf]  ;;  %v4969_v59 = vld [vmem:[%s8139_s9 + $0x268] sm:$0xf0] }
 0xa79   :  { %3568 = vmatpush.bf16.msra.mxu2 %v4507_v48  ;;  %3581 = vmatpush.bf16.msrb.mxu3 %v4603_v15 }
 0xa7a   :  { %3614 = vmatpush.bf16.msrb.mxu1 %v4711_v44  ;;  %v4475_v44 = vor.u32 %v4906_v40, %v4474_v63  ;;  %v4715_v40 = vor.u32 %v4966_v27, %v4714_v53 }
 0xa7d   :  { %3569 = vmatpush.bf16.msra.mxu2 %v4495_v3  ;;  %3582 = vmatpush.bf16.msrb.mxu3 %v4591_v23 }
 0xa81   :  { %3570 = vmatpush.bf16.msra.mxu2 %v4483_v8  ;;  %3583 = vmatpush.bf16.msrb.mxu3 %v4579_v5  ;;  %v4798_v8 = vld [vmem:[%s8139_s9 + $0x2f0] sm:$0xf]  ;;  %v4987_v5 = vld [vmem:[%s8139_s9 + $0x2f8] sm:$0xf0] }
 0xa82   :  { %v4799_v6 = vor.u32 %v4987_v5, %v4798_v8  ;;  %v4900_v8 = vld [vmem:[%s8139_s9 + $0x40] sm:$0xf0]  ;;  %v4546_v5 = vld [vmem:[%s8139_s9 + $0xf8] sm:$0xf] }
 0xa85   :  { %3571 = vmatpush.bf16.msra.mxu2 %v4471_v46  ;;  %3584 = vmatpush.bf16.msrb.mxu3 %v4567_v49  ;;  %v4498_v46 = vld [vmem:[%s8139_s9 + $0x98] sm:$0xf] }
 0xa86   :  { %v4499_v0 = vor.u32 %v4912_v24, %v4498_v46  ;;  %v4948_v46 = vld [vmem:[%s8139_s9 + $0x1c0] sm:$0xf0] }
 0xa89   :  { %3572 = vmatpush.bf16.msra.mxu2 %v4459_v13  ;;  %3585 = vmatpush.bf16.msrb.mxu3 %v4555_v10  ;;  %v4594_v13 = vld [vmem:[%s8139_s9 + $0x158] sm:$0xf]  ;;  %v4936_v10 = vld [vmem:[%s8139_s9 + $0x160] sm:$0xf0] }
 0xa8a   :  { %v4595_v22 = vor.u32 %v4936_v10, %v4594_v13  ;;  %v4438_v10 = vld [vmem:[%s8139_s9 + $0x20] sm:$0xf] }
 0xa8d   :  { %3573 = vmatpush.bf16.msra.mxu2 %v4447_v19  ;;  %3586 = vmatpush.bf16.msrb.mxu3 %v4543_v62  ;;  %v4703_v19 = vor.u32 %v4963_v28, %v4702_v17  ;;  %v4786_v62 = vld [vmem:[%s8139_s9 + $0x2d8] sm:$0xf]  ;;  %v4763_v17 = vor.u32 %v4978_v4, %v4762_v7 }
 0xa8e   :  { %v4787_v55 = vor.u32 %v4984_v38, %v4786_v62  ;;  %v4630_v38 = vld [vmem:[%s8139_s9 + $0x1a0] sm:$0xf] }
 0xa91   :  { %3574 = vmatpush.bf16.msra.mxu2 %v4435_v52  ;;  %3587 = vmatpush.bf16.msrb.mxu3 %v4531_v30  ;;  %v4678_v30 = vld [vmem:[%s8139_s9 + $0x200] sm:$0xf] }
 0xa95   :  { %3575 = vmatpush.bf16.msra.mxu2 %v4423_v2  ;;  %3588 = vmatpush.bf16.msrb.mxu3 %v4519_v45  ;;  %v4570_v2 = vld [vmem:[%s8139_s9 + $0x128] sm:$0xf]  ;;  %v4679_v45 = vor.u32 %v4957_v31, %v4678_v30  ;;  %v4942_v31 = vld [vmem:[%s8139_s9 + $0x190] sm:$0xf0] }
 0xa96   :  { %v4571_v58 = vor.u32 %v4930_v61, %v4570_v2  ;;  %v4618_v30 = vld [vmem:[%s8139_s9 + $0x188] sm:$0xf] }
 0xa97   :  { %v4619_v63 = vor.u32 %v4942_v31, %v4618_v30 }
 0xadb   :  { %v2839_v48 = vpop.f32.mrf.mxu3  ;;  %v2826_v15 = vpop.f32.mrf.mxu2 }
 0xadc   :  { %v2854_v60 = vrot.slane %v2839_v48, 7  ;;  %v4414_v3 = vrot.slane %v2839_v48, 9  ;;  %v4415_v23 = vrot.slane %v2839_v48, 10  ;;  %v2844_v25 = vrot.slane %v2826_v15, 1 }
 0xadd   :  { %v2846_v11 = vrot.slane %v2826_v15, 2  ;;  %v2848_v47 = vrot.slane %v2826_v15, 3 }
 0xade   :  { %v2863_v36 = vsel %vm2862_vm11, %v2826_v15, %v2854_v60  ;;  %v2864_v32 = vsel %vm2862_vm11, %v2844_v25, %v2839_v48  ;;  %v4903_v48 = vld [vmem:[%s8139_s9 + $0x58] sm:$0xf0]  ;;  %v4558_v15 = vld [vmem:[%s8139_s9 + $0x110] sm:$0xf] }
 0xadf   :  { %v2865_v49 = vsel %vm2862_vm11, %v2846_v11, %v4414_v3  ;;  %v2866_v34 = vsel %vm2862_vm11, %v2848_v47, %v4415_v23  ;;  %v7939_v21 = vpack.c.bf16 %v2863_v36, %v2863_v36  ;;  %v7941_v18 = vpack.c.bf16 %v2864_v32, %v2864_v32  ;;  %v4654_v60 = vld [vmem:[%s8139_s9 + $0x1d0] sm:$0xf]  ;;  %v4951_v3 = vld [vmem:[%s8139_s9 + $0x1d8] sm:$0xf0]  ;;  %v4450_v47 = vld [vmem:[%s8139_s9 + $0x38] sm:$0xf] }
 0xae0   :  { %v7952_v56 = vpack.c.bf16 %v2865_v49, %v2865_v49  ;;  %v7954_v14 = vpack.c.bf16 %v2866_v34, %v2866_v34  ;;  %v4750_v23 = vld [vmem:[%s8139_s9 + $0x290] sm:$0xf]  ;;  %v4975_v25 = vld [vmem:[%s8139_s9 + $0x298] sm:$0xf0]  ;;  %v4463_v28 = vor.u32 %v4903_v48, %v4462_v16  ;;  %v4559_v11 = vor.u32 %v4927_v12, %v4558_v15  ;;  %v4924_v36 = vld [vmem:[%s8139_s9 + $0x100] sm:$0xf0] }
 0xae1   :  { %3524 = vmatmul.bf16.vlgmr.msrb.gmra.mxu2 %v7939_v21  ;;  %3537 = vmatmul.bf16.vlgmr.msra.gmra.mxu3 %v7941_v18  ;;  %v4655_v32 = vor.u32 %v4951_v3, %v4654_v60  ;;  %v4738_v49 = vld [vmem:[%s8139_s9 + $0x278] sm:$0xf]  ;;  %v4972_v34 = vld [vmem:[%s8139_s9 + $0x280] sm:$0xf0]  ;;  %v4451_v24 = vor.u32 %v4900_v8, %v4450_v47  ;;  %v4547_v13 = vor.u32 %v4924_v36, %v4546_v5 }
 0xae2   :  { %3620 = vmatpush.bf16.msrb.mxu2 %v4511_v29  ;;  %3633 = vmatpush.bf16.msra.mxu3 %v4607_v42  ;;  %v4751_v29 = vor.u32 %v4975_v25, %v4750_v23  ;;  %v4642_v42 = vld [vmem:[%s8139_s9 + $0x1b8] sm:$0xf]  ;;  %v4739_v62 = vor.u32 %v4972_v34, %v4738_v49 }
 0xae3   :  { %3550 = vmatmul.bf16.vlgmr.msra.gmra.mxu0 %v7952_v56  ;;  %3563 = vmatmul.bf16.vlgmr.msra.gmra.mxu1 %v7954_v14  ;;  %v2841_v1 = vpop.f32.mrf.mxu3  ;;  %v2828_v52 = vpop.f32.mrf.mxu2  ;;  %v4643_v39 = vor.u32 %v4948_v46, %v4642_v42 }
 0xae4   :  { %3646 = vmatpush.bf16.msra.mxu0 %v4703_v19  ;;  %3659 = vmatpush.bf16.msra.mxu1 %v4799_v6  ;;  %v4897_v19 = vld [vmem:[%s8139_s9 + $0x28] sm:$0xf0]  ;;  %v4534_v6 = vld [vmem:[%s8139_s9 + $0xe0] sm:$0xf]  ;;  %v4894_v1 = vld [vmem:[%s8139_s9 + $0x10] sm:$0xf0] }
 0xae5   :  { %v4439_v37 = vor.u32 %v4897_v19, %v4438_v10  ;;  %v4535_v20 = vor.u32 %v4921_v57, %v4534_v6  ;;  %v4522_v52 = vld [vmem:[%s8139_s9 + $0xc8] sm:$0xf] }
 0xae6   :  { %3621 = vmatpush.bf16.msrb.mxu2 %v4499_v0  ;;  %3634 = vmatpush.bf16.msra.mxu3 %v4595_v22  ;;  %v4945_v0 = vld [vmem:[%s8139_s9 + $0x1a8] sm:$0xf0]  ;;  %v4726_v22 = vld [vmem:[%s8139_s9 + $0x260] sm:$0xf]  ;;  %s4991_s9 = spop %4990 }
 0xae8   :  { %3647 = vmatpush.bf16.msra.mxu0 %v4691_v9  ;;  %3660 = vmatpush.bf16.msra.mxu1 %v4787_v55  ;;  %v4631_v9 = vor.u32 %v4945_v0, %v4630_v38  ;;  %v4727_v55 = vor.u32 %v4969_v59, %v4726_v22 }
 0xaea   :  { %3622 = vmatpush.bf16.msrb.mxu2 %v4487_v43  ;;  %3635 = vmatpush.bf16.msra.mxu3 %v4583_v51  ;;  %v4427_v43 = vor.u32 %v4894_v1, %v4426_v41  ;;  %v4523_v51 = vor.u32 %v4918_v35, %v4522_v52 }
 0xaec   :  { %3648 = vmatpush.bf16.msra.mxu0 %v4679_v45  ;;  %3661 = vmatpush.bf16.msra.mxu1 %v4775_v33 }
 0xaee   :  { %3623 = vmatpush.bf16.msrb.mxu2 %v4475_v44  ;;  %3636 = vmatpush.bf16.msra.mxu3 %v4571_v58 }
 0xaf0   :  { %3649 = vmatpush.bf16.msra.mxu0 %v4667_v50  ;;  %3662 = vmatpush.bf16.msra.mxu1 %v4763_v17 }
 0xaf1   :  { %3576 = vmatmul.bf16.vlgmr.msra.gmra.mxu2 %v7939_v21  ;;  %3589 = vmatmul.bf16.vlgmr.msrb.gmra.mxu3 %v7941_v18 }
 0xaf2   :  { %3624 = vmatpush.bf16.msrb.mxu2 %v4463_v28  ;;  %3637 = vmatpush.bf16.msra.mxu3 %v4559_v11 }
 0xaf3   :  { %3602 = vmatmul.bf16.vlgmr.msrb.gmra.mxu0 %v7952_v56  ;;  %3615 = vmatmul.bf16.vlgmr.msrb.gmra.mxu1 %v7954_v14 }
 0xaf4   :  { %3650 = vmatpush.bf16.msra.mxu0 %v4655_v32  ;;  %3663 = vmatpush.bf16.msra.mxu1 %v4751_v29 }
 0xaf6   :  { %3625 = vmatpush.bf16.msrb.mxu2 %v4451_v24  ;;  %3638 = vmatpush.bf16.msra.mxu3 %v4547_v13 }
 0xaf8   :  { %3651 = vmatpush.bf16.msra.mxu0 %v4643_v39  ;;  %3664 = vmatpush.bf16.msra.mxu1 %v4739_v62 }
 0xafa   :  { %3626 = vmatpush.bf16.msrb.mxu2 %v4439_v37  ;;  %3639 = vmatpush.bf16.msra.mxu3 %v4535_v20 }
 0xafc   :  { %3652 = vmatpush.bf16.msra.mxu0 %v4631_v9  ;;  %3665 = vmatpush.bf16.msra.mxu1 %v4727_v55 }
 0xafe   :  { %3627 = vmatpush.bf16.msrb.mxu2 %v4427_v43  ;;  %3640 = vmatpush.bf16.msra.mxu3 %v4523_v51 }
 0xb00   :  { %3653 = vmatpush.bf16.msra.mxu0 %v4619_v63  ;;  %3666 = vmatpush.bf16.msra.mxu1 %v4715_v40 }
 0xb01   :  { %3628 = vmatmul.bf16.vlgmr.msrb.gmra.mxu2 %v7939_v21  ;;  %3641 = vmatmul.bf16.vlgmr.msra.gmra.mxu3 %v7941_v18  ;;  %v3002_v18 = vstv %s4991_s9 }
 0xb03   :  { %3654 = vmatmul.bf16.vlgmr.msra.gmra.mxu0 %v7952_v56  ;;  %3667 = vmatmul.bf16.vlgmr.msra.gmra.mxu1 %v7954_v14 }
 0xb60   :  { %v3551_v2 = vpop.f32.mrf.mxu0  ;;  %v3564_v61 = vpop.f32.mrf.mxu1 }
 0xb64   :  { %v3525_v45 = vpop.f32.mrf.mxu2  ;;  %v3538_v33 = vpop.f32.mrf.mxu3 }
 0xb65   :  { %v3526_v17 = vadd.f32 %v3525_v45, %v3002_v18 }
 0xb67   :  { %v3539_v25 = vadd.f32 %v3538_v33, %v3526_v17 }
 0xb68   :  { %v3553_v54 = vpop.f32.mrf.mxu0  ;;  %v3566_v26 = vpop.f32.mrf.mxu1 }
 0xb69   :  { %v3552_v36 = vadd.f32 %v3551_v2, %v3539_v25 }
 0xb6b   :  { %v3565_v34 = vadd.f32 %v3564_v61, %v3552_v36 }
 0xb6c   :  { %v3527_v7 = vpop.f32.mrf.mxu2  ;;  %v3540_v4 = vpop.f32.mrf.mxu3 }
 0xb70   :  { %v3603_v44 = vpop.f32.mrf.mxu0  ;;  %v3616_v58 = vpop.f32.mrf.mxu1 }
 0xb74   :  { %v3577_v16 = vpop.f32.mrf.mxu2  ;;  %v3590_v48 = vpop.f32.mrf.mxu3 }
 0xb75   :  { %v3578_v12 = vadd.f32 %v3577_v16, %v3002_v18 }
 0xb77   :  { %v3591_v14 = vadd.f32 %v3590_v48, %v3578_v12 }
 0xb78   :  { %v3605_v21 = vpop.f32.mrf.mxu0  ;;  %v3618_v15 = vpop.f32.mrf.mxu1 }
 0xb79   :  { %v3604_v23 = vadd.f32 %v3603_v44, %v3591_v14 }
 0xb7b   :  { %v3617_v8 = vadd.f32 %v3616_v58, %v3604_v23 }
 0xb7c   :  { %v3579_v56 = vpop.f32.mrf.mxu2  ;;  %v3592_v50 = vpop.f32.mrf.mxu3 }
 0xb7d   :  { %v3675_v46 = vrot.slane %v3617_v8, 6 }
 0xb7f   :  { %v3678_v19 = vsel %vm3677_vm1, %v3565_v34, %v3675_v46 }
 0xb80   :  { %v3655_v60 = vpop.f32.mrf.mxu0  ;;  %v3668_v3 = vpop.f32.mrf.mxu1 }
 0xb84   :  { %v3629_v28 = vpop.f32.mrf.mxu2  ;;  %v3642_v11 = vpop.f32.mrf.mxu3 }
 0xb85   :  { %v3630_v47 = vadd.f32 %v3629_v28, %v3002_v18 }
 0xb87   :  { %v3643_v5 = vadd.f32 %v3642_v11, %v3630_v47 }
 0xb88   :  { %v3657_v32 = vpop.f32.mrf.mxu0  ;;  %v3670_v29 = vpop.f32.mrf.mxu1 }
 0xb89   :  { %v3656_v42 = vadd.f32 %v3655_v60, %v3643_v5 }
 0xb8b   :  { %v3669_v49 = vadd.f32 %v3668_v3, %v3656_v42 }
 0xb8c   :  { %v3644_v24 = vpop.f32.mrf.mxu3  ;;  %v3631_v13 = vpop.f32.mrf.mxu2 }
 0xb8d   :  { %v3676_v10 = vrot.slane %v3669_v49, 4 }
 0xb8f   :  { %v3680_v6 = vsel %vm3679_vm12, %v3678_v19, %v3676_v10 }
 0xb90   :  { %3682 = vst [vmem:[#allocation2] sm:$0x3f] %v3680_v6 }
 0xb91   :  { %3693 = dma.vmem_to_hbm [thread:$0]  %s3689_s5, 96, %s3691_s16, [#allocation3]  }
 0xb92   :  { %5081 = dma.done.wait [#allocation3], 96  }
 0xb93   :  { %5082 = vsyncadd [#allocation3], 4294967200 }
 0xb94   :  { %3698 = vsyncpa [#allocation3], 1 }

</bundles_post_ra>
